<compile_context>
chip_gen: v5e
topology: v5e:2x2
jax: 0.10.0
libtpu: 0.0.40
codegen_flags: <defaults>
</compile_context>

<pallas_src>
import functools

import jax
import jax.numpy as jnp
from jax import lax
from jax.experimental import pallas as pl
from jax.experimental.pallas import tpu as pltpu


_F32 = 4
_VMEM_WORKING_BUDGET = 24 * 1024 * 1024   # conservative; fits v7x (64 MiB phys)
_VMEM_LIMIT_BYTES = 48 * 1024 * 1024      # raised scoped-VMEM limit, all chips


def _round_up(x, m):
    return ((x + m - 1) // m) * m


def _vmem_estimate(tile_n, e, k):
    """Rough VMEM working-set estimate for one grid step (bytes)."""
    io = 2 * tile_n * e * _F32            # z tile (double-buffered)
    io += 2 * 2 * tile_n * e * _F32       # z_q + z_q_ma tiles (double-buffered)
    io += 2 * tile_n * _F32               # indices tile
    consts = 2 * (k * e + k) * _F32       # codebook + ||w||^2 (double-buffered)
    tmp = 5 * tile_n * k * _F32           # scores, d, col, where, onehot
    return io + consts + tmp


def _codebook_kernel(z_ref, w_ref, wn2_ref, zq_ref, zqma_ref, idx_ref,
                     *, use_bf16_scores: bool):
    """One tile of N rows: nearest-codebook lookup + straight-through value.

    z_ref    : (tn, E)  f32  input vectors (NHWC-flat rows)
    w_ref    : (K, E)   f32  full codebook
    wn2_ref  : (1, K)   f32  precomputed ||w_k||^2
    zq_ref   : (tn, E)  f32  gathered codewords
    zqma_ref : (tn, E)  f32  straight-through forward value z + (z_q - z)
    idx_ref  : (tn, 1)  i32  argmin indices (column layout)
    """
    z = z_ref[...]                       # (tn, E)
    w = w_ref[...]                       # (K, E)

    # scores[n, k] = z[n] . w[k]  — contract the last dim of both operands
    # (transpose_b form); the MXU consumes (K, E) directly, no w.T relayout.
    contract_last = (((1,), (1,)), ((), ()))
    if use_bf16_scores:
        # v6e/v7x: native bf16 MXU; argmin may differ from f32 on near-ties.
        scores = lax.dot_general(
            z.astype(jnp.bfloat16), w.astype(jnp.bfloat16),
            dimension_numbers=contract_last,
            preferred_element_type=jnp.float32)                      # (tn, K)
    else:
        scores = lax.dot_general(
            z, w, dimension_numbers=contract_last,
            preferred_element_type=jnp.float32)                      # (tn, K)

    # ||z - w||^2 = ||z||^2 - 2 z.w + ||w||^2 ; ||z||^2 is constant per row and
    # does not affect the argmin -> dropped (keeps everything MXU/VPU friendly).
    d = wn2_ref[...] - 2.0 * scores                                  # (tn, K)

    # argmin over K with first-occurrence tie-breaking (min + iota trick),
    # kept in (tn, 1) column layout throughout (no lane<->sublane relayout).
    k = d.shape[-1]
    col = lax.broadcasted_iota(jnp.int32, d.shape, 1)                # (tn, K)
    min_d = jnp.min(d, axis=-1, keepdims=True)                       # (tn, 1)
    idx = jnp.min(jnp.where(d == min_d, col, k), axis=-1, keepdims=True)
    idx_ref[...] = idx.astype(jnp.int32)                             # (tn, 1)

    # Gather codewords with a one-hot matmul (second MXU pass, exact copy).
    onehot = (col == idx).astype(w.dtype)                            # (tn, K)
    zq = jnp.dot(onehot, w, preferred_element_type=jnp.float32)      # (tn, E)
    zq_ref[...] = zq.astype(zq_ref.dtype)

    # Straight-through forward value, fused in-kernel (same arithmetic as the
    # PyTorch z + (z_q - z).detach()); saves an extra HBM pass in the wrapper.
    zqma_ref[...] = (z + (zq - z)).astype(zqma_ref.dtype)


@functools.partial(jax.jit, static_argnames=("tile_n", "use_bf16_scores"))
def codebook_forward(x, weight, *, tile_n=512, use_bf16_scores=False):
    """x: (B, E, H, W) f32 NCHW.  weight: (K, E) f32 codebook."""
    B, E, H, W = x.shape
    K, E_w = weight.shape
    assert E == E_w, "channel dim of x must equal the codebook embed size"

    # NHWC view of the input (this is also one of the module's outputs).
    z = jnp.transpose(x, (0, 2, 3, 1))            # (B, H, W, E)
    z_flat = z.reshape(-1, E)                     # (N, E)
    N = z_flat.shape[0]

    # Pick the largest tile that fits the VMEM working budget (>= 256 rows when
    # possible); all values here are static at trace time.
    tn = max(8, min(int(tile_n), _round_up(N, 8)))
    tn = _round_up(tn, 8)
    while tn > 256 and _vmem_estimate(tn, E, K) > _VMEM_WORKING_BUDGET:
        tn //= 2
    tn = max(8, (tn // 8) * 8)

    n_tiles = pl.cdiv(N, tn)
    n_pad = n_tiles * tn
    z_in = z_flat if n_pad == N else jnp.pad(z_flat, ((0, n_pad - N), (0, 0)))

    wn2 = jnp.sum(weight * weight, axis=-1)[None, :]   # (1, K)

    kernel = functools.partial(_codebook_kernel, use_bf16_scores=use_bf16_scores)

    zq_flat, zqma_flat, idx2d = pl.pallas_call(
        kernel,
        out_shape=(
            jax.ShapeDtypeStruct((n_pad, E), jnp.float32),
            jax.ShapeDtypeStruct((n_pad, E), jnp.float32),
            jax.ShapeDtypeStruct((n_pad, 1), jnp.int32),
        ),
        grid_spec=pltpu.PrefetchScalarGridSpec(
            num_scalar_prefetch=0,
            grid=(n_tiles,),
            in_specs=[
                pl.BlockSpec((tn, E), lambda i: (i, 0)),   # z tile
                # Constant blocks below keep the same block index for every
                # grid step, so Pallas DMAs them once and re-uses them.
                pl.BlockSpec((K, E), lambda i: (0, 0)),    # full codebook
                pl.BlockSpec((1, K), lambda i: (0, 0)),    # ||w||^2
            ],
            out_specs=[
                pl.BlockSpec((tn, E), lambda i: (i, 0)),   # z_q (flat NHWC)
                pl.BlockSpec((tn, E), lambda i: (i, 0)),   # z_q_ma (flat NHWC)
                pl.BlockSpec((tn, 1), lambda i: (i, 0)),   # indices (column)
            ],
        ),
        compiler_params=pltpu.CompilerParams(
            dimension_semantics=("parallel",),
            vmem_limit_bytes=_VMEM_LIMIT_BYTES,
        ),
    )(z_in, weight, wn2)

    z_q = zq_flat[:N].reshape(z.shape)                              # (B, H, W, E)
    z_q_ma = jnp.transpose(zqma_flat[:N].reshape(z.shape), (0, 3, 1, 2))
    indices = idx2d[:N, 0]                                          # (N,) int32
    # TODO(synk): training would need a jax.custom_vjp to reproduce the
    # straight-through gradient of `z + (z_q - z).detach()`; forward-only here.
    return z_q_ma, z_q, z, indices


if __name__ == "__main__":
    import numpy as np

    # Small shapes consistent with the module (module defaults: K=1024, E=256).
    num_vectors = 256     # K
    embed_size = 128      # E (>=128 keeps z/z_q stores lane-dense)
    B, H, W = 2, 16, 32   # N = B*H*W = 1024 -> two 512-row tiles

    key = jax.random.PRNGKey(0)
    kx, kw = jax.random.split(key)

    # Deterministic codebook init: uniform(-1/K, 1/K), as in the module.
    weight = jax.random.uniform(
        kw, (num_vectors, embed_size), dtype=jnp.float32,
        minval=-1.0 / num_vectors, maxval=1.0 / num_vectors)
    x = jax.random.normal(kx, (B, embed_size, H, W), dtype=jnp.float32)

    outs = jax.block_until_ready(codebook_forward(x, weight, tile_n=512))
    z_q_ma, z_q, z, indices = outs

    # ---- correctness checks against a float64 NumPy reference --------------
    x_np = np.asarray(x, dtype=np.float64)
    w_np = np.asarray(weight, dtype=np.float64)
    z_np = np.transpose(x_np, (0, 2, 3, 1))
    zf = z_np.reshape(-1, embed_size)
    d64 = ((zf[:, None, :] - w_np[None, :, :]) ** 2).sum(-1)        # (N, K)
    ref_idx = d64.argmin(-1)

    N = B * H * W
    idx_np = np.asarray(indices)

    assert z_q_ma.shape == (B, embed_size, H, W)
    assert z_q.shape == (B, H, W, embed_size)
    assert z.shape == (B, H, W, embed_size)
    assert indices.shape == (N,) and indices.dtype == jnp.int32

    # z is exactly the permuted input.
    np.testing.assert_array_equal(
        np.asarray(z), np.transpose(np.asarray(x), (0, 2, 3, 1)))

    rows = np.arange(N)
    # Every chosen code is a (numerically) nearest neighbour ...
    assert np.all(d64[rows, idx_np] <= d64[rows, ref_idx] + 1e-5)
    # ... and essentially every row matches the exact argmin (FP near-ties aside).
    assert float(np.mean(idx_np != ref_idx)) <= 0.005

    # z_q is a faithful gather of the chosen codewords.
    np.testing.assert_allclose(
        np.asarray(z_q).reshape(-1, embed_size),
        np.asarray(weight)[idx_np], rtol=0, atol=1e-7)

    # Straight-through forward value z + (z_q - z), then NCHW permute.
    zqma_ref = (np.asarray(z, np.float32)
                + (np.asarray(z_q, np.float32) - np.asarray(z, np.float32)))
    np.testing.assert_allclose(
        np.asarray(z_q_ma), np.transpose(zqma_ref, (0, 3, 1, 2)),
        rtol=0, atol=1e-6)

    print("KERNEL_OK")
</pallas_src>

<mosaic_0001>
module attributes {stable_mosaic.version = 11 : i64} {
  func.func @_codebook_kernel(%arg0: i32, %arg1: memref<512x128xf32, #tpu.memory_space<vmem>>, %arg2: memref<256x128xf32, #tpu.memory_space<vmem>>, %arg3: memref<1x256xf32, #tpu.memory_space<vmem>>, %arg4: memref<512x128xf32, #tpu.memory_space<vmem>>, %arg5: memref<512x128xf32, #tpu.memory_space<vmem>>, %arg6: memref<512x1xi32, #tpu.memory_space<vmem>>) attributes {dimension_semantics = [#tpu.dimension_semantics<parallel>], iteration_bounds = array<i64: 2>, scalar_prefetch = 0 : i64, scratch_operands = 0 : i64, tpu.core_type = #tpu.core_type<tc>, window_params = [{transform_indices = @transform_0, window_bounds = array<i64: 512, 128>}, {pipeline_mode = #tpu.pipeline_mode<synchronous>, transform_indices = @transform_1, window_bounds = array<i64: 256, 128>}, {pipeline_mode = #tpu.pipeline_mode<synchronous>, transform_indices = @transform_2, window_bounds = array<i64: 1, 256>}, {transform_indices = @transform_3, window_bounds = array<i64: 512, 128>}, {transform_indices = @transform_4, window_bounds = array<i64: 512, 128>}, {transform_indices = @transform_5, window_bounds = array<i64: 512, 1>}]} {
    %c0 = arith.constant 0 : index
    %c0_0 = arith.constant 0 : index
    %0 = vector.load %arg1[%c0, %c0_0] : memref<512x128xf32, #tpu.memory_space<vmem>>, vector<512x128xf32>
    %c0_1 = arith.constant 0 : index
    %c0_2 = arith.constant 0 : index
    %1 = vector.load %arg2[%c0_1, %c0_2] : memref<256x128xf32, #tpu.memory_space<vmem>>, vector<256x128xf32>
    %cst = arith.constant dense<0.000000e+00> : vector<512x256xf32>
    %2 = tpu.matmul %0, %1, %cst {dimension_numbers = #tpu.dot_dimension_numbers<[1], [1], [0], [0], [0, 0, 1, 0], [], []>} : vector<512x128xf32>, vector<256x128xf32>, vector<512x256xf32> -> vector<512x256xf32>
    %c0_3 = arith.constant 0 : index
    %c0_4 = arith.constant 0 : index
    %3 = vector.load %arg3[%c0_3, %c0_4] : memref<1x256xf32, #tpu.memory_space<vmem>>, vector<1x256xf32>
    %cst_5 = arith.constant 2.000000e+00 : f32
    %4 = vector.broadcast %cst_5 : f32 to vector<512x256xf32>
    %5 = arith.mulf %4, %2 : vector<512x256xf32>
    %6 = vector.broadcast %3 : vector<1x256xf32> to vector<512x256xf32>
    %7 = arith.subf %6, %5 : vector<512x256xf32>
    %8 = tpu.iota {dimensions = array<i32: 1>} : vector<512x256xi32>
    %cst_6 = arith.constant dense<0x7F800000> : vector<512xf32>
    %9 = vector.multi_reduction <minimumf>, %7, %cst_6 [1] : vector<512x256xf32> to vector<512xf32>
    %10 = vector.shape_cast %9 : vector<512xf32> to vector<512x1xf32>
    %11 = vector.broadcast %10 : vector<512x1xf32> to vector<512x256xf32>
    %12 = arith.cmpf oeq, %7, %11 : vector<512x256xf32>
    %c256_i32 = arith.constant 256 : i32
    %13 = vector.broadcast %c256_i32 : i32 to vector<512x256xi32>
    %14 = arith.select %12, %8, %13 : vector<512x256xi1>, vector<512x256xi32>
    %cst_7 = arith.constant dense<2147483647> : vector<512xi32>
    %15 = vector.multi_reduction <minsi>, %14, %cst_7 [1] : vector<512x256xi32> to vector<512xi32>
    %16 = vector.shape_cast %15 : vector<512xi32> to vector<512x1xi32>
    %c0_8 = arith.constant 0 : index
    %c0_9 = arith.constant 0 : index
    %17 = vector.load %arg6[%c0_8, %c0_9] : memref<512x1xi32, #tpu.memory_space<vmem>>, vector<512x1xi32>
    tpu.vector_store %arg6[%c0_8, %c0_9], %16 {strides = array<i32>} : memref<512x1xi32, #tpu.memory_space<vmem>>, vector<512x1xi32>,
    %18 = vector.broadcast %16 : vector<512x1xi32> to vector<512x256xi32>
    %19 = arith.cmpi eq, %8, %18 : vector<512x256xi32>
    %20 = arith.extui %19 : vector<512x256xi1> to vector<512x256xi32>
    %21 = arith.sitofp %20 : vector<512x256xi32> to vector<512x256xf32>
    %cst_10 = arith.constant dense<0.000000e+00> : vector<512x128xf32>
    %22 = tpu.matmul %21, %1, %cst_10 {dimension_numbers = #tpu.dot_dimension_numbers<[1], [0], [0], [1], [0, 0, 1, 1], [], []>} : vector<512x256xf32>, vector<256x128xf32>, vector<512x128xf32> -> vector<512x128xf32>
    %c0_11 = arith.constant 0 : index
    %c0_12 = arith.constant 0 : index
    %23 = vector.load %arg4[%c0_11, %c0_12] : memref<512x128xf32, #tpu.memory_space<vmem>>, vector<512x128xf32>
    tpu.vector_store %arg4[%c0_11, %c0_12], %22 {strides = array<i32>} : memref<512x128xf32, #tpu.memory_space<vmem>>, vector<512x128xf32>,
    %24 = arith.subf %22, %0 : vector<512x128xf32>
    %25 = arith.addf %0, %24 : vector<512x128xf32>
    %c0_13 = arith.constant 0 : index
    %c0_14 = arith.constant 0 : index
    %26 = vector.load %arg5[%c0_13, %c0_14] : memref<512x128xf32, #tpu.memory_space<vmem>>, vector<512x128xf32>
    tpu.vector_store %arg5[%c0_13, %c0_14], %25 {strides = array<i32>} : memref<512x128xf32, #tpu.memory_space<vmem>>, vector<512x128xf32>,
    return
  }
  func.func @transform_0(%arg0: i32) -> (i32, i32) {
    %c0_i32 = arith.constant 0 : i32
    %c0_i32_0 = arith.constant 0 : i32
    return %arg0, %c0_i32 : i32, i32
  }
  func.func @transform_1(%arg0: i32) -> (i32, i32) {
    %c0_i32 = arith.constant 0 : i32
    %c0_i32_0 = arith.constant 0 : i32
    %c0_i32_1 = arith.constant 0 : i32
    return %c0_i32, %c0_i32_0 : i32, i32
  }
  func.func @transform_2(%arg0: i32) -> (i32, i32) {
    %c0_i32 = arith.constant 0 : i32
    %c0_i32_0 = arith.constant 0 : i32
    %c0_i32_1 = arith.constant 0 : i32
    return %c0_i32, %c0_i32_0 : i32, i32
  }
  func.func @transform_3(%arg0: i32) -> (i32, i32) {
    %c0_i32 = arith.constant 0 : i32
    %c0_i32_0 = arith.constant 0 : i32
    return %arg0, %c0_i32 : i32, i32
  }
  func.func @transform_4(%arg0: i32) -> (i32, i32) {
    %c0_i32 = arith.constant 0 : i32
    %c0_i32_0 = arith.constant 0 : i32
    return %arg0, %c0_i32 : i32, i32
  }
  func.func @transform_5(%arg0: i32) -> (i32, i32) {
    %c0_i32 = arith.constant 0 : i32
    %c0_i32_0 = arith.constant 0 : i32
    return %arg0, %c0_i32 : i32, i32
  }
}

</mosaic_0001>

<bundles_post_ra>
// kernel: codebook_forward.1
= control target key start
LH: loop header
LB: loop body
LE: loop exit
PB: predicated region body
PF: predicated region fallthrough
CT: control target
= control target key end

     0   :  { %11 = vsyncpa [#allocation3], 0  ;;  %s7063_s0 = inlined_call_operand.hbm [shape: f32[1024,128], index: 0, kind: input, shape index: {}]   ;;  %s7064_s1 = inlined_call_operand.vmem [shape: f32[256,128], index: 1, kind: input, shape index: {}]   ;;  %s7065_s2 = inlined_call_operand.vmem [shape: f32[1,256], index: 2, kind: input, shape index: {}]   ;;  %s7066_s3 = inlined_call_operand.hbm [shape: f32[1024,128], index: 3, kind: output, shape index: {0}]   ;;  %s7067_s4 = inlined_call_operand.hbm [shape: f32[1024,128], index: 4, kind: output, shape index: {1}]   ;;  %s7068_s5 = inlined_call_operand.vmem [shape: s32[1024,1], index: 5, kind: output, shape index: {2}]  }
   0x1   :  { %13 = vsyncpa [#allocation3 + $0x1], 0 }
   0x2   :  { %14 = vsyncpa [#allocation4], 0 }
   0x3   :  { %16 = vsyncpa [#allocation4 + $0x1], 0 }
   0x4   :  { %17 = vsyncpa [#allocation7], 0 }
   0x5   :  { %19 = vsyncpa [#allocation7 + $0x1], 0  ;;  %s4388_s18 = smov 0   ;;  %s4390_s19 = smov 0  }
   0x6   :  { %s4392_s20 = smov 0   ;;  %s4394_s21 = smov 0  }
   0x7 LB: > { %s4409_s22 = sadd.s32 4294967295, %s4351_s21   ;;  %s3824_s23 = sadd.s32 4294967294, %s4351_s21   ;;  %s4351_s21 = sphi %s4394_s21, %s7345_s21   ;;  %s4347_s20 = sphi %s4392_s20, %s7344_s20   ;;  %s4343_s19 = sphi %s4390_s19, %s7343_s19   ;;  %s4339_s18 = sphi %s4388_s18, %s7342_s18  }
   0x8   : > { %s4413_s24 = sadd.s32 1, %s4351_s21   ;;  %s32_s25 = sadd.s32 1, %s4347_s20 }
   0x9   : > { %s29_s26 = ssub.s32 %s4351_s21, %s4413_s24  ;;  %p39_p0 = scmp.ne.s32.totalorder %s4347_s20, %s4343_s19 }
   0xa   : > { %p30_p1 = scmp.eq.s32.totalorder %s29_s26, 0  ;;  %p40_p2 = scmp.eq.s32.totalorder %s4351_s21, 0 }
   0xb   : > { %p45_p3 = scmp.ne.s32.totalorder %s4343_s19, %s4339_s18  ;;  %p46_p4 = scmp.eq.s32.totalorder %s4409_s22, 0 }
   0xc   : > { %s4425_s27 = scalar_select %p30_p1, %s4347_s20, %s32_s25  }
   0xd   : > { %p4427_p5 = por %p40_p2, %p39_p0  ;;  %p4431_p6 = por %p46_p4, %p45_p3 }
   0xe   : > { %p111_p7 = scmp.eq.s32.totalorder %s4409_s22, 1  ;;  %p117_p8 = scmp.eq.s32.totalorder %s3824_s23, 1 }
   0xf   : > { %p4120_p10 = scmp.lt.s32.totalorder %s4351_s21, 2  ;;  %s195_s7 = sand.u32 1, %s4347_s20  }
  0x10   : > { %p4438_p11 = por %p111_p7, %p39_p0  ;;  %p4442_p12 = por %p117_p8, %p45_p3 }
  0x11   : > { %s4100_s8 = sshll.u32 %s4351_s21, 9  ;;  %s3827_s9 = sshll.u32 %s195_s7, 9 }
  0x12   : > { %s204_s12 = scalar_lea.hbm %s7063_s0, %s4100_s8  ;;  %s199_s14 = scalar_lea.vmem [#allocation2], %s3827_s9 }
  0x13   : > { %s205_s13 = sshll.u32 %s204_s12, 4  ;;  %s207_s15 = sshll.u32 %s199_s14, 4  ;;  %s206_s13 = int_to_ptr.hbm [resolvable:$true] %s205_s13  ;;  %s208_s15 = int_to_ptr.vmem [resolvable:$true] %s207_s15 }
  0x14   : > { %p4453_p13 = pnand %p4120_p10, %p4427_p5  ;;  %p3830_p0 = scmp.ge.s32.totalorder %s4351_s21, 1 }
  0x15   : > { %p215_p1 = scmp.lt.s32.totalorder %s4351_s21, 3  ;;  %s196_s17 = scalar_lea.sflag [#allocation3], %s195_s7 }
  0x16   : > { %s4223_s23 = sshra.s32 %s206_s13, 4  ;;  %p4227_p3 = pneg %p4453_p13  ;;  %s4224_s23 = int_to_ptr.hbm [resolvable:$true] %s4223_s23 }
  0x17   : > { %s4225_s25 = scalar_lea.hbm %s4224_s23, 512  ;;  %s4230_s28 = scalar_lea.hbm %s7063_s0, 1024 }
  0x18   : > { %p4226_p2 = scmp.ne.s32.totalorder %s4224_s23, %s4225_s25  ;;  %p4231_p5 = scmp.lt.s32.totalorder %s4224_s23, %s7063_s0 }
  0x19   : > { %p4232_p8 = scmp.lt.s32.totalorder %s4230_s28, %s4225_s25 }
  0x1a   : > { %p4228_p4 = pnand %p4227_p3, %p4226_p2 }
  0x1b   : > { %p4233_p10 = por %p4232_p8, %p4231_p5 }
  0x1c   : > { %p4229_p7 = pneg %p4228_p4 }
  0x1e   : > { %p4234_p9 = pnand %p4233_p10, %p4229_p7 }
  0x20   : > { %4237 = shalt.err (!%p4234_p9)
}
  0x21   : > { %s4353_s7 = smov 128   ;;  %s4354_s11 = smov 8  }
  0x22   : > { %4112 = dma.hbm_to_vmem [thread:$0]  (!%p4453_p13), %s206_s13, 8192, %s208_s15, %s196_s17, %s4353_s7, %s4353_s7, %s4354_s11  }
  0x23   : > { %p216_p2 = pnand %p3830_p0, %p215_p1 }
  0x25   : > { %219 = sbr.rel (%p216_p2) target bundleno = 1398 (0x576), region = 32 }
  0x2a   : > { %s4474_s12 = sand.u32 1, %s4343_s19  }
  0x2b   : > { %s4477_s14 = sshll.u32 %s4474_s12, 9  ;;  %s222_s23 = scalar_lea.sflag [#allocation3], %s4474_s12 }
  0x2c   : > { %s4481_s25 = scalar_lea.vmem [#allocation2], %s4477_s14 }
  0x2d   : > { %4326 = dma.done.wait (%p4431_p6), %s222_s23, 8192  }
  0x2e   : > { %4328 = vsyncadd (%p4431_p6), %s222_s23, 4294959104  ;;  %v351_v0 = vld [vmem:[%s7064_s1 + $0x78] sm:$0xff]  ;;  %v350_v2 = vld [vmem:[%s7064_s1 + $0x70] sm:$0xff]  ;;  %s3834_s15 = sshll.u32 %s4409_s22, 6  ;;  %s5899_s28 = scalar_lea.vmem [#allocation5], %s4477_s14 }
  0x2f   : > { %v367_v1 = vld [vmem:[%s7064_s1 + $0xf8] sm:$0xff]  ;;  %368 = vmatpush.xpose.msra.mxu0 %v351_v0  ;;  %v366_v3 = vld [vmem:[%s7064_s1 + $0xf0] sm:$0xff]  ;;  %2972 = vmatpush.msra.mxu2 %v351_v0  ;;  %v349_v4 = vld [vmem:[%s7064_s1 + $0x68] sm:$0xff]  ;;  %p267_p6 = scmp.lt.s32.totalorder %s3834_s15, 127  ;;  %s5921_s9 = scalar_lea.vmem [#allocation6], %s4477_s14 }
  0x30   : > { %577 = vmatpush.xpose.msra.mxu1 %v367_v1  ;;  %3181 = vmatpush.msra.mxu3 %v367_v1  ;;  %v365_v5 = vld [vmem:[%s7064_s1 + $0xe8] sm:$0xff]  ;;  %v348_v6 = vld [vmem:[%s7064_s1 + $0x60] sm:$0xff]  ;;  %v347_v8 = vld [vmem:[%s7064_s1 + $0x58] sm:$0xff]  ;;  %s4101_s14 = sshll.u32 %s4409_s22, 9  ;;  %s3669_s11 = sshll.u32 %s5899_s28, 4  ;;  %s3670_s11 = int_to_ptr.vmem [resolvable:$true] %s3669_s11 }
  0x31   : > { %2973 = vmatpush.msra.mxu2 %v350_v2  ;;  %v364_v7 = vld [vmem:[%s7064_s1 + $0xe0] sm:$0xff]  ;;  %v363_v9 = vld [vmem:[%s7064_s1 + $0xd8] sm:$0xff]  ;;  %v346_v10 = vld [vmem:[%s7064_s1 + $0x50] sm:$0xff]  ;;  %s7347_s15 = smov (!%p267_p6, %s3834_s15), 127  ;;  %s3668_s7 = scalar_lea.hbm %s7066_s3, %s4101_s14 }
  0x32   : > { %3182 = vmatpush.msra.mxu3 %v366_v3  ;;  %v362_v11 = vld [vmem:[%s7064_s1 + $0xd0] sm:$0xff]  ;;  %v345_v12 = vld [vmem:[%s7064_s1 + $0x48] sm:$0xff]  ;;  %v344_v14 = vld [vmem:[%s7064_s1 + $0x40] sm:$0xff]  ;;  %s3835_s16 = sshll.u32 %s7347_s15, 3  ;;  %s3671_s23 = sshll.u32 %s3668_s7, 4  ;;  %s3672_s23 = int_to_ptr.hbm [resolvable:$true] %s3671_s23 }
  0x33   : > { %369 = vmatpush.xpose.msra.mxu0 %v350_v2  ;;  %2974 = vmatpush.msra.mxu2 %v349_v4  ;;  %v361_v13 = vld [vmem:[%s7064_s1 + $0xc8] sm:$0xff]  ;;  %v360_v15 = vld [vmem:[%s7064_s1 + $0xc0] sm:$0xff]  ;;  %v343_v16 = vld [vmem:[%s7064_s1 + $0x38] sm:$0xff]  ;;  %s5339_s8 = scalar_lea.vmem %s7068_s5, %s3835_s16  ;;  %s7016_s15 = scalar_lea.hbm %s7067_s4, %s4101_s14 }
  0x34   : > { %578 = vmatpush.xpose.msra.mxu1 %v366_v3  ;;  %3183 = vmatpush.msra.mxu3 %v365_v5  ;;  %v359_v17 = vld [vmem:[%s7064_s1 + $0xb8] sm:$0xff]  ;;  %v342_v18 = vld [vmem:[%s7064_s1 + $0x30] sm:$0xff]  ;;  %v341_v20 = vld [vmem:[%s7064_s1 + $0x28] sm:$0xff]  ;;  %s3686_s16 = sshll.u32 %s5921_s9, 4  ;;  %s3688_s17 = sshll.u32 %s7016_s15, 4  ;;  %s3687_s16 = int_to_ptr.vmem [resolvable:$true] %s3686_s16  ;;  %s3689_s17 = int_to_ptr.hbm [resolvable:$true] %s3688_s17 }
  0x35   : > { %2975 = vmatpush.msra.mxu2 %v348_v6  ;;  %v358_v19 = vld [vmem:[%s7064_s1 + $0xb0] sm:$0xff]  ;;  %v357_v21 = vld [vmem:[%s7064_s1 + $0xa8] sm:$0xff]  ;;  %v340_v22 = vld [vmem:[%s7064_s1 + $0x20] sm:$0xff]  ;;  %s3647_s26 = scalar_lea.sflag [#allocation4], %s4474_s12  ;;  %s4273_s7 = scalar_lea.hbm %s7066_s3, 1024 }
  0x36   : > { %3184 = vmatpush.msra.mxu3 %v364_v7  ;;  %v356_v23 = vld [vmem:[%s7064_s1 + $0xa0] sm:$0xff]  ;;  %v339_v24 = vld [vmem:[%s7064_s1 + $0x18] sm:$0xff]  ;;  %v338_v26 = vld [vmem:[%s7064_s1 + $0x10] sm:$0xff] }
  0x37   : > { %370 = vmatpush.xpose.msra.mxu0 %v349_v4  ;;  %2976 = vmatpush.msra.mxu2 %v347_v8  ;;  %v355_v25 = vld [vmem:[%s7064_s1 + $0x98] sm:$0xff]  ;;  %v354_v27 = vld [vmem:[%s7064_s1 + $0x90] sm:$0xff]  ;;  %v337_v28 = vld [vmem:[%s7064_s1 + $0x8] sm:$0xff] }
  0x38   : > { %579 = vmatpush.xpose.msra.mxu1 %v365_v5  ;;  %3185 = vmatpush.msra.mxu3 %v363_v9  ;;  %v353_v29 = vld [vmem:[%s7064_s1 + $0x88] sm:$0xff]  ;;  %v336_v30 = vld [vmem:[%s7064_s1] sm:$0xff]  ;;  %v274_v34 = vld [vmem:[%s4481_s25 + $0x10] sm:$0xff] }
  0x39   : > { %2977 = vmatpush.msra.mxu2 %v346_v10  ;;  %v352_v31 = vld [vmem:[%s7064_s1 + $0x80] sm:$0xff]  ;;  %v273_v33 = vld [vmem:[%s4481_s25 + $0x8] sm:$0xff]  ;;  %v275_v35 = vld [vmem:[%s4481_s25 + $0x18] sm:$0xff] }
  0x3a   : > { %3186 = vmatpush.msra.mxu3 %v362_v11  ;;  %v272_v32 = vld [vmem:[%s4481_s25] sm:$0xff]  ;;  %v277_v37 = vld [vmem:[%s4481_s25 + $0x28] sm:$0xff]  ;;  %v278_v38 = vld [vmem:[%s4481_s25 + $0x30] sm:$0xff] }
  0x3b   : > { %371 = vmatpush.xpose.msra.mxu0 %v348_v6  ;;  %2978 = vmatpush.msra.mxu2 %v345_v12  ;;  %v276_v36 = vld [vmem:[%s4481_s25 + $0x20] sm:$0xff]  ;;  %v279_v39 = vld [vmem:[%s4481_s25 + $0x38] sm:$0xff]  ;;  %v281_v41 = vld [vmem:[%s4481_s25 + $0x48] sm:$0xff] }
  0x3c   : > { %580 = vmatpush.xpose.msra.mxu1 %v364_v7  ;;  %3187 = vmatpush.msra.mxu3 %v361_v13  ;;  %v280_v40 = vld [vmem:[%s4481_s25 + $0x40] sm:$0xff]  ;;  %v282_v42 = vld [vmem:[%s4481_s25 + $0x50] sm:$0xff]  ;;  %v283_v43 = vld [vmem:[%s4481_s25 + $0x58] sm:$0xff] }
  0x3d   : > { %2979 = vmatpush.msra.mxu2 %v344_v14  ;;  %v786_v44 = vld [vmem:[%s7065_s2] sm:$0x3]  ;;  %v285_v59 = vld [vmem:[%s4481_s25 + $0x68] sm:$0xff]  ;;  %v286_v3 = vld [vmem:[%s4481_s25 + $0x70] sm:$0xff] }
  0x3e   : > { %3188 = vmatpush.msra.mxu3 %v360_v15  ;;  %v4598_v45 = vperm.slane %v786_v44, 0  ;;  %v4600_v46 = vperm.slane %v786_v44, 1  ;;  %v284_v51 = vld [vmem:[%s4481_s25 + $0x60] sm:$0xff] }
  0x3f   : > { %372 = vmatpush.xpose.msra.mxu0 %v347_v8  ;;  %2980 = vmatpush.msra.mxu2 %v343_v16 }
  0x40   : > { %581 = vmatpush.xpose.msra.mxu1 %v363_v9  ;;  %3189 = vmatpush.msra.mxu3 %v359_v17 }
  0x41   : > { %2981 = vmatpush.msra.mxu2 %v342_v18 }
  0x42   : > { %3190 = vmatpush.msra.mxu3 %v358_v19 }
  0x43   : > { %373 = vmatpush.xpose.msra.mxu0 %v346_v10  ;;  %2982 = vmatpush.msra.mxu2 %v341_v20 }
  0x44   : > { %582 = vmatpush.xpose.msra.mxu1 %v362_v11  ;;  %3191 = vmatpush.msra.mxu3 %v357_v21  ;;  %v287_v11 = vld [vmem:[%s4481_s25 + $0x78] sm:$0xff] }
  0x45   : > { %2983 = vmatpush.msra.mxu2 %v340_v22 }
  0x46   : > { %3192 = vmatpush.msra.mxu3 %v356_v23 }
  0x47   : > { %374 = vmatpush.xpose.msra.mxu0 %v345_v12  ;;  %2984 = vmatpush.msra.mxu2 %v339_v24 }
  0x48   : > { %583 = vmatpush.xpose.msra.mxu1 %v361_v13  ;;  %3193 = vmatpush.msra.mxu3 %v355_v25 }
  0x49   : > { %2985 = vmatpush.msra.mxu2 %v338_v26 }
  0x4a   : > { %3194 = vmatpush.msra.mxu3 %v354_v27 }
  0x4b   : > { %375 = vmatpush.xpose.msra.mxu0 %v344_v14  ;;  %2986 = vmatpush.msra.mxu2 %v337_v28 }
  0x4c   : > { %584 = vmatpush.xpose.msra.mxu1 %v360_v15  ;;  %3195 = vmatpush.msra.mxu3 %v353_v29  ;;  %v288_v15 = vld [vmem:[%s4481_s25 + $0x80] sm:$0xff] }
  0x4d   : > { %2987 = vmatpush.msra.mxu2 %v336_v30 }
  0x4e   : > { %3196 = vmatpush.msra.mxu3 %v352_v31 }
  0x4f   : > { %376 = vmatpush.xpose.msra.mxu0 %v343_v16 }
  0x50   : > { %585 = vmatpush.xpose.msra.mxu1 %v359_v17 }
  0x53   : > { %377 = vmatpush.xpose.msra.mxu0 %v342_v18 }
  0x54   : > { %586 = vmatpush.xpose.msra.mxu1 %v358_v19 }
  0x57   : > { %378 = vmatpush.xpose.msra.mxu0 %v341_v20 }
  0x58   : > { %587 = vmatpush.xpose.msra.mxu1 %v357_v21 }
  0x5b   : > { %379 = vmatpush.xpose.msra.mxu0 %v340_v22 }
  0x5c   : > { %588 = vmatpush.xpose.msra.mxu1 %v356_v23  ;;  %v289_v23 = vld [vmem:[%s4481_s25 + $0x88] sm:$0xff] }
  0x5f   : > { %380 = vmatpush.xpose.msra.mxu0 %v339_v24 }
  0x60   : > { %589 = vmatpush.xpose.msra.mxu1 %v355_v25 }
  0x63   : > { %381 = vmatpush.xpose.msra.mxu0 %v338_v26 }
  0x64   : > { %590 = vmatpush.xpose.msra.mxu1 %v354_v27 }
  0x67   : > { %382 = vmatpush.xpose.msra.mxu0 %v337_v28 }
  0x68   : > { %591 = vmatpush.xpose.msra.mxu1 %v353_v29 }
  0x6b   : > { %383 = vmatpush.xpose.msra.mxu0 %v336_v30 }
  0x6c   : > { %592 = vmatpush.xpose.msra.mxu1 %v352_v31  ;;  %v290_v31 = vld [vmem:[%s4481_s25 + $0x90] sm:$0xff] }
  0x6e   : > { %384 = vmatmul.f32.vlgmr.msra.gmra.mxu0 %v272_v32 }
  0x6f   : > { %593 = vmatmul.f32.vlgmr.msra.gmra.mxu1 %v272_v32 }
  0x76   : > { %387 = vmatmul.f32.gmra.mxu0 %v273_v33 }
  0x77   : > { %596 = vmatmul.f32.gmra.mxu1 %v273_v33 }
  0x7e   : > { %390 = vmatmul.f32.gmra.mxu0 %v274_v34 }
  0x7f   : > { %599 = vmatmul.f32.gmra.mxu1 %v274_v34 }
  0x86   : > { %393 = vmatmul.f32.gmra.mxu0 %v275_v35 }
  0x87   : > { %602 = vmatmul.f32.gmra.mxu1 %v275_v35 }
  0x8e   : > { %396 = vmatmul.f32.gmra.mxu0 %v276_v36 }
  0x8f   : > { %605 = vmatmul.f32.gmra.mxu1 %v276_v36 }
  0x96   : > { %399 = vmatmul.f32.gmra.mxu0 %v277_v37 }
  0x97   : > { %608 = vmatmul.f32.gmra.mxu1 %v277_v37 }
  0x9e   : > { %402 = vmatmul.f32.gmra.mxu0 %v278_v38 }
  0x9f   : > { %611 = vmatmul.f32.gmra.mxu1 %v278_v38 }
  0xa6   : > { %405 = vmatmul.f32.gmra.mxu0 %v279_v39 }
  0xa7   : > { %614 = vmatmul.f32.gmra.mxu1 %v279_v39  ;;  %v291_v39 = vld [vmem:[%s4481_s25 + $0x98] sm:$0xff] }
  0xae   : > { %408 = vmatmul.f32.gmra.mxu0 %v280_v40 }
  0xaf   : > { %617 = vmatmul.f32.gmra.mxu1 %v280_v40 }
  0xb6   : > { %411 = vmatmul.f32.gmra.mxu0 %v281_v41 }
  0xb7   : > { %620 = vmatmul.f32.gmra.mxu1 %v281_v41 }
  0xbe   : > { %414 = vmatmul.f32.gmra.mxu0 %v282_v42 }
  0xbf   : > { %623 = vmatmul.f32.gmra.mxu1 %v282_v42 }
  0xc6   : > { %417 = vmatmul.f32.gmra.mxu0 %v283_v43 }
  0xc7   : > { %626 = vmatmul.f32.gmra.mxu1 %v283_v43 }
  0xce   : > { %420 = vmatmul.f32.gmra.mxu0 %v284_v51 }
  0xcf   : > { %629 = vmatmul.f32.gmra.mxu1 %v284_v51  ;;  %v294_v51 = vld [vmem:[%s4481_s25 + $0xb0] sm:$0xff] }
  0xd6   : > { %423 = vmatmul.f32.gmra.mxu0 %v285_v59 }
  0xd7   : > { %632 = vmatmul.f32.gmra.mxu1 %v285_v59 }
  0xde   : > { %426 = vmatmul.f32.gmra.mxu0 %v286_v3 }
  0xdf   : > { %635 = vmatmul.f32.gmra.mxu1 %v286_v3  ;;  %v298_v3 = vld [vmem:[%s4481_s25 + $0xd0] sm:$0xff] }
  0xe6   : > { %429 = vmatmul.f32.gmra.mxu0 %v287_v11 }
  0xe7   : > { %638 = vmatmul.f32.gmra.mxu1 %v287_v11 }
  0xeb   : > { %v385_v47 = vpop.f32.mrf.mxu0 }
  0xec   : > { %v594_v48 = vpop.f32.mrf.mxu1  ;;  %v787_v49 = vmul.f32 2.0, %v385_v47 }
  0xed   : > { %v788_v50 = vmul.f32 2.0, %v594_v48 }
  0xee   : > { %v4604_v52 = vsub.f32 %v4598_v45, %v787_v49  ;;  %432 = vmatmul.f32.gmra.mxu0 %v288_v15  ;;  %v292_v49 = vld [vmem:[%s4481_s25 + $0xa0] sm:$0xff] }
  0xef   : > { %v4607_v53 = vsub.f32 %v4600_v46, %v788_v50  ;;  %641 = vmatmul.f32.gmra.mxu1 %v288_v15  ;;  %v293_v50 = vld [vmem:[%s4481_s25 + $0xa8] sm:$0xff] }
  0xf1   : > { %v1051_v54 = vmin.f32 %v4604_v52, %v4607_v53 }
  0xf3   : > { %1052 = vmin.xlane.f32.xlu0 %v1051_v54  ;;  %v388_v55 = vpop.f32.mrf.mxu0  ;;  %v295_v54 = vld [vmem:[%s4481_s25 + $0xb8] sm:$0xff] }
  0xf4   : > { %v597_v56 = vpop.f32.mrf.mxu1  ;;  %v789_v57 = vmul.f32 2.0, %v388_v55 }
  0xf5   : > { %v790_v58 = vmul.f32 2.0, %v597_v56 }
  0xf6   : > { %v4613_v60 = vsub.f32 %v4598_v45, %v789_v57  ;;  %435 = vmatmul.f32.gmra.mxu0 %v289_v23  ;;  %v296_v57 = vld [vmem:[%s4481_s25 + $0xc0] sm:$0xff] }
  0xf7   : > { %v4616_v61 = vsub.f32 %v4600_v46, %v790_v58  ;;  %644 = vmatmul.f32.gmra.mxu1 %v289_v23 }
  0xf9   : > { %v1054_v62 = vmin.f32 %v4613_v60, %v4616_v61 }
  0xfb   : > { %1055 = vmin.xlane.f32.xlu0 %v1054_v62  ;;  %v391_v63 = vpop.f32.mrf.mxu0  ;;  %v297_v62 = vld [vmem:[%s4481_s25 + $0xc8] sm:$0xff] }
  0xfc   : > { %v600_v0 = vpop.f32.mrf.mxu1  ;;  %v791_v1 = vmul.f32 2.0, %v391_v63  ;;  %v1048_v63 = vlaneseq }
  0xfd   : > { %v792_v2 = vmul.f32 2.0, %v600_v0 }
  0xfe   : > { %v4622_v4 = vsub.f32 %v4598_v45, %v791_v1  ;;  %438 = vmatmul.f32.gmra.mxu0 %v290_v31  ;;  %v4680_v0 = vand.u32 127, %v1048_v63  ;;  %v302_v63 = vld [vmem:[%s4481_s25 + $0xf0] sm:$0xff] }
  0xff   : > { %v4625_v5 = vsub.f32 %v4600_v46, %v792_v2  ;;  %647 = vmatmul.f32.gmra.mxu1 %v290_v31 }
 0x101   : > { %v1057_v6 = vmin.f32 %v4622_v4, %v4625_v5 }
 0x103   : > { %1058 = vmin.xlane.f32.xlu1 %v1057_v6  ;;  %v394_v7 = vpop.f32.mrf.mxu0  ;;  %v4684_v6 = vadd.s32 128, %v4680_v0 }
 0x104   : > { %v603_v8 = vpop.f32.mrf.mxu1  ;;  %v793_v9 = vmul.f32 2.0, %v394_v7 }
 0x105   : > { %v794_v10 = vmul.f32 2.0, %v603_v8 }
 0x106   : > { %v4631_v12 = vsub.f32 %v4598_v45, %v793_v9  ;;  %441 = vmatmul.f32.gmra.mxu0 %v291_v39 }
 0x107   : > { %v4634_v13 = vsub.f32 %v4600_v46, %v794_v10  ;;  %650 = vmatmul.f32.gmra.mxu1 %v291_v39 }
 0x109   : > { %v1060_v14 = vmin.f32 %v4631_v12, %v4634_v13 }
 0x10b   : > { %1061 = vmin.xlane.f32.xlu1 %v1060_v14  ;;  %v397_v16 = vpop.f32.mrf.mxu0  ;;  %v299_v14 = vld [vmem:[%s4481_s25 + $0xd8] sm:$0xff] }
 0x10c   : > { %v606_v17 = vpop.f32.mrf.mxu1  ;;  %v795_v18 = vmul.f32 2.0, %v397_v16 }
 0x10d   : > { %v796_v19 = vmul.f32 2.0, %v606_v17 }
 0x10e   : > { %v4640_v20 = vsub.f32 %v4598_v45, %v795_v18  ;;  %444 = vmatmul.f32.gmra.mxu0 %v292_v49 }
 0x10f   : > { %v4643_v21 = vsub.f32 %v4600_v46, %v796_v19  ;;  %653 = vmatmul.f32.gmra.mxu1 %v292_v49 }
 0x111   : > { %v1063_v22 = vmin.f32 %v4640_v20, %v4643_v21 }
 0x113   : > { %1064 = vmin.xlane.f32.xlu2 %v1063_v22  ;;  %v400_v24 = vpop.f32.mrf.mxu0 }
 0x114   : > { %v609_v25 = vpop.f32.mrf.mxu1  ;;  %v797_v26 = vmul.f32 2.0, %v400_v24 }
 0x115   : > { %v798_v27 = vmul.f32 2.0, %v609_v25 }
 0x116   : > { %v4649_v28 = vsub.f32 %v4598_v45, %v797_v26  ;;  %447 = vmatmul.f32.gmra.mxu0 %v293_v50 }
 0x117   : > { %v4652_v29 = vsub.f32 %v4600_v46, %v798_v27  ;;  %656 = vmatmul.f32.gmra.mxu1 %v293_v50  ;;  %v300_v27 = vld [vmem:[%s4481_s25 + $0xe0] sm:$0xff] }
 0x119   : > { %v1066_v30 = vmin.f32 %v4649_v28, %v4652_v29 }
 0x11b   : > { %1067 = vmin.xlane.f32.xlu2 %v1066_v30  ;;  %v403_v32 = vpop.f32.mrf.mxu0 }
 0x11c   : > { %v612_v33 = vpop.f32.mrf.mxu1  ;;  %v799_v34 = vmul.f32 2.0, %v403_v32 }
 0x11d   : > { %v800_v35 = vmul.f32 2.0, %v612_v33 }
 0x11e   : > { %v4658_v36 = vsub.f32 %v4598_v45, %v799_v34  ;;  %450 = vmatmul.f32.gmra.mxu0 %v294_v51 }
 0x11f   : > { %v4661_v37 = vsub.f32 %v4600_v46, %v800_v35  ;;  %659 = vmatmul.f32.gmra.mxu1 %v294_v51 }
 0x121   : > { %v1069_v38 = vmin.f32 %v4658_v36, %v4661_v37 }
 0x123   : > { %1070 = vmin.xlane.f32.xlu0 %v1069_v38  ;;  %v406_v40 = vpop.f32.mrf.mxu0 }
 0x124   : > { %v615_v41 = vpop.f32.mrf.mxu1  ;;  %v801_v42 = vmul.f32 2.0, %v406_v40 }
 0x125   : > { %v802_v43 = vmul.f32 2.0, %v615_v41 }
 0x126   : > { %v4667_v44 = vsub.f32 %v4598_v45, %v801_v42  ;;  %453 = vmatmul.f32.gmra.mxu0 %v295_v54 }
 0x127   : > { %v4670_v47 = vsub.f32 %v4600_v46, %v802_v43  ;;  %662 = vmatmul.f32.gmra.mxu1 %v295_v54  ;;  %v301_v43 = vld [vmem:[%s4481_s25 + $0xe8] sm:$0xff] }
 0x129   : > { %v1072_v48 = vmin.f32 %v4667_v44, %v4670_v47 }
 0x12b   : > { %1073 = vmin.xlane.f32.xlu2 %v1072_v48  ;;  %v409_v55 = vpop.f32.mrf.mxu0 }
 0x12c   : > { %v618_v56 = vpop.f32.mrf.mxu1 }
 0x12d   : > { %v804_v17 = vmul.f32 2.0, %v618_v56 }
 0x12e   : > { %456 = vmatmul.f32.gmra.mxu0 %v296_v57 }
 0x12f   : > { %665 = vmatmul.f32.gmra.mxu1 %v296_v57  ;;  %v4707_v22 = vsub.f32 %v4600_v46, %v804_v17 }
 0x133   : > { %v412_v58 = vpop.f32.mrf.mxu0 }
 0x134   : > { %v621_v59 = vpop.f32.mrf.mxu1 }
 0x135   : > { %v806_v32 = vmul.f32 2.0, %v621_v59 }
 0x136   : > { %459 = vmatmul.f32.gmra.mxu0 %v297_v62 }
 0x137   : > { %668 = vmatmul.f32.gmra.mxu1 %v297_v62  ;;  %v4730_v38 = vsub.f32 %v4600_v46, %v806_v32 }
 0x13b   : > { %v415_v1 = vpop.f32.mrf.mxu0 }
 0x13c   : > { %v624_v2 = vpop.f32.mrf.mxu1 }
 0x13d   : > { %v808_v50 = vmul.f32 2.0, %v624_v2 }
 0x13e   : > { %462 = vmatmul.f32.gmra.mxu0 %v298_v3 }
 0x13f   : > { %671 = vmatmul.f32.gmra.mxu1 %v298_v3  ;;  %v4753_v56 = vsub.f32 %v4600_v46, %v808_v50 }
 0x143   : > { %v4690_v10 = vpop.f32.mrf.mxu0 }
 0x144   : > { %v4692_v11 = vpop.f32.mrf.mxu1 }
 0x145   : > { %v810_v3 = vmul.f32 2.0, %v4692_v11 }
 0x146   : > { %465 = vmatmul.f32.gmra.mxu0 %v299_v14 }
 0x147   : > { %674 = vmatmul.f32.gmra.mxu1 %v299_v14  ;;  %v303_v14 = vld [vmem:[%s4481_s25 + $0xf8] sm:$0xff] }
 0x14b   : > { %v4711_v25 = vpop.f32.mrf.mxu0 }
 0x14c   : > { %v4713_v26 = vpop.f32.mrf.mxu1 }
 0x14e   : > { %468 = vmatmul.f32.gmra.mxu0 %v300_v27 }
 0x14f   : > { %677 = vmatmul.f32.gmra.mxu1 %v300_v27 }
 0x153   : > { %v4734_v41 = vpop.f32.mrf.mxu0 }
 0x154   : > { %v4736_v42 = vpop.f32.mrf.mxu1 }
 0x156   : > { %471 = vmatmul.f32.gmra.mxu0 %v301_v43 }
 0x157   : > { %680 = vmatmul.f32.gmra.mxu1 %v301_v43 }
 0x15b   : > { %v4757_v59 = vpop.f32.mrf.mxu0 }
 0x15c   : > { %v4759_v62 = vpop.f32.mrf.mxu1 }
 0x15e   : > { %474 = vmatmul.f32.gmra.mxu0 %v302_v63 }
 0x15f   : > { %683 = vmatmul.f32.gmra.mxu1 %v302_v63 }
 0x164   : > { %v4785_v17 = vpop.f32.mrf.mxu1 }
 0x166   : > { %v1053_v7 = vpop.xlane.xlu0 %1052  ;;  %477 = vmatmul.f32.gmra.mxu0 %v303_v14 }
 0x167   : > { %vm1243_vm0 = vcmp.eq.f32.partialorder %v4604_v52, %v1053_v7  ;;  %vm1244_vm1 = vcmp.eq.f32.partialorder %v4607_v53, %v1053_v7  ;;  %v803_v52 = vmul.f32 2.0, %v409_v55  ;;  %686 = vmatmul.f32.gmra.mxu1 %v303_v14 }
 0x168   : > { %v1371_v8 = vsel %vm1243_vm0, %v4680_v0, 256  ;;  %v1372_v9 = vsel %vm1244_vm1, %v4684_v6, 256 }
 0x169   : > { %vm1499_vm2 = vcmp.lt.s32.totalorder %v1371_v8, %v1372_v9  ;;  %v4704_v19 = vsub.f32 %v4598_v45, %v803_v52  ;;  %v4783_v52 = vpop.f32.mrf.mxu0 }
 0x16a   : > { %v4695_v15 = vsel %vm1499_vm2, %v1371_v8, %v1372_v9 }
 0x16b   : > { %v1502_v16 = vshra.s32 %v4695_v15, 16  ;;  %v1075_v31 = vmin.f32 %v4704_v19, %v4707_v22 }
 0x16d   : > { %v4698_v53 = vcvt.s32.f32 %v1502_v16 }
 0x16e   : > { %v1056_v18 = vpop.xlane.xlu0 %1055 }
 0x16f   : > { %vm1245_vm3 = vcmp.eq.f32.partialorder %v4613_v60, %v1056_v18  ;;  %vm1246_vm4 = vcmp.eq.f32.partialorder %v4616_v61, %v1056_v18  ;;  %1505 = vmin.xlane.f32.xlu1 %v4698_v53  ;;  %v805_v61 = vmul.f32 2.0, %v412_v58 }
 0x170   : > { %v1373_v23 = vsel %vm1245_vm3, %v4680_v0, 256  ;;  %v1374_v24 = vsel %vm1246_vm4, %v4684_v6, 256 }
 0x171   : > { %vm1515_vm5 = vcmp.lt.s32.totalorder %v1373_v23, %v1374_v24  ;;  %v4724_v35 = vsub.f32 %v4598_v45, %v805_v61 }
 0x172   : > { %v4716_v60 = vsel %vm1515_vm5, %v1373_v23, %v1374_v24  ;;  %v812_v24 = vmul.f32 2.0, %v4713_v26 }
 0x173   : > { %v1518_v30 = vshra.s32 %v4716_v60, 16  ;;  %v1078_v49 = vmin.f32 %v4724_v35, %v4730_v38 }
 0x175   : > { %v4721_v33 = vcvt.s32.f32 %v1518_v30 }
 0x176   : > { %v1059_v34 = vpop.xlane.xlu1 %1058 }
 0x177   : > { %vm1247_vm6 = vcmp.eq.f32.partialorder %v4622_v4, %v1059_v34  ;;  %vm1248_vm7 = vcmp.eq.f32.partialorder %v4625_v5, %v1059_v34  ;;  %1521 = vmin.xlane.f32.xlu0 %v4721_v33  ;;  %1076 = vmin.xlane.f32.xlu1 %v1075_v31  ;;  %v807_v5 = vmul.f32 2.0, %v415_v1  ;;  %v304_v31 = vld [vmem:[%s4481_s25 + $0x100] sm:$0xff]  ;;  %v4808_v34 = vpop.f32.mrf.mxu0 }
 0x178   : > { %v1375_v39 = vsel %vm1247_vm6, %v4680_v0, 256  ;;  %v1376_v40 = vsel %vm1248_vm7, %v4684_v6, 256  ;;  %480 = vmatmul.f32.gmra.mxu0 %v304_v31  ;;  %689 = vmatmul.f32.gmra.mxu1 %v304_v31 }
 0x179   : > { %vm1531_vm8 = vcmp.lt.s32.totalorder %v1375_v39, %v1376_v40  ;;  %v4747_v55 = vsub.f32 %v4598_v45, %v807_v5  ;;  %v814_v5 = vmul.f32 2.0, %v4736_v42 }
 0x17a   : > { %v4739_v4 = vsel %vm1531_vm8, %v1375_v39, %v1376_v40  ;;  %v642_v39 = vpop.f32.mrf.mxu1 }
 0x17b   : > { %v1534_v48 = vshra.s32 %v4739_v4, 16  ;;  %v1081_v2 = vmin.f32 %v4747_v55, %v4753_v56 }
 0x17d   : > { %v4744_v51 = vcvt.s32.f32 %v1534_v48 }
 0x17e   : > { %v1062_v54 = vpop.xlane.xlu1 %1061 }
 0x17f   : > { %vm1249_vm9 = vcmp.eq.f32.partialorder %v4631_v12, %v1062_v54  ;;  %vm1250_vm10 = vcmp.eq.f32.partialorder %v4634_v13, %v1062_v54  ;;  %1537 = vmin.xlane.f32.xlu2 %v4744_v51  ;;  %1079 = vmin.xlane.f32.xlu0 %v1078_v49  ;;  %v809_v13 = vmul.f32 2.0, %v4690_v10  ;;  %v4778_v10 = vsub.f32 %v4600_v46, %v810_v3  ;;  %v305_v54 = vld [vmem:[%s4481_s25 + $0x108] sm:$0xff] }
 0x180   : > { %v1377_v57 = vsel %vm1249_vm9, %v4680_v0, 256  ;;  %v1378_v58 = vsel %vm1250_vm10, %v4684_v6, 256  ;;  %483 = vmatmul.f32.gmra.mxu0 %v305_v54  ;;  %692 = vmatmul.f32.gmra.mxu1 %v305_v54 }
 0x181   : > { %vm1547_vm11 = vcmp.lt.s32.totalorder %v1377_v57, %v1378_v58  ;;  %v4772_v9 = vsub.f32 %v4598_v45, %v809_v13 }
 0x182   : > { %v4762_v12 = vsel %vm1547_vm11, %v1377_v57, %v1378_v58  ;;  %v436_v58 = vpop.f32.mrf.mxu0  ;;  %v645_v63 = vpop.f32.mrf.mxu1 }
 0x183   : > { %v1550_v1 = vshra.s32 %v4762_v12, 16  ;;  %v1084_v23 = vmin.f32 %v4772_v9, %v4778_v10 }
 0x185   : > { %v4769_v7 = vcvt.s32.f32 %v1550_v1 }
 0x186   : > { %v1065_v8 = vpop.xlane.xlu2 %1064 }
 0x187   : > { %vm1251_vm12 = vcmp.eq.f32.partialorder %v4640_v20, %v1065_v8  ;;  %vm1252_vm13 = vcmp.eq.f32.partialorder %v4643_v21, %v1065_v8  ;;  %1553 = vmin.xlane.f32.xlu1 %v4769_v7  ;;  %1082 = vmin.xlane.f32.xlu2 %v1081_v2  ;;  %v811_v21 = vmul.f32 2.0, %v4711_v25  ;;  %v4803_v25 = vsub.f32 %v4600_v46, %v812_v24 }
 0x188   : > { %v1379_v16 = vsel %vm1251_vm12, %v4680_v0, 256  ;;  %v1380_v11 = vsel %vm1252_vm13, %v4684_v6, 256  ;;  %v816_v2 = vmul.f32 2.0, %v4759_v62  ;;  %v817_v24 = vmul.f32 2.0, %v4783_v52 }
 0x189   : > { %vm1563_vm14 = vcmp.lt.s32.totalorder %v1379_v16, %v1380_v11  ;;  %v4797_v30 = vsub.f32 %v4598_v45, %v811_v21 }
 0x18a   : > { %v4787_v20 = vsel %vm1563_vm14, %v1379_v16, %v1380_v11  ;;  %v306_v16 = vld [vmem:[%s4481_s25 + $0x110] sm:$0xff]  ;;  %v439_v21 = vpop.f32.mrf.mxu0 }
 0x18b   : > { %v1566_v18 = vshra.s32 %v4787_v20, 16  ;;  %v1087_v43 = vmin.f32 %v4797_v30, %v4803_v25  ;;  %486 = vmatmul.f32.gmra.mxu0 %v306_v16  ;;  %695 = vmatmul.f32.gmra.mxu1 %v306_v16 }
 0x18d   : > { %v4794_v27 = vcvt.s32.f32 %v1566_v18  ;;  %v648_v18 = vpop.f32.mrf.mxu1 }
 0x18e   : > { %v1068_v61 = vpop.xlane.xlu2 %1067 }
 0x18f   : > { %vm1253_vm15 = vcmp.eq.f32.partialorder %v4649_v28, %v1068_v61  ;;  %vm1254_vm0 = vcmp.eq.f32.partialorder %v4652_v29, %v1068_v61  ;;  %1569 = vmin.xlane.f32.xlu0 %v4794_v27  ;;  %1085 = vmin.xlane.f32.xlu1 %v1084_v23  ;;  %v813_v29 = vmul.f32 2.0, %v4734_v41  ;;  %v4826_v41 = vsub.f32 %v4600_v46, %v814_v5 }
 0x190   : > { %v1381_v32 = vsel %vm1253_vm15, %v4680_v0, 256  ;;  %v1382_v26 = vsel %vm1254_vm0, %v4684_v6, 256  ;;  %v818_v61 = vmul.f32 2.0, %v4785_v17  ;;  %v819_v17 = vmul.f32 2.0, %v4808_v34 }
 0x191   : > { %vm1579_vm1 = vcmp.lt.s32.totalorder %v1381_v32, %v1382_v26  ;;  %v4820_v50 = vsub.f32 %v4598_v45, %v813_v29  ;;  %v307_v29 = vld [vmem:[%s4481_s25 + $0x118] sm:$0xff]  ;;  %v820_v5 = vmul.f32 2.0, %v642_v39 }
 0x192   : > { %v4810_v28 = vsel %vm1579_vm1, %v1381_v32, %v1382_v26  ;;  %v4863_v32 = vsub.f32 %v4598_v45, %v817_v24  ;;  %v4866_v26 = vsub.f32 %v4600_v46, %v818_v61 }
 0x193   : > { %v1582_v40 = vshra.s32 %v4810_v28, 16  ;;  %v1090_v1 = vmin.f32 %v4820_v50, %v4826_v41  ;;  %489 = vmatmul.f32.gmra.mxu0 %v307_v29  ;;  %698 = vmatmul.f32.gmra.mxu1 %v307_v29  ;;  %v4876_v54 = vsub.f32 %v4600_v46, %v820_v5  ;;  %v310_v29 = vld [vmem:[%s4481_s25 + $0x130] sm:$0xff] }
 0x194   : > { %v1096_v52 = vmin.f32 %v4863_v32, %v4866_v26 }
 0x195   : > { %v4817_v48 = vcvt.s32.f32 %v1582_v40  ;;  %v442_v40 = vpop.f32.mrf.mxu0 }
 0x196   : > { %v1071_v49 = vpop.xlane.xlu0 %1070 }
 0x197   : > { %vm1255_vm2 = vcmp.eq.f32.partialorder %v4658_v36, %v1071_v49  ;;  %vm1256_vm3 = vcmp.eq.f32.partialorder %v4661_v37, %v1071_v49  ;;  %1585 = vmin.xlane.f32.xlu2 %v4817_v48  ;;  %1088 = vmin.xlane.f32.xlu1 %v1087_v43  ;;  %v815_v37 = vmul.f32 2.0, %v4757_v59  ;;  %v4847_v59 = vsub.f32 %v4600_v46, %v816_v2  ;;  %v651_v43 = vpop.f32.mrf.mxu1 }
 0x198   : > { %v1383_v57 = vsel %vm1255_vm2, %v4680_v0, 256  ;;  %v1384_v42 = vsel %vm1256_vm3, %v4684_v6, 256  ;;  %v4873_v49 = vsub.f32 %v4598_v45, %v819_v17  ;;  %v822_v2 = vmul.f32 2.0, %v645_v63 }
 0x199   : > { %vm1595_vm4 = vcmp.lt.s32.totalorder %v1383_v57, %v1384_v42  ;;  %v4841_v14 = vsub.f32 %v4598_v45, %v815_v37  ;;  %v825_v17 = vmul.f32 2.0, %v442_v40  ;;  %v826_v5 = vmul.f32 2.0, %v651_v43 }
 0x19a   : > { %v4831_v36 = vsel %vm1595_vm4, %v1383_v57, %v1384_v42  ;;  %v308_v57 = vld [vmem:[%s4481_s25 + $0x120] sm:$0xff]  ;;  %v4885_v39 = vsub.f32 %v4600_v46, %v822_v2 }
 0x19b   : > { %v1598_v13 = vshra.s32 %v4831_v36, 16  ;;  %v1093_v23 = vmin.f32 %v4841_v14, %v4847_v59  ;;  %492 = vmatmul.f32.gmra.mxu0 %v308_v57  ;;  %701 = vmatmul.f32.gmra.mxu1 %v308_v57 }
 0x19d   : > { %v4838_v3 = vcvt.s32.f32 %v1598_v13  ;;  %v445_v42 = vpop.f32.mrf.mxu0  ;;  %v1099_v13 = vmin.f32 %v4873_v49, %v4876_v54 }
 0x19e   : > { %v1074_v8 = vpop.xlane.xlu2 %1073 }
 0x19f   : > { %vm1257_vm5 = vcmp.eq.f32.partialorder %v4667_v44, %v1074_v8  ;;  %vm1258_vm6 = vcmp.eq.f32.partialorder %v4670_v47, %v1074_v8  ;;  %1601 = vmin.xlane.f32.xlu2 %v4838_v3  ;;  %1091 = vmin.xlane.f32.xlu1 %v1090_v1  ;;  %v654_v37 = vpop.f32.mrf.mxu1  ;;  %v821_v1 = vmul.f32 2.0, %v436_v58  ;;  %v309_v8 = vld [vmem:[%s4481_s25 + $0x128] sm:$0xff] }
 0x1a0   : > { %v1385_v11 = vsel %vm1257_vm5, %v4680_v0, 256  ;;  %v1386_v62 = vsel %vm1258_vm6, %v4684_v6, 256 }
 0x1a1   : > { %vm1611_vm7 = vcmp.lt.s32.totalorder %v1385_v11, %v1386_v62  ;;  %v4882_v34 = vsub.f32 %v4598_v45, %v821_v1  ;;  %v311_v1 = vld [vmem:[%s4481_s25 + $0x138] sm:$0xff] }
 0x1a2   : > { %v4852_v44 = vsel %vm1611_vm7, %v1385_v11, %v1386_v62 }
 0x1a3   : > { %v1614_v47 = vshra.s32 %v4852_v44, 16  ;;  %495 = vmatmul.f32.gmra.mxu0 %v309_v8  ;;  %704 = vmatmul.f32.gmra.mxu1 %v309_v8  ;;  %v1102_v62 = vmin.f32 %v4882_v34, %v4885_v39  ;;  %v827_v8 = vmul.f32 2.0, %v445_v42 }
 0x1a5   : > { %v4859_v31 = vcvt.s32.f32 %v1614_v47  ;;  %v448_v16 = vpop.f32.mrf.mxu0  ;;  %v823_v47 = vmul.f32 2.0, %v439_v21  ;;  %v4900_v21 = vsub.f32 %v4598_v45, %v825_v17  ;;  %v4909_v40 = vsub.f32 %v4598_v45, %v827_v8  ;;  %v313_v8 = vld [vmem:[%s4481_s25 + $0x148] sm:$0xff] }
 0x1a6   : > { %v829_v17 = vmul.f32 2.0, %v448_v16  ;;  %v1501_v16 = vand.u32 65535, %v4695_v15 }
 0x1a7   : > { %1617 = vmin.xlane.f32.xlu2 %v4859_v31  ;;  %1094 = vmin.xlane.f32.xlu1 %v1093_v23  ;;  %v657_v11 = vpop.f32.mrf.mxu1  ;;  %v824_v23 = vmul.f32 2.0, %v648_v18  ;;  %v4891_v58 = vsub.f32 %v4598_v45, %v823_v47  ;;  %v4903_v18 = vsub.f32 %v4600_v46, %v826_v5 }
 0x1a8   : > { %v830_v5 = vmul.f32 2.0, %v657_v11  ;;  %v4918_v42 = vsub.f32 %v4598_v45, %v829_v17 }
 0x1a9   : > { %v4894_v63 = vsub.f32 %v4600_v46, %v824_v23  ;;  %7164 = vst [vmem:[#allocation11_spill] sm:$0xff] %v4903_v18  ;;  %v1108_v2 = vmin.f32 %v4900_v21, %v4903_v18 }
 0x1aa   : > { %7166 = vst [vmem:[#allocation13_spill] sm:$0xff] %v4918_v42 }
 0x1ab   : > { %498 = vmatmul.f32.gmra.mxu0 %v310_v29  ;;  %707 = vmatmul.f32.gmra.mxu1 %v310_v29  ;;  %v312_v29 = vld [vmem:[%s4481_s25 + $0x140] sm:$0xff] }
 0x1ad   : > { %v451_v24 = vpop.f32.mrf.mxu0 }
 0x1ae   : > { %v831_v18 = vmul.f32 2.0, %v451_v24 }
 0x1af   : > { %1097 = vmin.xlane.f32.xlu1 %v1096_v52  ;;  %v660_v61 = vpop.f32.mrf.mxu1  ;;  %v1105_v52 = vmin.f32 %v4891_v58, %v4894_v63 }
 0x1b0   : > { %v4928_v11 = vsub.f32 %v4598_v45, %v831_v18 }
 0x1b3   : > { %501 = vmatmul.f32.gmra.mxu0 %v311_v1  ;;  %710 = vmatmul.f32.gmra.mxu1 %v311_v1 }
 0x1b5   : > { %v454_v57 = vpop.f32.mrf.mxu0 }
 0x1b6   : > { %v833_v24 = vmul.f32 2.0, %v454_v57 }
 0x1b7   : > { %1100 = vmin.xlane.f32.xlu1 %v1099_v13  ;;  %v663_v13 = vpop.f32.mrf.mxu1 }
 0x1bb   : > { %713 = vmatmul.f32.gmra.mxu1 %v312_v29  ;;  %504 = vmatmul.f32.gmra.mxu0 %v312_v29 }
 0x1bd   : > { %v457_v47 = vpop.f32.mrf.mxu0 }
 0x1bf   : > { %1103 = vmin.xlane.f32.xlu1 %v1102_v62  ;;  %v828_v62 = vmul.f32 2.0, %v654_v37  ;;  %v666_v23 = vpop.f32.mrf.mxu1  ;;  %v4921_v37 = vsub.f32 %v4600_v46, %v830_v5 }
 0x1c1   : > { %v4912_v43 = vsub.f32 %v4600_v46, %v828_v62  ;;  %7167 = vst [vmem:[#allocation14_spill] sm:$0xff] %v4921_v37  ;;  %v1114_v62 = vmin.f32 %v4918_v42, %v4921_v37  ;;  %v1503_v37 = vcvt.s32.f32 %v1501_v16  ;;  %v314_v42 = vld [vmem:[%s4481_s25 + $0x150] sm:$0xff] }
 0x1c3   : > { %7165 = vst [vmem:[#allocation12_spill] sm:$0xff] %v4912_v43  ;;  %716 = vmatmul.f32.gmra.mxu1 %v313_v8  ;;  %507 = vmatmul.f32.gmra.mxu0 %v313_v8  ;;  %v4946_v8 = vsub.f32 %v4598_v45, %v833_v24 }
 0x1c5   : > { %v460_v1 = vpop.f32.mrf.mxu0 }
 0x1c7   : > { %1106 = vmin.xlane.f32.xlu1 %v1105_v52  ;;  %v1111_v52 = vmin.f32 %v4909_v40, %v4912_v43  ;;  %v832_v43 = vmul.f32 2.0, %v660_v61  ;;  %v834_v61 = vmul.f32 2.0, %v663_v13 }
 0x1c9   : > { %v4931_v29 = vsub.f32 %v4600_v46, %v832_v43  ;;  %v1517_v43 = vand.u32 65535, %v4716_v60  ;;  %v4949_v57 = vsub.f32 %v4600_v46, %v834_v61  ;;  %v836_v60 = vmul.f32 2.0, %v666_v23 }
 0x1ca   : > { %v1533_v23 = vand.u32 65535, %v4739_v4 }
 0x1cb   : > { %7168 = vst [vmem:[#allocation15_spill] sm:$0xff] %v4931_v29  ;;  %v1117_v15 = vmin.f32 %v4928_v11, %v4931_v29  ;;  %719 = vmatmul.f32.gmra.mxu1 %v314_v42  ;;  %510 = vmatmul.f32.gmra.mxu0 %v314_v42  ;;  %v1519_v29 = vcvt.s32.f32 %v1517_v43  ;;  %v1120_v42 = vmin.f32 %v4946_v8, %v4949_v57 }
 0x1cf   : > { %1109 = vmin.xlane.f32.xlu1 %v1108_v2  ;;  %v669_v2 = vpop.f32.mrf.mxu1 }
 0x1d7   : > { %1112 = vmin.xlane.f32.xlu1 %v1111_v52  ;;  %v4933_v52 = vpop.f32.mrf.mxu0  ;;  %v4935_v17 = vpop.f32.mrf.mxu1 }
 0x1df   : > { %1115 = vmin.xlane.f32.xlu1 %v1114_v62  ;;  %v4951_v13 = vpop.f32.mrf.mxu0 }
 0x1e2   : > { %v4937_v5 = vpop.xlane.xlu1 %1505 }
 0x1e3   : > { %vm1507_vm8 = vcmp.eq.f32.partialorder %v4698_v53, %v4937_v5  ;;  %v4953_v53 = vpop.f32.mrf.mxu1 }
 0x1e4   : > { %v1508_v18 = vsel %vm1507_vm8, %v1503_v37, inf  ;;  %v835_v37 = vmul.f32 2.0, %v457_v47 }
 0x1e5   : > { %1509 = vmin.xlane.f32.xlu0 %v1508_v18  ;;  %v315_v18 = vld [vmem:[%s4481_s25 + $0x158] sm:$0xff] }
 0x1e6   : > { %722 = vmatmul.f32.gmra.mxu1 %v315_v18  ;;  %513 = vmatmul.f32.gmra.mxu0 %v315_v18 }
 0x1e7   : > { %1118 = vmin.xlane.f32.xlu1 %v1117_v15  ;;  %v4976_v43 = vpop.f32.mrf.mxu0 }
 0x1ea   : > { %v4955_v62 = vpop.xlane.xlu0 %1521  ;;  %v1077_v16 = vpop.xlane.xlu1 %1076 }
 0x1eb   : > { %vm1259_vm9 = vcmp.eq.f32.partialorder %v4704_v19, %v1077_v16  ;;  %vm1260_vm10 = vcmp.eq.f32.partialorder %v4707_v22, %v1077_v16  ;;  %vm1523_vm11 = vcmp.eq.f32.partialorder %v4721_v33, %v4955_v62  ;;  %v4970_v19 = vsub.f32 %v4598_v45, %v835_v37  ;;  %v4978_v16 = vpop.f32.mrf.mxu1 }
 0x1ec   : > { %v1387_v24 = vsel %vm1259_vm9, %v4680_v0, 256  ;;  %v1388_v61 = vsel %vm1260_vm10, %v4684_v6, 256  ;;  %v1524_v15 = vsel %vm1523_vm11, %v1519_v29, inf  ;;  %v4973_v22 = vsub.f32 %v4600_v46, %v836_v60  ;;  %v316_v60 = vld [vmem:[%s4481_s25 + $0x160] sm:$0xff] }
 0x1ed   : > { %1525 = vmin.xlane.f32.xlu0 %v1524_v15  ;;  %vm1627_vm12 = vcmp.lt.s32.totalorder %v1387_v24, %v1388_v61  ;;  %v837_v37 = vmul.f32 2.0, %v460_v1  ;;  %v838_v15 = vmul.f32 2.0, %v669_v2 }
 0x1ee   : > { %v4966_v47 = vsel %vm1627_vm12, %v1387_v24, %v1388_v61  ;;  %v1535_v61 = vcvt.s32.f32 %v1533_v23  ;;  %v1123_v4 = vmin.f32 %v4970_v19, %v4973_v22  ;;  %725 = vmatmul.f32.gmra.mxu1 %v316_v60  ;;  %516 = vmatmul.f32.gmra.mxu0 %v316_v60 }
 0x1ef   : > { %1121 = vmin.xlane.f32.xlu1 %v1120_v42  ;;  %v1630_v33 = vshra.s32 %v4966_v47, 16  ;;  %v5001_v2 = vsub.f32 %v4600_v46, %v838_v15  ;;  %v840_v15 = vmul.f32 2.0, %v4935_v17 }
 0x1f1   : > { %v4980_v29 = vcvt.s32.f32 %v1630_v33  ;;  %7169 = vst [vmem:[#allocation16_spill] sm:$0xff] %v5001_v2  ;;  %v5031_v17 = vsub.f32 %v4600_v46, %v840_v15  ;;  %v842_v15 = vmul.f32 2.0, %v4953_v53 }
 0x1f2   : > { %v4982_v18 = vpop.xlane.xlu2 %1537  ;;  %v1080_v24 = vpop.xlane.xlu0 %1079 }
 0x1f3   : > { %vm1261_vm13 = vcmp.eq.f32.partialorder %v4724_v35, %v1080_v24  ;;  %vm1262_vm14 = vcmp.eq.f32.partialorder %v4730_v38, %v1080_v24  ;;  %1633 = vmin.xlane.f32.xlu2 %v4980_v29  ;;  %vm1539_vm15 = vcmp.eq.f32.partialorder %v4744_v51, %v4982_v18  ;;  %v1549_v35 = vand.u32 65535, %v4762_v12  ;;  %v5004_v24 = vpop.f32.mrf.mxu0  ;;  %7170 = vst [vmem:[#allocation17_spill] sm:$0xff] %v5031_v17 }
 0x1f4   : > { %v1389_v42 = vsel %vm1261_vm13, %v4680_v0, 256  ;;  %v1390_v23 = vsel %vm1262_vm14, %v4684_v6, 256  ;;  %v1540_v33 = vsel %vm1539_vm15, %v1535_v61, inf  ;;  %v4998_v38 = vsub.f32 %v4598_v45, %v837_v37  ;;  %v5006_v61 = vpop.f32.mrf.mxu1 }
 0x1f5   : > { %1541 = vmin.xlane.f32.xlu0 %v1540_v33  ;;  %vm1643_vm0 = vcmp.lt.s32.totalorder %v1389_v42, %v1390_v23  ;;  %v839_v37 = vmul.f32 2.0, %v4933_v52  ;;  %v5061_v53 = vsub.f32 %v4600_v46, %v842_v15  ;;  %v844_v15 = vmul.f32 2.0, %v4978_v16 }
 0x1f6   : > { %v4994_v1 = vsel %vm1643_vm0, %v1389_v42, %v1390_v23  ;;  %v1551_v23 = vcvt.s32.f32 %v1549_v35  ;;  %v1126_v12 = vmin.f32 %v4998_v38, %v5001_v2 }
 0x1f7   : > { %1124 = vmin.xlane.f32.xlu1 %v1123_v4  ;;  %v1646_v51 = vshra.s32 %v4994_v1, 16  ;;  %v317_v4 = vld [vmem:[%s4481_s25 + $0x168] sm:$0xff]  ;;  %7171 = vst [vmem:[#allocation18_spill] sm:$0xff] %v5061_v53  ;;  %v5091_v16 = vsub.f32 %v4600_v46, %v844_v15  ;;  %v846_v15 = vmul.f32 2.0, %v5006_v61 }
 0x1f8   : > { %728 = vmatmul.f32.gmra.mxu1 %v317_v4  ;;  %519 = vmatmul.f32.gmra.mxu0 %v317_v4 }
 0x1f9   : > { %v5008_v60 = vcvt.s32.f32 %v1646_v51  ;;  %7172 = vst [vmem:[#allocation19_spill] sm:$0xff] %v5091_v16  ;;  %v5121_v61 = vsub.f32 %v4600_v46, %v846_v15 }
 0x1fa   : > { %v5010_v33 = vpop.xlane.xlu1 %1553  ;;  %v1083_v42 = vpop.xlane.xlu2 %1082 }
 0x1fb   : > { %vm1263_vm1 = vcmp.eq.f32.partialorder %v4747_v55, %v1083_v42  ;;  %vm1264_vm2 = vcmp.eq.f32.partialorder %v4753_v56, %v1083_v42  ;;  %1649 = vmin.xlane.f32.xlu2 %v5008_v60  ;;  %vm1555_vm3 = vcmp.eq.f32.partialorder %v4769_v7, %v5010_v33  ;;  %v1565_v55 = vand.u32 65535, %v4787_v20  ;;  %v5034_v42 = vpop.f32.mrf.mxu0  ;;  %7174 = vst [vmem:[#allocation21_spill] sm:$0xff] %v5121_v61 }
 0x1fc   : > { %v1391_v35 = vsel %vm1263_vm1, %v4680_v0, 256  ;;  %v1392_v51 = vsel %vm1264_vm2, %v4684_v6, 256  ;;  %v1556_v2 = vsel %vm1555_vm3, %v1551_v23, inf  ;;  %v5028_v56 = vsub.f32 %v4598_v45, %v839_v37  ;;  %v5036_v23 = vpop.f32.mrf.mxu1 }
 0x1fd   : > { %1557 = vmin.xlane.f32.xlu0 %v1556_v2  ;;  %vm1659_vm4 = vcmp.lt.s32.totalorder %v1391_v35, %v1392_v51  ;;  %v841_v37 = vmul.f32 2.0, %v4951_v13  ;;  %v848_v15 = vmul.f32 2.0, %v5036_v23 }
 0x1fe   : > { %v5024_v52 = vsel %vm1659_vm4, %v1391_v35, %v1392_v51  ;;  %v1567_v51 = vcvt.s32.f32 %v1565_v55  ;;  %v1129_v20 = vmin.f32 %v5028_v56, %v5031_v17 }
 0x1ff   : > { %1127 = vmin.xlane.f32.xlu1 %v1126_v12  ;;  %v1662_v7 = vshra.s32 %v5024_v52, 16  ;;  %v318_v12 = vld [vmem:[%s4481_s25 + $0x170] sm:$0xff] }
 0x200   : > { %731 = vmatmul.f32.gmra.mxu1 %v318_v12  ;;  %522 = vmatmul.f32.gmra.mxu0 %v318_v12 }
 0x201   : > { %v5038_v2 = vcvt.s32.f32 %v1662_v7 }
 0x202   : > { %v5040_v4 = vpop.xlane.xlu0 %1569  ;;  %v1086_v35 = vpop.xlane.xlu1 %1085 }
 0x203   : > { %vm1265_vm5 = vcmp.eq.f32.partialorder %v4772_v9, %v1086_v35  ;;  %vm1266_vm6 = vcmp.eq.f32.partialorder %v4778_v10, %v1086_v35  ;;  %1665 = vmin.xlane.f32.xlu2 %v5038_v2  ;;  %vm1571_vm7 = vcmp.eq.f32.partialorder %v4794_v27, %v5040_v4  ;;  %v1581_v9 = vand.u32 65535, %v4810_v28  ;;  %v5064_v35 = vpop.f32.mrf.mxu0 }
 0x204   : > { %v1393_v55 = vsel %vm1265_vm5, %v4680_v0, 256  ;;  %v1394_v7 = vsel %vm1266_vm6, %v4684_v6, 256  ;;  %v1572_v17 = vsel %vm1571_vm7, %v1567_v51, inf  ;;  %v5058_v10 = vsub.f32 %v4598_v45, %v841_v37  ;;  %v5066_v51 = vpop.f32.mrf.mxu1 }
 0x205   : > { %1573 = vmin.xlane.f32.xlu0 %v1572_v17  ;;  %vm1675_vm8 = vcmp.lt.s32.totalorder %v1393_v55, %v1394_v7  ;;  %v843_v37 = vmul.f32 2.0, %v4976_v43 }
 0x206   : > { %v5054_v13 = vsel %vm1675_vm8, %v1393_v55, %v1394_v7  ;;  %v1583_v7 = vcvt.s32.f32 %v1581_v9  ;;  %v1132_v28 = vmin.f32 %v5058_v10, %v5061_v53 }
 0x207   : > { %1130 = vmin.xlane.f32.xlu1 %v1129_v20  ;;  %v1678_v27 = vshra.s32 %v5054_v13, 16  ;;  %v319_v20 = vld [vmem:[%s4481_s25 + $0x178] sm:$0xff] }
 0x208   : > { %734 = vmatmul.f32.gmra.mxu1 %v319_v20  ;;  %525 = vmatmul.f32.gmra.mxu0 %v319_v20 }
 0x209   : > { %v5068_v17 = vcvt.s32.f32 %v1678_v27 }
 0x20a   : > { %v5070_v12 = vpop.xlane.xlu2 %1585  ;;  %v1089_v55 = vpop.xlane.xlu1 %1088 }
 0x20b   : > { %vm1267_vm9 = vcmp.eq.f32.partialorder %v4797_v30, %v1089_v55  ;;  %vm1268_vm10 = vcmp.eq.f32.partialorder %v4803_v25, %v1089_v55  ;;  %1681 = vmin.xlane.f32.xlu2 %v5068_v17  ;;  %vm1587_vm11 = vcmp.eq.f32.partialorder %v4817_v48, %v5070_v12  ;;  %v1597_v30 = vand.u32 65535, %v4831_v36  ;;  %v5094_v55 = vpop.f32.mrf.mxu0 }
 0x20c   : > { %v1395_v9 = vsel %vm1267_vm9, %v4680_v0, 256  ;;  %v1396_v27 = vsel %vm1268_vm10, %v4684_v6, 256  ;;  %v1588_v53 = vsel %vm1587_vm11, %v1583_v7, inf  ;;  %v5088_v25 = vsub.f32 %v4598_v45, %v843_v37  ;;  %v5096_v7 = vpop.f32.mrf.mxu1 }
 0x20d   : > { %1589 = vmin.xlane.f32.xlu0 %v1588_v53  ;;  %vm1691_vm12 = vcmp.lt.s32.totalorder %v1395_v9, %v1396_v27  ;;  %v845_v37 = vmul.f32 2.0, %v5004_v24 }
 0x20e   : > { %v5084_v43 = vsel %vm1691_vm12, %v1395_v9, %v1396_v27  ;;  %v1599_v27 = vcvt.s32.f32 %v1597_v30  ;;  %v1135_v36 = vmin.f32 %v5088_v25, %v5091_v16 }
 0x20f   : > { %1133 = vmin.xlane.f32.xlu1 %v1132_v28  ;;  %v1694_v48 = vshra.s32 %v5084_v43, 16  ;;  %v320_v28 = vld [vmem:[%s4481_s25 + $0x180] sm:$0xff] }
 0x210   : > { %737 = vmatmul.f32.gmra.mxu1 %v320_v28  ;;  %528 = vmatmul.f32.gmra.mxu0 %v320_v28 }
 0x211   : > { %v5098_v53 = vcvt.s32.f32 %v1694_v48 }
 0x212   : > { %v5100_v20 = vpop.xlane.xlu2 %1601  ;;  %v1092_v9 = vpop.xlane.xlu1 %1091 }
 0x213   : > { %vm1269_vm13 = vcmp.eq.f32.partialorder %v4820_v50, %v1092_v9  ;;  %vm1270_vm14 = vcmp.eq.f32.partialorder %v4826_v41, %v1092_v9  ;;  %1697 = vmin.xlane.f32.xlu2 %v5098_v53  ;;  %vm1603_vm15 = vcmp.eq.f32.partialorder %v4838_v3, %v5100_v20  ;;  %v1613_v50 = vand.u32 65535, %v4852_v44  ;;  %v5124_v9 = vpop.f32.mrf.mxu0 }
 0x214   : > { %v1397_v30 = vsel %vm1269_vm13, %v4680_v0, 256  ;;  %v1398_v48 = vsel %vm1270_vm14, %v4684_v6, 256  ;;  %v1604_v16 = vsel %vm1603_vm15, %v1599_v27, inf  ;;  %v5118_v41 = vsub.f32 %v4598_v45, %v845_v37  ;;  %v5126_v27 = vpop.f32.mrf.mxu1 }
 0x215   : > { %1605 = vmin.xlane.f32.xlu0 %v1604_v16  ;;  %vm1707_vm0 = vcmp.lt.s32.totalorder %v1397_v30, %v1398_v48  ;;  %v847_v37 = vmul.f32 2.0, %v5034_v42 }
 0x216   : > { %v5114_v24 = vsel %vm1707_vm0, %v1397_v30, %v1398_v48  ;;  %7173 = vst [vmem:[#allocation20_spill] sm:$0xff] %v5118_v41  ;;  %v1615_v48 = vcvt.s32.f32 %v1613_v50  ;;  %v1138_v44 = vmin.f32 %v5118_v41, %v5121_v61 }
 0x217   : > { %1136 = vmin.xlane.f32.xlu1 %v1135_v36  ;;  %v1710_v3 = vshra.s32 %v5114_v24, 16  ;;  %v321_v36 = vld [vmem:[%s4481_s25 + $0x188] sm:$0xff] }
 0x218   : > { %740 = vmatmul.f32.gmra.mxu1 %v321_v36  ;;  %531 = vmatmul.f32.gmra.mxu0 %v321_v36  ;;  %v322_v36 = vld [vmem:[%s4481_s25 + $0x190] sm:$0xff] }
 0x219   : > { %v5128_v16 = vcvt.s32.f32 %v1710_v3 }
 0x21a   : > { %v5130_v28 = vpop.xlane.xlu2 %1617  ;;  %v1095_v30 = vpop.xlane.xlu1 %1094 }
 0x21b   : > { %vm1271_vm1 = vcmp.eq.f32.partialorder %v4841_v14, %v1095_v30  ;;  %vm1272_vm2 = vcmp.eq.f32.partialorder %v4847_v59, %v1095_v30  ;;  %1713 = vmin.xlane.f32.xlu2 %v5128_v16  ;;  %vm1619_vm3 = vcmp.eq.f32.partialorder %v4859_v31, %v5130_v28  ;;  %v5147_v14 = vsub.f32 %v4598_v45, %v847_v37  ;;  %v5153_v23 = vpop.f32.mrf.mxu0 }
 0x21c   : > { %v1399_v50 = vsel %vm1271_vm1, %v4680_v0, 256  ;;  %v1400_v3 = vsel %vm1272_vm2, %v4684_v6, 256  ;;  %v1620_v61 = vsel %vm1619_vm3, %v1615_v48, inf  ;;  %v5150_v59 = vsub.f32 %v4600_v46, %v848_v15  ;;  %v5155_v30 = vpop.f32.mrf.mxu1 }
 0x21d   : > { %1621 = vmin.xlane.f32.xlu0 %v1620_v61  ;;  %vm1723_vm4 = vcmp.lt.s32.totalorder %v1399_v50, %v1400_v3  ;;  %v850_v37 = vmul.f32 2.0, %v5066_v51 }
 0x21e   : > { %v5144_v42 = vsel %vm1723_vm4, %v1399_v50, %v1400_v3  ;;  %7175 = vst [vmem:[#allocation22_spill] sm:$0xff] %v5150_v59  ;;  %v1141_v61 = vmin.f32 %v5147_v14, %v5150_v59 }
 0x21f   : > { %1139 = vmin.xlane.f32.xlu1 %v1138_v44  ;;  %v1726_v31 = vshra.s32 %v5144_v42, 16  ;;  %v849_v44 = vmul.f32 2.0, %v5064_v35  ;;  %v5176_v35 = vsub.f32 %v4600_v46, %v850_v37 }
 0x220   : > { %743 = vmatmul.f32.gmra.mxu1 %v322_v36  ;;  %534 = vmatmul.f32.gmra.mxu0 %v322_v36  ;;  %v851_v36 = vmul.f32 2.0, %v5094_v55 }
 0x221   : > { %v5157_v41 = vcvt.s32.f32 %v1726_v31  ;;  %7177 = vst [vmem:[#allocation24_spill] sm:$0xff] %v5176_v35 }
 0x222   : > { %v1098_v48 = vpop.xlane.xlu1 %1097 }
 0x223   : > { %vm1273_vm5 = vcmp.eq.f32.partialorder %v4863_v32, %v1098_v48  ;;  %vm1274_vm6 = vcmp.eq.f32.partialorder %v4866_v26, %v1098_v48  ;;  %1729 = vmin.xlane.f32.xlu2 %v5157_v41  ;;  %v5173_v26 = vsub.f32 %v4598_v45, %v849_v44  ;;  %v5178_v51 = vpop.f32.mrf.mxu0 }
 0x224   : > { %v1401_v15 = vsel %vm1273_vm5, %v4680_v0, 256  ;;  %v1402_v50 = vsel %vm1274_vm6, %v4684_v6, 256  ;;  %v5180_v31 = vpop.f32.mrf.mxu1 }
 0x225   : > { %vm1739_vm7 = vcmp.lt.s32.totalorder %v1401_v15, %v1402_v50  ;;  %7176 = vst [vmem:[#allocation23_spill] sm:$0xff] %v5173_v26  ;;  %v1144_v44 = vmin.f32 %v5173_v26, %v5176_v35 }
 0x226   : > { %v5169_v3 = vsel %vm1739_vm7, %v1401_v15, %v1402_v50  ;;  %v852_v15 = vmul.f32 2.0, %v5096_v7  ;;  %v5197_v7 = vsub.f32 %v4598_v45, %v851_v36  ;;  %v853_v36 = vmul.f32 2.0, %v5124_v9 }
 0x227   : > { %1142 = vmin.xlane.f32.xlu1 %v1141_v61  ;;  %v1742_v32 = vshra.s32 %v5169_v3, 16  ;;  %v323_v61 = vld [vmem:[%s4481_s25 + $0x198] sm:$0xff] }
 0x228   : > { %746 = vmatmul.f32.gmra.mxu1 %v323_v61  ;;  %537 = vmatmul.f32.gmra.mxu0 %v323_v61  ;;  %7178 = vst [vmem:[#allocation25_spill] sm:$0xff] %v5197_v7 }
 0x229   : > { %v5182_v48 = vcvt.s32.f32 %v1742_v32 }
 0x22a   : > { %v1101_v59 = vpop.xlane.xlu1 %1100 }
 0x22b   : > { %vm1275_vm8 = vcmp.eq.f32.partialorder %v4873_v49, %v1101_v59  ;;  %vm1276_vm9 = vcmp.eq.f32.partialorder %v4876_v54, %v1101_v59  ;;  %1745 = vmin.xlane.f32.xlu2 %v5182_v48  ;;  %v5200_v49 = vsub.f32 %v4600_v46, %v852_v15  ;;  %v5203_v59 = vpop.f32.mrf.mxu0  ;;  %v854_v15 = vmul.f32 2.0, %v5126_v27 }
 0x22c   : > { %v1403_v37 = vsel %vm1275_vm8, %v4680_v0, 256  ;;  %v1404_v50 = vsel %vm1276_vm9, %v4684_v6, 256  ;;  %v5205_v32 = vpop.f32.mrf.mxu1 }
 0x22d   : > { %vm1755_vm10 = vcmp.lt.s32.totalorder %v1403_v37, %v1404_v50  ;;  %7179 = vst [vmem:[#allocation26_spill] sm:$0xff] %v5200_v49  ;;  %v1147_v61 = vmin.f32 %v5197_v7, %v5200_v49  ;;  %v5226_v9 = vsub.f32 %v4600_v46, %v854_v15 }
 0x22e   : > { %v5194_v55 = vsel %vm1755_vm10, %v1403_v37, %v1404_v50  ;;  %v324_v37 = vld [vmem:[%s4481_s25 + $0x1a0] sm:$0xff]  ;;  %vm2523_vm10 = vcmask 7168  }
 0x22f   : > { %1145 = vmin.xlane.f32.xlu1 %v1144_v44  ;;  %v1758_v54 = vshra.s32 %v5194_v55, 16  ;;  %7181 = vst [vmem:[#allocation28_spill] sm:$0xff] %v5226_v9 }
 0x230   : > { %749 = vmatmul.f32.gmra.mxu1 %v324_v37  ;;  %540 = vmatmul.f32.gmra.mxu0 %v324_v37  ;;  %v855_v37 = vmul.f32 2.0, %v5153_v23 }
 0x231   : > { %v5207_v35 = vcvt.s32.f32 %v1758_v54 }
 0x232   : > { %v1104_v26 = vpop.xlane.xlu1 %1103 }
 0x233   : > { %vm1277_vm11 = vcmp.eq.f32.partialorder %v4882_v34, %v1104_v26  ;;  %vm1278_vm12 = vcmp.eq.f32.partialorder %v4885_v39, %v1104_v26  ;;  %1761 = vmin.xlane.f32.xlu2 %v5207_v35  ;;  %v5223_v39 = vsub.f32 %v4598_v45, %v853_v36  ;;  %v5230_v26 = vpop.f32.mrf.mxu0 }
 0x234   : > { %v1405_v44 = vsel %vm1277_vm11, %v4680_v0, 256  ;;  %v1406_v50 = vsel %vm1278_vm12, %v4684_v6, 256  ;;  %v5228_v27 = vpop.f32.mrf.mxu1 }
 0x235   : > { %vm1771_vm13 = vcmp.lt.s32.totalorder %v1405_v44, %v1406_v50  ;;  %7180 = vst [vmem:[#allocation27_spill] sm:$0xff] %v5223_v39  ;;  %v1150_v36 = vmin.f32 %v5223_v39, %v5226_v9 }
 0x236   : > { %v5219_v54 = vsel %vm1771_vm13, %v1405_v44, %v1406_v50  ;;  %v856_v44 = vmul.f32 2.0, %v5155_v30  ;;  %v5247_v30 = vsub.f32 %v4598_v45, %v855_v37  ;;  %v7185_v37 = vld [vmem:[#allocation11_spill] sm:$0xff] }
 0x237   : > { %1148 = vmin.xlane.f32.xlu1 %v1147_v61  ;;  %v1774_v34 = vshra.s32 %v5219_v54, 16  ;;  %v325_v61 = vld [vmem:[%s4481_s25 + $0x1a8] sm:$0xff] }
 0x238   : > { %752 = vmatmul.f32.gmra.mxu1 %v325_v61  ;;  %543 = vmatmul.f32.gmra.mxu0 %v325_v61  ;;  %7182 = vst [vmem:[#allocation29_spill] sm:$0xff] %v5247_v30 }
 0x239   : > { %v5232_v49 = vcvt.s32.f32 %v1774_v34 }
 0x23a   : > { %v1107_v7 = vpop.xlane.xlu1 %1106 }
 0x23b   : > { %vm1279_vm14 = vcmp.eq.f32.partialorder %v4891_v58, %v1107_v7  ;;  %vm1280_vm15 = vcmp.eq.f32.partialorder %v4894_v63, %v1107_v7  ;;  %1777 = vmin.xlane.f32.xlu2 %v5232_v49  ;;  %v5250_v58 = vsub.f32 %v4600_v46, %v856_v44  ;;  %v5255_v34 = vpop.f32.mrf.mxu0  ;;  %v857_v44 = vmul.f32 2.0, %v5178_v51 }
 0x23c   : > { %v1407_v15 = vsel %vm1279_vm14, %v4680_v0, 256  ;;  %v1408_v50 = vsel %vm1280_vm15, %v4684_v6, 256  ;;  %v5253_v7 = vpop.f32.mrf.mxu1 }
 0x23d   : > { %vm1787_vm0 = vcmp.lt.s32.totalorder %v1407_v15, %v1408_v50  ;;  %7183 = vst [vmem:[#allocation30_spill] sm:$0xff] %v5250_v58  ;;  %v1153_v61 = vmin.f32 %v5247_v30, %v5250_v58 }
 0x23e   : > { %v5244_v23 = vsel %vm1787_vm0, %v1407_v15, %v1408_v50  ;;  %v326_v15 = vld [vmem:[%s4481_s25 + $0x1b0] sm:$0xff] }
 0x23f   : > { %1151 = vmin.xlane.f32.xlu1 %v1150_v36  ;;  %v1790_v63 = vshra.s32 %v5244_v23, 16  ;;  %v858_v36 = vmul.f32 2.0, %v5180_v31 }
 0x240   : > { %755 = vmatmul.f32.gmra.mxu1 %v326_v15  ;;  %546 = vmatmul.f32.gmra.mxu0 %v326_v15 }
 0x241   : > { %v5257_v9 = vcvt.s32.f32 %v1790_v63  ;;  %v5276_v51 = vsub.f32 %v4600_v46, %v858_v36 }
 0x242   : > { %v1110_v39 = vpop.xlane.xlu1 %1109 }
 0x243   : > { %7184 = vst [vmem:[#allocation31_spill] sm:$0xff] %v5257_v9  ;;  %vm1281_vm1 = vcmp.eq.f32.partialorder %v4900_v21, %v1110_v39  ;;  %vm1282_vm2 = vcmp.eq.f32.partialorder %v7185_v37, %v1110_v39  ;;  %1793 = vmin.xlane.f32.xlu2 %v5257_v9  ;;  %v5273_v39 = vsub.f32 %v4598_v45, %v857_v44  ;;  %v5280_v37 = vpop.f32.mrf.mxu0  ;;  %v7190_v44 = vld [vmem:[#allocation12_spill] sm:$0xff] }
 0x244   : > { %v1409_v50 = vsel %vm1281_vm1, %v4680_v0, 256  ;;  %v1410_v63 = vsel %vm1282_vm2, %v4684_v6, 256  ;;  %7188 = vst [vmem:[#allocation33_spill] sm:$0xff] %v5276_v51  ;;  %v5278_v31 = vpop.f32.mrf.mxu1 }
 0x245   : > { %vm1803_vm3 = vcmp.lt.s32.totalorder %v1409_v50, %v1410_v63  ;;  %7187 = vst [vmem:[#allocation32_spill] sm:$0xff] %v5273_v39  ;;  %v1156_v36 = vmin.f32 %v5273_v39, %v5276_v51 }
 0x246   : > { %v5269_v58 = vsel %vm1803_vm3, %v1409_v50, %v1410_v63  ;;  %v859_v50 = vmul.f32 2.0, %v5203_v59  ;;  %v327_v63 = vld [vmem:[%s4481_s25 + $0x1b8] sm:$0xff] }
 0x247   : > { %7186 = vst [vmem:[#allocation11_spill] sm:$0xff] %v5269_v58  ;;  %1154 = vmin.xlane.f32.xlu1 %v1153_v61  ;;  %v1806_v21 = vshra.s32 %v5269_v58, 16  ;;  %v860_v61 = vmul.f32 2.0, %v5205_v32 }
 0x248   : > { %758 = vmatmul.f32.gmra.mxu1 %v327_v63  ;;  %549 = vmatmul.f32.gmra.mxu0 %v327_v63 }
 0x249   : > { %v5282_v30 = vcvt.s32.f32 %v1806_v21  ;;  %v5301_v32 = vsub.f32 %v4600_v46, %v860_v61  ;;  %v862_v61 = vmul.f32 2.0, %v5228_v27 }
 0x24a   : > { %v1113_v15 = vpop.xlane.xlu1 %1112 }
 0x24b   : > { %7189 = vst [vmem:[#allocation34_spill] sm:$0xff] %v5282_v30  ;;  %vm1283_vm4 = vcmp.eq.f32.partialorder %v4909_v40, %v1113_v15  ;;  %vm1284_vm5 = vcmp.eq.f32.partialorder %v7190_v44, %v1113_v15  ;;  %1809 = vmin.xlane.f32.xlu2 %v5282_v30  ;;  %v5298_v40 = vsub.f32 %v4598_v45, %v859_v50  ;;  %v5306_v51 = vpop.f32.mrf.mxu0  ;;  %v7195_v50 = vld [vmem:[#allocation13_spill] sm:$0xff]  ;;  %v7196_v30 = vld [vmem:[#allocation14_spill] sm:$0xff] }
 0x24c   : > { %v1411_v58 = vsel %vm1283_vm4, %v4680_v0, 256  ;;  %v1412_v21 = vsel %vm1284_vm5, %v4684_v6, 256  ;;  %7193 = vst [vmem:[#allocation36_spill] sm:$0xff] %v5301_v32  ;;  %v5304_v44 = vpop.f32.mrf.mxu1 }
 0x24d   : > { %vm1819_vm6 = vcmp.lt.s32.totalorder %v1411_v58, %v1412_v21  ;;  %7192 = vst [vmem:[#allocation35_spill] sm:$0xff] %v5298_v40 }
 0x24e   : > { %v5295_v59 = vsel %vm1819_vm6, %v1411_v58, %v1412_v21  ;;  %v1159_v58 = vmin.f32 %v5298_v40, %v5301_v32  ;;  %v328_v21 = vld [vmem:[%s4481_s25 + $0x1c0] sm:$0xff]  ;;  %v1512_v32 = vcvt.f32.s32 %v4937_v5 }
 0x24f   : > { %7191 = vst [vmem:[#allocation12_spill] sm:$0xff] %v5295_v59  ;;  %1157 = vmin.xlane.f32.xlu1 %v1156_v36  ;;  %v1822_v15 = vshra.s32 %v5295_v59, 16  ;;  %v861_v36 = vmul.f32 2.0, %v5230_v26  ;;  %v5328_v26 = vsub.f32 %v4600_v46, %v862_v61  ;;  %v864_v61 = vmul.f32 2.0, %v5253_v7 }
 0x250   : > { %761 = vmatmul.f32.gmra.mxu1 %v328_v21  ;;  %552 = vmatmul.f32.gmra.mxu0 %v328_v21  ;;  %v1513_v21 = vshll.u32 %v1512_v32, 16  ;;  %v7200_v32 = vld [vmem:[#allocation15_spill] sm:$0xff]  ;;  %v1528_v7 = vcvt.f32.s32 %v4955_v62 }
 0x251   : > { %v5308_v39 = vcvt.s32.f32 %v1822_v15  ;;  %v5325_v27 = vsub.f32 %v4598_v45, %v861_v36  ;;  %7199 = vst [vmem:[#allocation38_spill] sm:$0xff] %v5328_v26  ;;  %v863_v36 = vmul.f32 2.0, %v5255_v34  ;;  %v5364_v62 = vsub.f32 %v4600_v46, %v864_v61 }
 0x252   : > { %v1116_v63 = vpop.xlane.xlu1 %1115  ;;  %v866_v61 = vmul.f32 2.0, %v5278_v31  ;;  %v1544_v31 = vcvt.f32.s32 %v4982_v18 }
 0x253   : > { %7194 = vst [vmem:[#allocation37_spill] sm:$0xff] %v5308_v39  ;;  %vm1285_vm7 = vcmp.eq.f32.partialorder %v7195_v50, %v1116_v63  ;;  %vm1286_vm8 = vcmp.eq.f32.partialorder %v7196_v30, %v1116_v63  ;;  %1825 = vmin.xlane.f32.xlu2 %v5308_v39 }
 0x254   : > { %v1413_v59 = vsel %vm1285_vm7, %v4680_v0, 256  ;;  %v1414_v15 = vsel %vm1286_vm8, %v4684_v6, 256  ;;  %7198 = vst [vmem:[#allocation14_spill] sm:$0xff] %v5325_v27  ;;  %v5330_v50 = vpop.f32.mrf.mxu1 }
 0x255   : > { %vm1835_vm9 = vcmp.lt.s32.totalorder %v1413_v59, %v1414_v15  ;;  %7202 = vst [vmem:[#allocation39_spill] sm:$0xff] %v5364_v62 }
 0x256   : > { %v5321_v40 = vsel %vm1835_vm9, %v1413_v59, %v1414_v15  ;;  %v5334_v59 = vpop.f32.mrf.mxu0  ;;  %v329_v15 = vld [vmem:[%s4481_s25 + $0x1c8] sm:$0xff] }
 0x257   : > { %7197 = vst [vmem:[#allocation13_spill] sm:$0xff] %v5321_v40  ;;  %1160 = vmin.xlane.f32.xlu1 %v1159_v58  ;;  %v1838_v30 = vshra.s32 %v5321_v40, 16 }
 0x258   : > { %v1510_v63 = vpop.xlane.xlu0 %1509  ;;  %764 = vmatmul.f32.gmra.mxu1 %v329_v15  ;;  %555 = vmatmul.f32.gmra.mxu0 %v329_v15 }
 0x259   : > { %v1511_v39 = vcvt.f32.s32 %v1510_v63  ;;  %v5332_v5 = vcvt.s32.f32 %v1838_v30  ;;  %v1162_v30 = vmin.f32 %v5325_v27, %v5328_v26 }
 0x25a   : > { %v1119_v58 = vpop.xlane.xlu1 %1118 }
 0x25b   : > { %v1514_v40 = vadd.s32 %v1513_v21, %v1511_v39  ;;  %vm1287_vm11 = vcmp.eq.f32.partialorder %v4928_v11, %v1119_v58  ;;  %vm1288_vm12 = vcmp.eq.f32.partialorder %v7200_v32, %v1119_v58  ;;  %1841 = vmin.xlane.f32.xlu2 %v5332_v5  ;;  %v7100_v11 = vmov 1.0  }
 0x25c   : > { %v1415_v63 = vsel %vm1287_vm11, %v4680_v0, 256  ;;  %v1416_v9 = vsel %vm1288_vm12, %v4684_v6, 256  ;;  %v5361_v39 = vsub.f32 %v4598_v45, %v863_v36  ;;  %v5367_v15 = vpop.f32.mrf.mxu1 }
 0x25d   : > { %2524 = vst.msk [vmem:[%s5339_s8] sm:$0xff] %vm2523_vm10, %v1514_v40  ;;  %vm1851_vm13 = vcmp.lt.s32.totalorder %v1415_v63, %v1416_v9  ;;  %vm2588_vm14 = vcmp.eq.s32.totalorder %v4680_v0, %v1514_v40  ;;  %vm2589_vm15 = vcmp.eq.s32.totalorder %v4684_v6, %v1514_v40  ;;  %v1529_v40 = vshll.u32 %v1528_v7, 16 }
 0x25e   : > { %3964 = vmatmul.msk.f32.vlgmr.msra.gmra.mxu2 %vm2588_vm14, %v7100_v11  ;;  %4028 = vmatmul.msk.f32.vlgmr.msra.gmra.mxu3 %vm2589_vm15, %v7100_v11  ;;  %v5358_v34 = vsel %vm1851_vm13, %v1415_v63, %v1416_v9  ;;  %7201 = vst [vmem:[#allocation15_spill] sm:$0xff] %v5361_v39  ;;  %v5371_v11 = vpop.f32.mrf.mxu0  ;;  %v1165_v36 = vmin.f32 %v5361_v39, %v5364_v62  ;;  %v330_v63 = vld [vmem:[%s4481_s25 + $0x1d0] sm:$0xff]  ;;  %v865_v7 = vmul.f32 2.0, %v5280_v37  ;;  %v868_v62 = vmul.f32 2.0, %v5304_v44  ;;  %v331_v39 = vld [vmem:[%s4481_s25 + $0x1d8] sm:$0xff] }
 0x25f   : > { %1163 = vmin.xlane.f32.xlu1 %v1162_v30  ;;  %v1854_v21 = vshra.s32 %v5358_v34, 16  ;;  %v1629_v30 = vand.u32 65535, %v4966_v47 }
 0x260   : > { %v1526_v58 = vpop.xlane.xlu0 %1525  ;;  %767 = vmatmul.f32.gmra.mxu1 %v330_v63  ;;  %558 = vmatmul.f32.gmra.mxu0 %v330_v63 }
 0x261   : > { %v1527_v32 = vcvt.f32.s32 %v1526_v58  ;;  %v5369_v26 = vcvt.s32.f32 %v1854_v21  ;;  %v1631_v47 = vcvt.s32.f32 %v1629_v30  ;;  %v1545_v30 = vshll.u32 %v1544_v31, 16 }
 0x262   : > { %v1122_v9 = vpop.xlane.xlu1 %1121 }
 0x263   : > { %v1530_v27 = vadd.s32 %v1529_v40, %v1527_v32  ;;  %vm1289_vm0 = vcmp.eq.f32.partialorder %v4946_v8, %v1122_v9  ;;  %vm1290_vm1 = vcmp.eq.f32.partialorder %v4949_v57, %v1122_v9  ;;  %1857 = vmin.xlane.f32.xlu2 %v5369_v26  ;;  %v7203_v8 = vmov 1.0  }
 0x264   : > { %v1417_v21 = vsel %vm1289_vm0, %v4680_v0, 256  ;;  %v1418_v58 = vsel %vm1290_vm1, %v4684_v6, 256  ;;  %v5399_v40 = vsub.f32 %v4598_v45, %v865_v7  ;;  %v5404_v63 = vpop.f32.mrf.mxu1  ;;  %v867_v7 = vmul.f32 2.0, %v5306_v51 }
 0x265   : > { %2525 = vst.msk [vmem:[%s5339_s8 + $0x8] sm:$0xff] %vm2523_vm10, %v1530_v27  ;;  %vm1867_vm2 = vcmp.lt.s32.totalorder %v1417_v21, %v1418_v58  ;;  %vm2590_vm3 = vcmp.eq.s32.totalorder %v4680_v0, %v1530_v27  ;;  %vm2591_vm4 = vcmp.eq.s32.totalorder %v4684_v6, %v1530_v27  ;;  %v5402_v27 = vsub.f32 %v4600_v46, %v866_v61 }
 0x266   : > { %3965 = vmatmul.msk.f32.gmra.mxu2 %vm2590_vm3, %v7203_v8  ;;  %4029 = vmatmul.msk.f32.gmra.mxu3 %vm2591_vm4, %v7203_v8  ;;  %v5391_v57 = vpop.xlane.xlu2 %1633  ;;  %v5393_v37 = vsel %vm1867_vm2, %v1417_v21, %v1418_v58  ;;  %v5408_v58 = vpop.f32.mrf.mxu0  ;;  %v1645_v61 = vand.u32 65535, %v4994_v1  ;;  %v1560_v51 = vcvt.f32.s32 %v5010_v33  ;;  %v5434_v1 = vsub.f32 %v4598_v45, %v867_v7 }
 0x267   : > { %7204 = vst [vmem:[#allocation40_spill] sm:$0xff] %v5393_v37  ;;  %1166 = vmin.xlane.f32.xlu1 %v1165_v36  ;;  %vm1635_vm5 = vcmp.eq.f32.partialorder %v4980_v29, %v5391_v57  ;;  %v1870_v18 = vshra.s32 %v5393_v37, 16  ;;  %v1168_v31 = vmin.f32 %v5399_v40, %v5402_v27 }
 0x268   : > { %v1542_v32 = vpop.xlane.xlu0 %1541  ;;  %v1636_v9 = vsel %vm1635_vm5, %v1631_v47, inf  ;;  %770 = vmatmul.f32.gmra.mxu1 %v331_v39  ;;  %561 = vmatmul.f32.gmra.mxu0 %v331_v39  ;;  %v1647_v33 = vcvt.s32.f32 %v1645_v61 }
 0x269   : > { %v1543_v21 = vcvt.f32.s32 %v1542_v32  ;;  %1637 = vmin.xlane.f32.xlu0 %v1636_v9  ;;  %v5406_v36 = vcvt.s32.f32 %v1870_v18 }
 0x26a   : > { %v1125_v29 = vpop.xlane.xlu1 %1124 }
 0x26b   : > { %v1546_v37 = vadd.s32 %v1545_v30, %v1543_v21  ;;  %vm1291_vm6 = vcmp.eq.f32.partialorder %v4970_v19, %v1125_v29  ;;  %vm1292_vm7 = vcmp.eq.f32.partialorder %v4973_v22, %v1125_v29  ;;  %1873 = vmin.xlane.f32.xlu2 %v5406_v36  ;;  %v5431_v22 = vsub.f32 %v4600_v46, %v868_v62 }
 0x26c   : > { %v1419_v47 = vsel %vm1291_vm6, %v4680_v0, 256  ;;  %v1420_v18 = vsel %vm1292_vm7, %v4684_v6, 256  ;;  %v5441_v9 = vpop.f32.mrf.mxu1  ;;  %v1561_v30 = vshll.u32 %v1560_v51, 16  ;;  %v7206_v51 = vld [vmem:[#allocation16_spill] sm:$0xff] }
 0x26d   : > { %2526 = vst.msk [vmem:[%s5339_s8 + $0x10] sm:$0xff] %vm2523_vm10, %v1546_v37  ;;  %vm1883_vm8 = vcmp.lt.s32.totalorder %v1419_v47, %v1420_v18  ;;  %vm2592_vm9 = vcmp.eq.s32.totalorder %v4680_v0, %v1546_v37  ;;  %vm2593_vm11 = vcmp.eq.s32.totalorder %v4684_v6, %v1546_v37  ;;  %v1171_v61 = vmin.f32 %v5434_v1, %v5431_v22 }
 0x26e   : > { %3966 = vmatmul.msk.f32.gmra.mxu2 %vm2592_vm9, %v7203_v8  ;;  %4030 = vmatmul.msk.f32.gmra.mxu3 %vm2593_vm11, %v7203_v8  ;;  %v5428_v19 = vpop.xlane.xlu2 %1649  ;;  %7205 = vst [vmem:[#allocation41_spill] sm:$0xff] %v5431_v22  ;;  %v5436_v44 = vsel %vm1883_vm8, %v1419_v47, %v1420_v18  ;;  %v5445_v29 = vpop.f32.mrf.mxu0  ;;  %v332_v47 = vld [vmem:[%s4481_s25 + $0x1e0] sm:$0xff] }
 0x26f   : > { %1169 = vmin.xlane.f32.xlu1 %v1168_v31  ;;  %vm1651_vm12 = vcmp.eq.f32.partialorder %v5008_v60, %v5428_v19  ;;  %v1886_v39 = vshra.s32 %v5436_v44, 16  ;;  %v870_v60 = vmul.f32 2.0, %v5330_v50  ;;  %v1661_v31 = vand.u32 65535, %v5024_v52 }
 0x270   : > { %v1558_v37 = vpop.xlane.xlu0 %1557  ;;  %v1652_v32 = vsel %vm1651_vm12, %v1647_v33, inf  ;;  %v869_v33 = vmul.f32 2.0, %v5334_v59  ;;  %773 = vmatmul.f32.gmra.mxu1 %v332_v47  ;;  %564 = vmatmul.f32.gmra.mxu0 %v332_v47  ;;  %v1576_v50 = vcvt.f32.s32 %v5040_v4 }
 0x271   : > { %v1559_v62 = vcvt.f32.s32 %v1558_v37  ;;  %1653 = vmin.xlane.f32.xlu0 %v1652_v32  ;;  %v5443_v21 = vcvt.s32.f32 %v1886_v39  ;;  %v1663_v52 = vcvt.s32.f32 %v1661_v31  ;;  %v5470_v32 = vsub.f32 %v4600_v46, %v870_v60 }
 0x272   : > { %v1128_v7 = vpop.xlane.xlu1 %1127  ;;  %v5473_v4 = vsub.f32 %v4598_v45, %v869_v33  ;;  %v1577_v31 = vshll.u32 %v1576_v50, 16  ;;  %v872_v33 = vmul.f32 2.0, %v5367_v15 }
 0x273   : > { %v1562_v18 = vadd.s32 %v1561_v30, %v1559_v62  ;;  %vm1293_vm13 = vcmp.eq.f32.partialorder %v4998_v38, %v1128_v7  ;;  %vm1294_vm14 = vcmp.eq.f32.partialorder %v7206_v51, %v1128_v7  ;;  %1889 = vmin.xlane.f32.xlu2 %v5443_v21 }
 0x274   : > { %v1421_v39 = vsel %vm1293_vm13, %v4680_v0, 256  ;;  %v1422_v37 = vsel %vm1294_vm14, %v4684_v6, 256  ;;  %v1174_v50 = vmin.f32 %v5473_v4, %v5470_v32 }
 0x275   : > { %2527 = vst.msk [vmem:[%s5339_s8 + $0x18] sm:$0xff] %vm2523_vm10, %v1562_v18  ;;  %vm1899_vm15 = vcmp.lt.s32.totalorder %v1421_v39, %v1422_v37  ;;  %vm2594_vm0 = vcmp.eq.s32.totalorder %v4680_v0, %v1562_v18  ;;  %vm2595_vm1 = vcmp.eq.s32.totalorder %v4684_v6, %v1562_v18  ;;  %v5478_v47 = vpop.f32.mrf.mxu1 }
 0x276   : > { %3967 = vmatmul.msk.f32.gmra.mxu2 %vm2594_vm0, %v7203_v8  ;;  %4031 = vmatmul.msk.f32.gmra.mxu3 %vm2595_vm1, %v7203_v8  ;;  %v5465_v38 = vpop.xlane.xlu2 %1665  ;;  %v5467_v59 = vsel %vm1899_vm15, %v1421_v39, %v1422_v37  ;;  %v5482_v60 = vpop.f32.mrf.mxu0  ;;  %v871_v39 = vmul.f32 2.0, %v5371_v11  ;;  %v333_v37 = vld [vmem:[%s4481_s25 + $0x1e8] sm:$0xff]  ;;  %v1592_v11 = vcvt.f32.s32 %v5070_v12 }
 0x277   : > { %1172 = vmin.xlane.f32.xlu1 %v1171_v61  ;;  %vm1667_vm2 = vcmp.eq.f32.partialorder %v5038_v2, %v5465_v38  ;;  %v1902_v30 = vshra.s32 %v5467_v59, 16  ;;  %v1677_v2 = vand.u32 65535, %v5054_v13  ;;  %v5505_v13 = vsub.f32 %v4600_v46, %v872_v33 }
 0x278   : > { %v1574_v62 = vpop.xlane.xlu0 %1573  ;;  %v1668_v7 = vsel %vm1667_vm2, %v1663_v52, inf  ;;  %v7207_v52 = vld [vmem:[#allocation17_spill] sm:$0xff]  ;;  %776 = vmatmul.f32.gmra.mxu1 %v333_v37  ;;  %567 = vmatmul.f32.gmra.mxu0 %v333_v37  ;;  %v5508_v15 = vsub.f32 %v4598_v45, %v871_v39  ;;  %v1593_v37 = vshll.u32 %v1592_v11, 16  ;;  %v7210_v11 = vld [vmem:[#allocation18_spill] sm:$0xff] }
 0x279   : > { %v1575_v18 = vcvt.f32.s32 %v1574_v62  ;;  %1669 = vmin.xlane.f32.xlu0 %v1668_v7  ;;  %v5480_v61 = vcvt.s32.f32 %v1902_v30  ;;  %7208 = vst [vmem:[#allocation16_spill] sm:$0xff] %v5505_v13  ;;  %v1679_v12 = vcvt.s32.f32 %v1677_v2 }
 0x27a   : > { %v1131_v51 = vpop.xlane.xlu1 %1130  ;;  %7209 = vst [vmem:[#allocation17_spill] sm:$0xff] %v5508_v15 }
 0x27b   : > { %v1578_v22 = vadd.s32 %v1577_v31, %v1575_v18  ;;  %vm1295_vm3 = vcmp.eq.f32.partialorder %v5028_v56, %v1131_v51  ;;  %vm1296_vm4 = vcmp.eq.f32.partialorder %v7207_v52, %v1131_v51  ;;  %1905 = vmin.xlane.f32.xlu2 %v5480_v61 }
 0x27c   : > { %v1423_v30 = vsel %vm1295_vm3, %v4680_v0, 256  ;;  %v1424_v62 = vsel %vm1296_vm4, %v4684_v6, 256 }
 0x27d   : > { %2528 = vst.msk [vmem:[%s5339_s8 + $0x20] sm:$0xff] %vm2523_vm10, %v1578_v22  ;;  %vm1915_vm5 = vcmp.lt.s32.totalorder %v1423_v30, %v1424_v62  ;;  %vm2596_vm6 = vcmp.eq.s32.totalorder %v4680_v0, %v1578_v22  ;;  %vm2597_vm7 = vcmp.eq.s32.totalorder %v4684_v6, %v1578_v22  ;;  %v5515_v51 = vpop.f32.mrf.mxu1 }
 0x27e   : > { %3968 = vmatmul.msk.f32.gmra.mxu2 %vm2596_vm6, %v7203_v8  ;;  %4032 = vmatmul.msk.f32.gmra.mxu3 %vm2597_vm7, %v7203_v8  ;;  %v5502_v56 = vpop.xlane.xlu2 %1681  ;;  %v5510_v7 = vsel %vm1915_vm5, %v1423_v30, %v1424_v62  ;;  %v5519_v39 = vpop.f32.mrf.mxu0  ;;  %v1693_v30 = vand.u32 65535, %v5084_v43  ;;  %v334_v62 = vld [vmem:[%s4481_s25 + $0x1f0] sm:$0xff] }
 0x27f   : > { %1175 = vmin.xlane.f32.xlu1 %v1174_v50  ;;  %vm1683_vm8 = vcmp.eq.f32.partialorder %v5068_v17, %v5502_v56  ;;  %v1918_v22 = vshra.s32 %v5510_v7, 16  ;;  %v1177_v50 = vmin.f32 %v5508_v15, %v5505_v13  ;;  %v874_v17 = vmul.f32 2.0, %v5404_v63  ;;  %v335_v13 = vld [vmem:[%s4481_s25 + $0x1f8] sm:$0xff] }
 0x280   : > { %v1590_v31 = vpop.xlane.xlu0 %1589  ;;  %v1684_v18 = vsel %vm1683_vm8, %v1679_v12, inf  ;;  %779 = vmatmul.f32.gmra.mxu1 %v334_v62  ;;  %570 = vmatmul.f32.gmra.mxu0 %v334_v62  ;;  %v1608_v63 = vcvt.f32.s32 %v5100_v20  ;;  %v1695_v43 = vcvt.s32.f32 %v1693_v30 }
 0x281   : > { %v1591_v33 = vcvt.f32.s32 %v1590_v31  ;;  %1685 = vmin.xlane.f32.xlu0 %v1684_v18  ;;  %v5517_v52 = vcvt.s32.f32 %v1918_v22  ;;  %v873_v22 = vmul.f32 2.0, %v5408_v58 }
 0x282   : > { %v1134_v2 = vpop.xlane.xlu1 %1133  ;;  %v1609_v30 = vshll.u32 %v1608_v63, 16 }
 0x283   : > { %v1594_v12 = vadd.s32 %v1593_v37, %v1591_v33  ;;  %vm1297_vm9 = vcmp.eq.f32.partialorder %v5058_v10, %v1134_v2  ;;  %vm1298_vm11 = vcmp.eq.f32.partialorder %v7210_v11, %v1134_v2  ;;  %1921 = vmin.xlane.f32.xlu2 %v5517_v52  ;;  %v5544_v37 = vsub.f32 %v4600_v46, %v874_v17 }
 0x284   : > { %v1425_v31 = vsel %vm1297_vm9, %v4680_v0, 256  ;;  %v1426_v18 = vsel %vm1298_vm11, %v4684_v6, 256  ;;  %v5547_v20 = vsub.f32 %v4598_v45, %v873_v22  ;;  %v876_v22 = vmul.f32 2.0, %v5441_v9 }
 0x285   : > { %2529 = vst.msk [vmem:[%s5339_s8 + $0x28] sm:$0xff] %vm2523_vm10, %v1594_v12  ;;  %vm1931_vm12 = vcmp.lt.s32.totalorder %v1425_v31, %v1426_v18  ;;  %vm2598_vm13 = vcmp.eq.s32.totalorder %v4680_v0, %v1594_v12  ;;  %vm2599_vm14 = vcmp.eq.s32.totalorder %v4684_v6, %v1594_v12  ;;  %v5552_v12 = vpop.f32.mrf.mxu1  ;;  %v1624_v9 = vcvt.f32.s32 %v5130_v28 }
 0x286   : > { %3969 = vmatmul.msk.f32.gmra.mxu2 %vm2598_vm13, %v7203_v8  ;;  %4033 = vmatmul.msk.f32.gmra.mxu3 %vm2599_vm14, %v7203_v8  ;;  %v5539_v10 = vpop.xlane.xlu2 %1697  ;;  %v5541_v58 = vsel %vm1931_vm12, %v1425_v31, %v1426_v18  ;;  %7211 = vst [vmem:[#allocation18_spill] sm:$0xff] %v5544_v37  ;;  %v5556_v17 = vpop.f32.mrf.mxu0  ;;  %v875_v18 = vmul.f32 2.0, %v5445_v29  ;;  %v1180_v63 = vmin.f32 %v5547_v20, %v5544_v37  ;;  %v7214_v37 = vld [vmem:[#allocation21_spill] sm:$0xff] }
 0x287   : > { %1178 = vmin.xlane.f32.xlu1 %v1177_v50  ;;  %vm1699_vm15 = vcmp.eq.f32.partialorder %v5098_v53, %v5539_v10  ;;  %v1934_v33 = vshra.s32 %v5541_v58, 16  ;;  %v1709_v53 = vand.u32 65535, %v5114_v24  ;;  %v5579_v24 = vsub.f32 %v4600_v46, %v876_v22 }
 0x288   : > { %v1606_v2 = vpop.xlane.xlu0 %1605  ;;  %v1700_v62 = vsel %vm1699_vm15, %v1695_v43, inf  ;;  %v7212_v43 = vld [vmem:[#allocation19_spill] sm:$0xff]  ;;  %782 = vmatmul.f32.gmra.mxu1 %v335_v13  ;;  %573 = vmatmul.f32.gmra.mxu0 %v335_v13  ;;  %v5582_v29 = vsub.f32 %v4598_v45, %v875_v18 }
 0x289   : > { %v1607_v11 = vcvt.f32.s32 %v1606_v2  ;;  %1701 = vmin.xlane.f32.xlu0 %v1700_v62  ;;  %v5554_v50 = vcvt.s32.f32 %v1934_v33  ;;  %v1711_v28 = vcvt.s32.f32 %v1709_v53 }
 0x28a   : > { %v1137_v31 = vpop.xlane.xlu1 %1136 }
 0x28b   : > { %v1610_v15 = vadd.s32 %v1609_v30, %v1607_v11  ;;  %vm1299_vm0 = vcmp.eq.f32.partialorder %v5088_v25, %v1137_v31  ;;  %vm1300_vm1 = vcmp.eq.f32.partialorder %v7212_v43, %v1137_v31  ;;  %1937 = vmin.xlane.f32.xlu2 %v5554_v50  ;;  %v1625_v31 = vshll.u32 %v1624_v9, 16 }
 0x28c   : > { %v1427_v33 = vsel %vm1299_vm0, %v4680_v0, 256  ;;  %v1428_v2 = vsel %vm1300_vm1, %v4684_v6, 256  ;;  %v877_v9 = vmul.f32 2.0, %v5482_v60 }
 0x28d   : > { %2530 = vst.msk [vmem:[%s5339_s8 + $0x30] sm:$0xff] %vm2523_vm10, %v1610_v15  ;;  %vm1947_vm2 = vcmp.lt.s32.totalorder %v1427_v33, %v1428_v2  ;;  %vm2600_vm3 = vcmp.eq.s32.totalorder %v4680_v0, %v1610_v15  ;;  %vm2601_vm4 = vcmp.eq.s32.totalorder %v4684_v6, %v1610_v15  ;;  %v5589_v11 = vpop.f32.mrf.mxu1 }
 0x28e   : > { %3970 = vmatmul.msk.f32.gmra.mxu2 %vm2600_vm3, %v7203_v8  ;;  %4034 = vmatmul.msk.f32.gmra.mxu3 %vm2601_vm4, %v7203_v8  ;;  %v5576_v25 = vpop.xlane.xlu2 %1713  ;;  %v5584_v13 = vsel %vm1947_vm2, %v1427_v33, %v1428_v2  ;;  %v5593_v18 = vpop.f32.mrf.mxu0  ;;  %v1725_v33 = vand.u32 65535, %v5144_v42  ;;  %v5616_v60 = vsub.f32 %v4598_v45, %v877_v9  ;;  %v880_v9 = vmul.f32 2.0, %v5515_v51 }
 0x28f   : > { %1181 = vmin.xlane.f32.xlu1 %v1180_v63  ;;  %vm1715_vm5 = vcmp.eq.f32.partialorder %v5128_v16, %v5576_v25  ;;  %v1950_v15 = vshra.s32 %v5584_v13, 16  ;;  %v1183_v63 = vmin.f32 %v5582_v29, %v5579_v24  ;;  %v878_v16 = vmul.f32 2.0, %v5478_v47 }
 0x290   : > { %v1622_v62 = vpop.xlane.xlu0 %1621  ;;  %v1716_v30 = vsel %vm1715_vm5, %v1711_v28, inf  ;;  %v7213_v28 = vld [vmem:[#allocation20_spill] sm:$0xff]  ;;  %v1727_v47 = vcvt.s32.f32 %v1725_v33  ;;  %7215 = vst [vmem:[#allocation19_spill] sm:$0xff] %v5616_v60 }
 0x291   : > { %v1623_v22 = vcvt.f32.s32 %v1622_v62  ;;  %1717 = vmin.xlane.f32.xlu0 %v1716_v30  ;;  %v5591_v43 = vcvt.s32.f32 %v1950_v15  ;;  %v5619_v30 = vsub.f32 %v4600_v46, %v878_v16  ;;  %v1741_v16 = vand.u32 65535, %v5169_v3 }
 0x292   : > { %v1140_v53 = vpop.xlane.xlu1 %1139  ;;  %v5646_v3 = vsub.f32 %v4600_v46, %v880_v9 }
 0x293   : > { %v1626_v2 = vadd.s32 %v1625_v31, %v1623_v22  ;;  %vm1301_vm6 = vcmp.eq.f32.partialorder %v7213_v28, %v1140_v53  ;;  %vm1302_vm7 = vcmp.eq.f32.partialorder %v7214_v37, %v1140_v53  ;;  %1953 = vmin.xlane.f32.xlu2 %v5591_v43  ;;  %7216 = vst [vmem:[#allocation20_spill] sm:$0xff] %v5619_v30  ;;  %v879_v28 = vmul.f32 2.0, %v5519_v39 }
 0x294   : > { %v1429_v15 = vsel %vm1301_vm6, %v4680_v0, 256  ;;  %v1430_v62 = vsel %vm1302_vm7, %v4684_v6, 256 }
 0x295   : > { %2531 = vst.msk [vmem:[%s5339_s8 + $0x38] sm:$0xff] %vm2523_vm10, %v1626_v2  ;;  %vm1963_vm8 = vcmp.lt.s32.totalorder %v1429_v15, %v1430_v62  ;;  %vm2602_vm9 = vcmp.eq.s32.totalorder %v4680_v0, %v1626_v2  ;;  %vm2603_vm11 = vcmp.eq.s32.totalorder %v4684_v6, %v1626_v2  ;;  %v5624_v53 = vpop.f32.mrf.mxu1  ;;  %v5643_v51 = vsub.f32 %v4598_v45, %v879_v28 }
 0x296   : > { %3971 = vmatmul.msk.f32.gmra.mxu2 %vm2602_vm9, %v7203_v8  ;;  %4035 = vmatmul.msk.f32.gmra.mxu3 %vm2603_vm11, %v7203_v8  ;;  %v5611_v42 = vpop.xlane.xlu2 %1729  ;;  %v5613_v37 = vsel %vm1963_vm8, %v1429_v15, %v1430_v62  ;;  %v5628_v33 = vpop.f32.mrf.mxu0  ;;  %v1186_v15 = vmin.f32 %v5616_v60, %v5619_v30 }
 0x297   : > { %1184 = vmin.xlane.f32.xlu1 %v1183_v63  ;;  %vm1731_vm12 = vcmp.eq.f32.partialorder %v5157_v41, %v5611_v42  ;;  %v1966_v31 = vshra.s32 %v5613_v37, 16  ;;  %v7217_v41 = vld [vmem:[#allocation22_spill] sm:$0xff]  ;;  %7218 = vst [vmem:[#allocation21_spill] sm:$0xff] %v5643_v51  ;;  %v1189_v9 = vmin.f32 %v5643_v51, %v5646_v3 }
 0x298   : > { %v1732_v22 = vsel %vm1731_vm12, %v1727_v47, inf  ;;  %7219 = vst [vmem:[#allocation22_spill] sm:$0xff] %v5646_v3 }
 0x299   : > { %1733 = vmin.xlane.f32.xlu0 %v1732_v22  ;;  %v5626_v2 = vcvt.s32.f32 %v1966_v31 }
 0x29a   : > { %v1143_v63 = vpop.xlane.xlu1 %1142 }
 0x29b   : > { %vm1303_vm13 = vcmp.eq.f32.partialorder %v5147_v14, %v1143_v63  ;;  %vm1304_vm14 = vcmp.eq.f32.partialorder %v7217_v41, %v1143_v63  ;;  %1969 = vmin.xlane.f32.xlu2 %v5626_v2  ;;  %v1743_v14 = vcvt.s32.f32 %v1741_v16  ;;  %v1757_v16 = vand.u32 65535, %v5194_v55 }
 0x29c   : > { %v1431_v62 = vsel %vm1303_vm13, %v4680_v0, 256  ;;  %v1432_v47 = vsel %vm1304_vm14, %v4684_v6, 256 }
 0x29d   : > { %vm1979_vm15 = vcmp.lt.s32.totalorder %v1431_v62, %v1432_v47  ;;  %v5653_v41 = vpop.f32.mrf.mxu1  ;;  %v1759_v3 = vcvt.s32.f32 %v1757_v16 }
 0x29e   : > { %v5640_v31 = vpop.xlane.xlu2 %1745  ;;  %v5648_v39 = vsel %vm1979_vm15, %v1431_v62, %v1432_v47  ;;  %v5657_v28 = vpop.f32.mrf.mxu0  ;;  %v7221_v62 = vld [vmem:[#allocation24_spill] sm:$0xff]  ;;  %v882_v47 = vmul.f32 2.0, %v5552_v12 }
 0x29f   : > { %1187 = vmin.xlane.f32.xlu1 %v1186_v15  ;;  %vm1747_vm0 = vcmp.eq.f32.partialorder %v5182_v48, %v5640_v31  ;;  %v1982_v22 = vshra.s32 %v5648_v39, 16  ;;  %v7220_v15 = vld [vmem:[#allocation23_spill] sm:$0xff]  ;;  %v881_v48 = vmul.f32 2.0, %v5556_v17 }
 0x2a0   : > { %v1748_v63 = vsel %vm1747_vm0, %v1743_v14, inf }
 0x2a1   : > { %1749 = vmin.xlane.f32.xlu0 %v1748_v63  ;;  %v5655_v30 = vcvt.s32.f32 %v1982_v22  ;;  %v5674_v55 = vsub.f32 %v4598_v45, %v881_v48  ;;  %v883_v48 = vmul.f32 2.0, %v5593_v18 }
 0x2a2   : > { %v1146_v60 = vpop.xlane.xlu1 %1145 }
 0x2a3   : > { %vm1305_vm1 = vcmp.eq.f32.partialorder %v7220_v15, %v1146_v60  ;;  %vm1306_vm2 = vcmp.eq.f32.partialorder %v7221_v62, %v1146_v60  ;;  %1985 = vmin.xlane.f32.xlu2 %v5655_v30  ;;  %7223 = vst [vmem:[#allocation24_spill] sm:$0xff] %v5674_v55  ;;  %v5677_v60 = vsub.f32 %v4600_v46, %v882_v47  ;;  %v1773_v47 = vand.u32 65535, %v5219_v54 }
 0x2a4   : > { %v1433_v14 = vsel %vm1305_vm1, %v4680_v0, 256  ;;  %v1434_v22 = vsel %vm1306_vm2, %v4684_v6, 256 }
 0x2a5   : > { %vm1995_vm3 = vcmp.lt.s32.totalorder %v1433_v14, %v1434_v22  ;;  %7224 = vst [vmem:[#allocation42_spill] sm:$0xff] %v5677_v60  ;;  %v5682_v15 = vpop.f32.mrf.mxu1  ;;  %v1775_v18 = vcvt.s32.f32 %v1773_v47  ;;  %v1789_v47 = vand.u32 65535, %v5244_v23 }
 0x2a6   : > { %v5669_v63 = vpop.xlane.xlu2 %1761  ;;  %v5671_v51 = vsel %vm1995_vm3, %v1433_v14, %v1434_v22  ;;  %v5686_v16 = vpop.f32.mrf.mxu0  ;;  %v884_v14 = vmul.f32 2.0, %v5589_v11  ;;  %v7226_v22 = vld [vmem:[#allocation25_spill] sm:$0xff]  ;;  %v5701_v11 = vsub.f32 %v4598_v45, %v883_v48 }
 0x2a7   : > { %7222 = vst [vmem:[#allocation23_spill] sm:$0xff] %v5671_v51  ;;  %1190 = vmin.xlane.f32.xlu1 %v1189_v9  ;;  %vm1763_vm4 = vcmp.eq.f32.partialorder %v5207_v35, %v5669_v63  ;;  %v1998_v12 = vshra.s32 %v5671_v51, 16  ;;  %v7227_v35 = vld [vmem:[#allocation26_spill] sm:$0xff]  ;;  %v1791_v23 = vcvt.s32.f32 %v1789_v47  ;;  %v887_v47 = vmul.f32 2.0, %v5657_v28 }
 0x2a8   : > { %v1764_v17 = vsel %vm1763_vm4, %v1759_v3, inf  ;;  %v1192_v3 = vmin.f32 %v5674_v55, %v5677_v60  ;;  %7229 = vst [vmem:[#allocation26_spill] sm:$0xff] %v5701_v11  ;;  %v5704_v54 = vsub.f32 %v4600_v46, %v884_v14 }
 0x2a9   : > { %1765 = vmin.xlane.f32.xlu0 %v1764_v17  ;;  %v5684_v62 = vcvt.s32.f32 %v1998_v12 }
 0x2aa   : > { %v1149_v9 = vpop.xlane.xlu1 %1148  ;;  %7230 = vst [vmem:[#allocation44_spill] sm:$0xff] %v5704_v54  ;;  %v1195_v14 = vmin.f32 %v5701_v11, %v5704_v54 }
 0x2ab   : > { %7225 = vst [vmem:[#allocation43_spill] sm:$0xff] %v5684_v62  ;;  %vm1307_vm5 = vcmp.eq.f32.partialorder %v7226_v22, %v1149_v9  ;;  %vm1308_vm6 = vcmp.eq.f32.partialorder %v7227_v35, %v1149_v9  ;;  %2001 = vmin.xlane.f32.xlu2 %v5684_v62  ;;  %v7249_v62 = vld [vmem:[#allocation32_spill] sm:$0xff] }
 0x2ac   : > { %v1435_v12 = vsel %vm1307_vm5, %v4680_v0, 256  ;;  %v1436_v17 = vsel %vm1308_vm6, %v4684_v6, 256 }
 0x2ad   : > { %vm2011_vm7 = vcmp.lt.s32.totalorder %v1435_v12, %v1436_v17 }
 0x2ae   : > { %v5698_v51 = vpop.xlane.xlu2 %1777  ;;  %v5706_v9 = vsel %vm2011_vm7, %v1435_v12, %v1436_v17  ;;  %v5713_v55 = vpop.f32.mrf.mxu0  ;;  %v7234_v17 = vld [vmem:[#allocation28_spill] sm:$0xff] }
 0x2af   : > { %7228 = vst [vmem:[#allocation25_spill] sm:$0xff] %v5698_v51  ;;  %1193 = vmin.xlane.f32.xlu1 %v1192_v3  ;;  %vm1779_vm8 = vcmp.eq.f32.partialorder %v5232_v49, %v5698_v51  ;;  %v2014_v22 = vshra.s32 %v5706_v9, 16  ;;  %v5718_v12 = vpop.f32.mrf.mxu1  ;;  %v7233_v3 = vld [vmem:[#allocation27_spill] sm:$0xff]  ;;  %v885_v49 = vmul.f32 2.0, %v5628_v33  ;;  %v7243_v51 = vld [vmem:[#allocation30_spill] sm:$0xff] }
 0x2b0   : > { %7231 = vst [vmem:[#allocation45_spill] sm:$0xff] %v5706_v9  ;;  %v1780_v35 = vsel %vm1779_vm8, %v1775_v18, inf  ;;  %v886_v18 = vmul.f32 2.0, %v5624_v53  ;;  %v7239_v33 = vld [vmem:[#allocation31_spill] sm:$0xff] }
 0x2b1   : > { %1781 = vmin.xlane.f32.xlu0 %v1780_v35  ;;  %v5711_v60 = vcvt.s32.f32 %v2014_v22 }
 0x2b2   : > { %v1152_v48 = vpop.xlane.xlu1 %1151 }
 0x2b3   : > { %7232 = vst [vmem:[#allocation46_spill] sm:$0xff] %v5711_v60  ;;  %vm1309_vm9 = vcmp.eq.f32.partialorder %v7233_v3, %v1152_v48  ;;  %vm1310_vm11 = vcmp.eq.f32.partialorder %v7234_v17, %v1152_v48  ;;  %2017 = vmin.xlane.f32.xlu2 %v5711_v60  ;;  %v5732_v3 = vsub.f32 %v4598_v45, %v885_v49 }
 0x2b4   : > { %v1437_v22 = vsel %vm1309_vm9, %v4680_v0, 256  ;;  %v1438_v35 = vsel %vm1310_vm11, %v4684_v6, 256  ;;  %v5735_v48 = vsub.f32 %v4600_v46, %v886_v18  ;;  %v7242_v18 = vld [vmem:[#allocation29_spill] sm:$0xff] }
 0x2b5   : > { %vm2027_vm12 = vcmp.lt.s32.totalorder %v1437_v22, %v1438_v35  ;;  %7237 = vst [vmem:[#allocation47_spill] sm:$0xff] %v5732_v3 }
 0x2b6   : > { %v5727_v54 = vpop.xlane.xlu2 %1793  ;;  %v5729_v11 = vsel %vm2027_vm12, %v1437_v22, %v1438_v35  ;;  %7238 = vst [vmem:[#allocation48_spill] sm:$0xff] %v5735_v48  ;;  %v7241_v22 = vld [vmem:[#allocation11_spill] sm:$0xff]  ;;  %v5745_v35 = vpop.f32.mrf.mxu0 }
 0x2b7   : > { %7235 = vst [vmem:[#allocation27_spill] sm:$0xff] %v5727_v54  ;;  %1196 = vmin.xlane.f32.xlu1 %v1195_v14  ;;  %vm1795_vm13 = vcmp.eq.f32.partialorder %v7239_v33, %v5727_v54  ;;  %v2030_v53 = vshra.s32 %v5729_v11, 16  ;;  %v888_v14 = vmul.f32 2.0, %v5653_v41  ;;  %v1805_v49 = vand.u32 65535, %v7241_v22  ;;  %v5754_v28 = vpop.f32.mrf.mxu1  ;;  %v7248_v54 = vld [vmem:[#allocation12_spill] sm:$0xff] }
 0x2b8   : > { %7236 = vst [vmem:[#allocation28_spill] sm:$0xff] %v5729_v11  ;;  %v1796_v17 = vsel %vm1795_vm13, %v1791_v23, inf  ;;  %v1198_v23 = vmin.f32 %v5732_v3, %v5735_v48 }
 0x2b9   : > { %1797 = vmin.xlane.f32.xlu0 %v1796_v17  ;;  %v5740_v60 = vcvt.s32.f32 %v2030_v53  ;;  %v5759_v17 = vsub.f32 %v4598_v45, %v887_v47  ;;  %v5762_v22 = vsub.f32 %v4600_v46, %v888_v14  ;;  %v1821_v14 = vand.u32 65535, %v7248_v54 }
 0x2ba   : > { %v1155_v9 = vpop.xlane.xlu1 %1154 }
 0x2bb   : > { %7240 = vst [vmem:[#allocation31_spill] sm:$0xff] %v5740_v60  ;;  %vm1311_vm14 = vcmp.eq.f32.partialorder %v7242_v18, %v1155_v9  ;;  %vm1312_vm15 = vcmp.eq.f32.partialorder %v7243_v51, %v1155_v9  ;;  %2033 = vmin.xlane.f32.xlu2 %v5740_v60  ;;  %v1807_v51 = vcvt.s32.f32 %v1805_v49  ;;  %v7246_v18 = vld [vmem:[#allocation34_spill] sm:$0xff]  ;;  %v1201_v47 = vmin.f32 %v5759_v17, %v5762_v22  ;;  %v7250_v49 = vld [vmem:[#allocation33_spill] sm:$0xff] }
 0x2bc   : > { %v1439_v33 = vsel %vm1311_vm14, %v4680_v0, 256  ;;  %v1440_v53 = vsel %vm1312_vm15, %v4684_v6, 256  ;;  %7244 = vst [vmem:[#allocation11_spill] sm:$0xff] %v5759_v17  ;;  %v1823_v54 = vcvt.s32.f32 %v1821_v14 }
 0x2bd   : > { %vm2043_vm0 = vcmp.lt.s32.totalorder %v1439_v33, %v1440_v53  ;;  %7245 = vst [vmem:[#allocation29_spill] sm:$0xff] %v5762_v22 }
 0x2be   : > { %v5756_v41 = vpop.xlane.xlu2 %1809  ;;  %v5764_v9 = vsel %vm2043_vm0, %v1439_v33, %v1440_v53  ;;  %v890_v33 = vmul.f32 2.0, %v5682_v15  ;;  %v5781_v53 = vpop.f32.mrf.mxu0  ;;  %v7253_v15 = vld [vmem:[#allocation37_spill] sm:$0xff] }
 0x2bf   : > { %1199 = vmin.xlane.f32.xlu1 %v1198_v23  ;;  %vm1811_vm1 = vcmp.eq.f32.partialorder %v7246_v18, %v5756_v41  ;;  %v2046_v48 = vshra.s32 %v5764_v9, 16  ;;  %v889_v23 = vmul.f32 2.0, %v5686_v16 }
 0x2c0   : > { %v1812_v3 = vsel %vm1811_vm1, %v1807_v51, inf  ;;  %v5791_v16 = vsub.f32 %v4600_v46, %v890_v33  ;;  %v7257_v33 = vld [vmem:[#allocation36_spill] sm:$0xff] }
 0x2c1   : > { %1813 = vmin.xlane.f32.xlu0 %v1812_v3  ;;  %v5769_v60 = vcvt.s32.f32 %v2046_v48 }
 0x2c2   : > { %v1158_v11 = vpop.xlane.xlu1 %1157  ;;  %7252 = vst [vmem:[#allocation12_spill] sm:$0xff] %v5791_v16 }
 0x2c3   : > { %7247 = vst [vmem:[#allocation30_spill] sm:$0xff] %v5769_v60  ;;  %vm1313_vm2 = vcmp.eq.f32.partialorder %v7249_v62, %v1158_v11  ;;  %vm1314_vm3 = vcmp.eq.f32.partialorder %v7250_v49, %v1158_v11  ;;  %2049 = vmin.xlane.f32.xlu2 %v5769_v60  ;;  %v756_v62 = vpop.f32.mrf.mxu1  ;;  %v5788_v11 = vsub.f32 %v4598_v45, %v889_v23  ;;  %v7256_v60 = vld [vmem:[#allocation35_spill] sm:$0xff] }
 0x2c4   : > { %v1441_v3 = vsel %vm1313_vm2, %v4680_v0, 256  ;;  %v1442_v48 = vsel %vm1314_vm3, %v4684_v6, 256 }
 0x2c5   : > { %vm2059_vm4 = vcmp.lt.s32.totalorder %v1441_v3, %v1442_v48  ;;  %7251 = vst [vmem:[#allocation34_spill] sm:$0xff] %v5788_v11 }
 0x2c6   : > { %v5783_v51 = vpop.xlane.xlu2 %1825  ;;  %v5785_v18 = vsel %vm2059_vm4, %v1441_v3, %v1442_v48  ;;  %v891_v3 = vmul.f32 2.0, %v5713_v55  ;;  %v7255_v48 = vld [vmem:[#allocation13_spill] sm:$0xff] }
 0x2c7   : > { %1202 = vmin.xlane.f32.xlu1 %v1201_v47  ;;  %vm1827_vm5 = vcmp.eq.f32.partialorder %v7253_v15, %v5783_v51  ;;  %v2062_v49 = vshra.s32 %v5785_v18, 16  ;;  %v892_v47 = vmul.f32 2.0, %v5718_v12  ;;  %v1837_v23 = vand.u32 65535, %v7255_v48  ;;  %v5818_v48 = vpop.f32.mrf.mxu0 }
 0x2c8   : > { %v1828_v22 = vsel %vm1827_vm5, %v1823_v54, inf  ;;  %v1204_v15 = vmin.f32 %v5788_v11, %v5791_v16  ;;  %v5811_v55 = vsub.f32 %v4598_v45, %v891_v3 }
 0x2c9   : > { %1829 = vmin.xlane.f32.xlu0 %v1828_v22  ;;  %v5796_v17 = vcvt.s32.f32 %v2062_v49  ;;  %v5814_v12 = vsub.f32 %v4600_v46, %v892_v47 }
 0x2ca   : > { %v1161_v14 = vpop.xlane.xlu1 %1160  ;;  %7258 = vst [vmem:[#allocation33_spill] sm:$0xff] %v5811_v55 }
 0x2cb   : > { %7254 = vst [vmem:[#allocation32_spill] sm:$0xff] %v5796_v17  ;;  %vm1315_vm6 = vcmp.eq.f32.partialorder %v7256_v60, %v1161_v14  ;;  %vm1316_vm7 = vcmp.eq.f32.partialorder %v7257_v33, %v1161_v14  ;;  %2065 = vmin.xlane.f32.xlu2 %v5796_v17  ;;  %v1839_v60 = vcvt.s32.f32 %v1837_v23  ;;  %v5823_v11 = vpop.f32.mrf.mxu1  ;;  %v1207_v47 = vmin.f32 %v5811_v55, %v5814_v12 }
 0x2cc   : > { %v1443_v22 = vsel %vm1315_vm6, %v4680_v0, 256  ;;  %v1444_v54 = vsel %vm1316_vm7, %v4684_v6, 256  ;;  %7259 = vst [vmem:[#allocation37_spill] sm:$0xff] %v5814_v12  ;;  %v1853_v23 = vand.u32 65535, %v5358_v34 }
 0x2cd   : > { %vm2075_vm8 = vcmp.lt.s32.totalorder %v1443_v22, %v1444_v54 }
 0x2ce   : > { %v5808_v49 = vpop.xlane.xlu2 %1841  ;;  %v5816_v14 = vsel %vm2075_vm8, %v1443_v22, %v1444_v54  ;;  %v7262_v22 = vld [vmem:[#allocation14_spill] sm:$0xff]  ;;  %v894_v54 = vmul.f32 2.0, %v5754_v28  ;;  %v1855_v12 = vcvt.s32.f32 %v1853_v23 }
 0x2cf   : > { %7260 = vst [vmem:[#allocation13_spill] sm:$0xff] %v5816_v14  ;;  %1205 = vmin.xlane.f32.xlu1 %v1204_v15  ;;  %vm1843_vm9 = vcmp.eq.f32.partialorder %v5332_v5, %v5808_v49  ;;  %v2078_v33 = vshra.s32 %v5816_v14, 16  ;;  %v7263_v15 = vld [vmem:[#allocation38_spill] sm:$0xff]  ;;  %v893_v5 = vmul.f32 2.0, %v5745_v35  ;;  %v7270_v14 = vld [vmem:[#allocation39_spill] sm:$0xff] }
 0x2d0   : > { %v1844_v16 = vsel %vm1843_vm9, %v1839_v60, inf }
 0x2d1   : > { %1845 = vmin.xlane.f32.xlu0 %v1844_v16  ;;  %v5825_v3 = vcvt.s32.f32 %v2078_v33  ;;  %v5842_v34 = vsub.f32 %v4598_v45, %v893_v5  ;;  %v7268_v5 = vld [vmem:[#allocation40_spill] sm:$0xff] }
 0x2d2   : > { %v1164_v17 = vpop.xlane.xlu1 %1163 }
 0x2d3   : > { %7261 = vst [vmem:[#allocation35_spill] sm:$0xff] %v5825_v3  ;;  %vm1317_vm11 = vcmp.eq.f32.partialorder %v7262_v22, %v1164_v17  ;;  %vm1318_vm12 = vcmp.eq.f32.partialorder %v7263_v15, %v1164_v17  ;;  %2081 = vmin.xlane.f32.xlu2 %v5825_v3  ;;  %v5845_v17 = vsub.f32 %v4600_v46, %v894_v54  ;;  %v5850_v22 = vpop.f32.mrf.mxu0  ;;  %v1640_v15 = vcvt.f32.s32 %v5391_v57  ;;  %v5856_v3 = vpop.f32.mrf.mxu1  ;;  %v7269_v54 = vld [vmem:[#allocation15_spill] sm:$0xff] }
 0x2d4   : > { %v1445_v16 = vsel %vm1317_vm11, %v4680_v0, 256  ;;  %v1446_v60 = vsel %vm1318_vm12, %v4684_v6, 256  ;;  %7265 = vst [vmem:[#allocation14_spill] sm:$0xff] %v5842_v34  ;;  %v895_v57 = vmul.f32 2.0, %v5781_v53 }
 0x2d5   : > { %vm2091_vm13 = vcmp.lt.s32.totalorder %v1445_v16, %v1446_v60  ;;  %7266 = vst [vmem:[#allocation38_spill] sm:$0xff] %v5845_v17 }
 0x2d6   : > { %v5837_v33 = vpop.xlane.xlu2 %1857  ;;  %v5839_v55 = vsel %vm2091_vm13, %v1445_v16, %v1446_v60  ;;  %v896_v16 = vmul.f32 2.0, %v756_v62  ;;  %v1869_v60 = vand.u32 65535, %v7268_v5  ;;  %v5874_v53 = vsub.f32 %v4598_v45, %v895_v57 }
 0x2d7   : > { %7264 = vst [vmem:[#allocation36_spill] sm:$0xff] %v5839_v55  ;;  %1208 = vmin.xlane.f32.xlu1 %v1207_v47  ;;  %vm1859_vm14 = vcmp.eq.f32.partialorder %v5369_v26, %v5837_v33  ;;  %v2094_v35 = vshra.s32 %v5839_v55, 16  ;;  %v1210_v26 = vmin.f32 %v5842_v34, %v5845_v17  ;;  %v1885_v57 = vand.u32 65535, %v5436_v44 }
 0x2d8   : > { %v1860_v28 = vsel %vm1859_vm14, %v1855_v12, inf }
 0x2d9   : > { %1861 = vmin.xlane.f32.xlu0 %v1860_v28  ;;  %v5853_v23 = vcvt.s32.f32 %v2094_v35  ;;  %v1641_v28 = vshll.u32 %v1640_v15, 16 }
 0x2da   : > { %v1167_v47 = vpop.xlane.xlu1 %1166 }
 0x2db   : > { %7267 = vst [vmem:[#allocation49_spill] sm:$0xff] %v5853_v23  ;;  %vm1319_vm15 = vcmp.eq.f32.partialorder %v7269_v54, %v1167_v47  ;;  %vm1320_vm0 = vcmp.eq.f32.partialorder %v7270_v14, %v1167_v47  ;;  %2097 = vmin.xlane.f32.xlu2 %v5853_v23  ;;  %v5869_v14 = vsub.f32 %v4600_v46, %v896_v16  ;;  %v1871_v47 = vcvt.s32.f32 %v1869_v60 }
 0x2dc   : > { %v1447_v12 = vsel %vm1319_vm15, %v4680_v0, 256  ;;  %v1448_v35 = vsel %vm1320_vm0, %v4684_v6, 256  ;;  %v1638_v62 = vpop.xlane.xlu0 %1637 }
 0x2dd   : > { %vm2107_vm1 = vcmp.lt.s32.totalorder %v1447_v12, %v1448_v35  ;;  %v1639_v5 = vcvt.f32.s32 %v1638_v62  ;;  %7271 = vst [vmem:[#allocation40_spill] sm:$0xff] %v5869_v14  ;;  %v1656_v62 = vcvt.f32.s32 %v5428_v19  ;;  %v897_v19 = vmul.f32 2.0, %v5818_v48  ;;  %v4159_v48 = vld [vmem:[%s4481_s25] sm:$0xff] }
 0x2de   : > { %v5866_v55 = vpop.xlane.xlu2 %1873  ;;  %v5871_v54 = vsel %vm2107_vm1, %v1447_v12, %v1448_v35  ;;  %v5890_v12 = vpop.f32.mrf.mxu0 }
 0x2df   : > { %v1642_v17 = vadd.s32 %v1641_v28, %v1639_v5  ;;  %1211 = vmin.xlane.f32.xlu1 %v1210_v26  ;;  %vm1875_vm2 = vcmp.eq.f32.partialorder %v5406_v36, %v5866_v55  ;;  %v2110_v15 = vshra.s32 %v5871_v54, 16  ;;  %v1657_v28 = vshll.u32 %v1656_v62, 16 }
 0x2e0   : > { %v1876_v34 = vsel %vm1875_vm2, %v1871_v47, inf }
 0x2e1   : > { %2532 = vst.msk [vmem:[%s5339_s8 + $0x40] sm:$0xff] %vm2523_vm10, %v1642_v17  ;;  %v2989_v16 = vpop.f32.mrf.mxu2  ;;  %v3198_v23 = vpop.f32.mrf.mxu3  ;;  %1877 = vmin.xlane.f32.xlu0 %v1876_v34  ;;  %vm2604_vm3 = vcmp.eq.s32.totalorder %v4680_v0, %v1642_v17  ;;  %vm2605_vm4 = vcmp.eq.s32.totalorder %v4684_v6, %v1642_v17  ;;  %v5884_v60 = vcvt.s32.f32 %v2110_v15  ;;  %v1213_v34 = vmin.f32 %v5874_v53, %v5869_v14 }
 0x2e2   : > { %v3199_v26 = vadd.f32 %v3198_v23, %v2989_v16  ;;  %3972 = vmatmul.msk.f32.gmra.mxu2 %vm2604_vm3, %v7203_v8  ;;  %4036 = vmatmul.msk.f32.gmra.mxu3 %vm2605_vm4, %v7203_v8  ;;  %v1170_v36 = vpop.xlane.xlu1 %1169  ;;  %v898_v17 = vmul.f32 2.0, %v5823_v11  ;;  %v5910_v15 = vsub.f32 %v4598_v45, %v897_v19  ;;  %v1887_v16 = vcvt.s32.f32 %v1885_v57 }
 0x2e3   : > { %vm1321_vm5 = vcmp.eq.f32.partialorder %v5399_v40, %v1170_v36  ;;  %vm1322_vm6 = vcmp.eq.f32.partialorder %v5402_v27, %v1170_v36  ;;  %2113 = vmin.xlane.f32.xlu2 %v5884_v60  ;;  %v5905_v27 = vpop.f32.mrf.mxu1  ;;  %v1672_v19 = vcvt.f32.s32 %v5465_v38  ;;  %v899_v38 = vmul.f32 2.0, %v5850_v22 }
 0x2e4   : > { %3390 = vst [vmem:[%s5899_s28] sm:$0xff] %v3199_v26  ;;  %v3454_v23 = vsub.f32 %v3199_v26, %v4159_v48  ;;  %v1449_v44 = vsel %vm1321_vm5, %v4680_v0, 256  ;;  %v1450_v35 = vsel %vm1322_vm6, %v4684_v6, 256  ;;  %v1654_v40 = vpop.xlane.xlu0 %1653  ;;  %v5915_v14 = vsub.f32 %v4600_v46, %v898_v17 }
 0x2e5   : > { %vm2123_vm7 = vcmp.lt.s32.totalorder %v1449_v44, %v1450_v35  ;;  %v1655_v5 = vcvt.f32.s32 %v1654_v40 }
 0x2e6   : > { %v3518_v47 = vadd.f32 %v4159_v48, %v3454_v23  ;;  %v5907_v11 = vpop.xlane.xlu2 %1889  ;;  %v5912_v26 = vsel %vm2123_vm7, %v1449_v44, %v1450_v35  ;;  %7272 = vst [vmem:[#allocation15_spill] sm:$0xff] %v5915_v14  ;;  %v1901_v44 = vand.u32 65535, %v5467_v59  ;;  %v7273_v35 = vld [vmem:[#allocation41_spill] sm:$0xff]  ;;  %v1216_v40 = vmin.f32 %v5910_v15, %v5915_v14  ;;  %v5945_v59 = vpop.f32.mrf.mxu0 }
 0x2e7   : > { %v1658_v36 = vadd.s32 %v1657_v28, %v1655_v5  ;;  %1214 = vmin.xlane.f32.xlu1 %v1213_v34  ;;  %vm1891_vm8 = vcmp.eq.f32.partialorder %v5443_v21, %v5907_v11  ;;  %v2126_v62 = vshra.s32 %v5912_v26, 16  ;;  %v900_v28 = vmul.f32 2.0, %v5856_v3  ;;  %v4160_v5 = vld [vmem:[%s4481_s25 + $0x8] sm:$0xff] }
 0x2e8   : > { %3582 = vst [vmem:[%s5921_s9] sm:$0xff] %v3518_v47  ;;  %v1892_v48 = vsel %vm1891_vm8, %v1887_v16, inf  ;;  %v5950_v3 = vsub.f32 %v4598_v45, %v899_v38  ;;  %v1688_v38 = vcvt.f32.s32 %v5502_v56  ;;  %v901_v56 = vmul.f32 2.0, %v5890_v12 }
 0x2e9   : > { %2533 = vst.msk [vmem:[%s5339_s8 + $0x48] sm:$0xff] %vm2523_vm10, %v1658_v36  ;;  %v2992_v57 = vpop.f32.mrf.mxu2  ;;  %v3201_v23 = vpop.f32.mrf.mxu3  ;;  %1893 = vmin.xlane.f32.xlu0 %v1892_v48  ;;  %vm2606_vm9 = vcmp.eq.s32.totalorder %v4680_v0, %v1658_v36  ;;  %vm2607_vm11 = vcmp.eq.s32.totalorder %v4684_v6, %v1658_v36  ;;  %v5929_v21 = vcvt.s32.f32 %v2126_v62  ;;  %v5957_v14 = vsub.f32 %v4600_v46, %v900_v28 }
 0x2ea   : > { %v3202_v34 = vadd.f32 %v3201_v23, %v2992_v57  ;;  %3973 = vmatmul.msk.f32.gmra.mxu2 %vm2606_vm9, %v7203_v8  ;;  %4037 = vmatmul.msk.f32.gmra.mxu3 %vm2607_vm11, %v7203_v8  ;;  %v1173_v17 = vpop.xlane.xlu1 %1172  ;;  %v1903_v23 = vcvt.s32.f32 %v1901_v44 }
 0x2eb   : > { %vm1323_vm12 = vcmp.eq.f32.partialorder %v5434_v1, %v1173_v17  ;;  %vm1324_vm13 = vcmp.eq.f32.partialorder %v7273_v35, %v1173_v17  ;;  %2129 = vmin.xlane.f32.xlu2 %v5929_v21  ;;  %v1673_v1 = vshll.u32 %v1672_v19, 16  ;;  %v5954_v17 = vpop.f32.mrf.mxu1 }
 0x2ec   : > { %3391 = vst [vmem:[%s5899_s28 + $0x8] sm:$0xff] %v3202_v34  ;;  %v3455_v47 = vsub.f32 %v3202_v34, %v4160_v5  ;;  %v1451_v16 = vsel %vm1323_vm12, %v4680_v0, 256  ;;  %v1452_v22 = vsel %vm1324_vm13, %v4684_v6, 256  ;;  %v1670_v36 = vpop.xlane.xlu0 %1669 }
 0x2ed   : > { %vm2139_vm14 = vcmp.lt.s32.totalorder %v1451_v16, %v1452_v22  ;;  %v1671_v62 = vcvt.f32.s32 %v1670_v36  ;;  %v902_v36 = vmul.f32 2.0, %v5905_v27 }
 0x2ee   : > { %v3519_v48 = vadd.f32 %v4160_v5, %v3455_v47  ;;  %v5947_v57 = vpop.xlane.xlu2 %1905  ;;  %v5952_v34 = vsel %vm2139_vm14, %v1451_v16, %v1452_v22  ;;  %v1917_v16 = vand.u32 65535, %v5510_v7  ;;  %v1219_v22 = vmin.f32 %v5950_v3, %v5957_v14 }
 0x2ef   : > { %v1674_v35 = vadd.s32 %v1673_v1, %v1671_v62  ;;  %1217 = vmin.xlane.f32.xlu1 %v1216_v40  ;;  %vm1907_vm15 = vcmp.eq.f32.partialorder %v5480_v61, %v5947_v57  ;;  %v2142_v19 = vshra.s32 %v5952_v34, 16  ;;  %v4161_v1 = vld [vmem:[%s4481_s25 + $0x10] sm:$0xff] }
 0x2f0   : > { %3583 = vst [vmem:[%s5921_s9 + $0x8] sm:$0xff] %v3519_v48  ;;  %v1908_v5 = vsel %vm1907_vm15, %v1903_v23, inf  ;;  %v1689_v23 = vshll.u32 %v1688_v38, 16  ;;  %v1919_v27 = vcvt.s32.f32 %v1917_v16 }
 0x2f1   : > { %2534 = vst.msk [vmem:[%s5339_s8 + $0x50] sm:$0xff] %vm2523_vm10, %v1674_v35  ;;  %v2995_v44 = vpop.f32.mrf.mxu2  ;;  %v3204_v47 = vpop.f32.mrf.mxu3  ;;  %1909 = vmin.xlane.f32.xlu0 %v1908_v5  ;;  %vm2608_vm0 = vcmp.eq.s32.totalorder %v4680_v0, %v1674_v35  ;;  %vm2609_vm1 = vcmp.eq.s32.totalorder %v4684_v6, %v1674_v35  ;;  %v5968_v40 = vcvt.s32.f32 %v2142_v19  ;;  %v5987_v19 = vsub.f32 %v4598_v45, %v901_v56 }
 0x2f2   : > { %v3205_v61 = vadd.f32 %v3204_v47, %v2995_v44  ;;  %3974 = vmatmul.msk.f32.gmra.mxu2 %vm2608_vm0, %v7203_v8  ;;  %4038 = vmatmul.msk.f32.gmra.mxu3 %vm2609_vm1, %v7203_v8  ;;  %v1176_v28 = vpop.xlane.xlu1 %1175  ;;  %v562_v44 = vpop.f32.mrf.mxu0  ;;  %v1704_v56 = vcvt.f32.s32 %v5539_v10  ;;  %v903_v10 = vmul.f32 2.0, %v5945_v59 }
 0x2f3   : > { %vm1325_vm2 = vcmp.eq.f32.partialorder %v5473_v4, %v1176_v28  ;;  %vm1326_vm3 = vcmp.eq.f32.partialorder %v5470_v32, %v1176_v28  ;;  %2145 = vmin.xlane.f32.xlu2 %v5968_v40 }
 0x2f4   : > { %3392 = vst [vmem:[%s5899_s28 + $0x10] sm:$0xff] %v3205_v61  ;;  %v3456_v62 = vsub.f32 %v3205_v61, %v4161_v1  ;;  %v1453_v48 = vsel %vm1325_vm2, %v4680_v0, 256  ;;  %v1454_v12 = vsel %vm1326_vm3, %v4684_v6, 256  ;;  %v1686_v7 = vpop.xlane.xlu0 %1685  ;;  %v5992_v61 = vsub.f32 %v4600_v46, %v902_v36 }
 0x2f5   : > { %vm2155_vm4 = vcmp.lt.s32.totalorder %v1453_v48, %v1454_v12  ;;  %v1687_v4 = vcvt.f32.s32 %v1686_v7  ;;  %v7275_v7 = vld [vmem:[#allocation16_spill] sm:$0xff] }
 0x2f6   : > { %v3520_v32 = vadd.f32 %v4161_v1, %v3456_v62  ;;  %v5984_v35 = vpop.xlane.xlu2 %1921  ;;  %v5989_v5 = vsel %vm2155_vm4, %v1453_v48, %v1454_v12  ;;  %v771_v1 = vpop.f32.mrf.mxu1  ;;  %v1933_v48 = vand.u32 65535, %v5541_v58  ;;  %v7274_v12 = vld [vmem:[#allocation17_spill] sm:$0xff] }
 0x2f7   : > { %v1690_v47 = vadd.s32 %v1689_v23, %v1687_v4  ;;  %1220 = vmin.xlane.f32.xlu1 %v1219_v22  ;;  %vm1923_vm5 = vcmp.eq.f32.partialorder %v5517_v52, %v5984_v35  ;;  %v2158_v38 = vshra.s32 %v5989_v5, 16  ;;  %v1222_v23 = vmin.f32 %v5987_v19, %v5992_v61 }
 0x2f8   : > { %3584 = vst [vmem:[%s5921_s9 + $0x10] sm:$0xff] %v3520_v32  ;;  %v1924_v28 = vsel %vm1923_vm5, %v1919_v27, inf  ;;  %v904_v4 = vmul.f32 2.0, %v5954_v17  ;;  %v4162_v32 = vld [vmem:[%s4481_s25 + $0x18] sm:$0xff]  ;;  %v1935_v17 = vcvt.s32.f32 %v1933_v48 }
 0x2f9   : > { %2535 = vst.msk [vmem:[%s5339_s8 + $0x58] sm:$0xff] %vm2523_vm10, %v1690_v47  ;;  %v2998_v16 = vpop.f32.mrf.mxu2  ;;  %v3207_v62 = vpop.f32.mrf.mxu3  ;;  %1925 = vmin.xlane.f32.xlu0 %v1924_v28  ;;  %vm2610_vm6 = vcmp.eq.s32.totalorder %v4680_v0, %v1690_v47  ;;  %vm2611_vm7 = vcmp.eq.s32.totalorder %v4684_v6, %v1690_v47  ;;  %v6003_v22 = vcvt.s32.f32 %v2158_v38  ;;  %v1705_v38 = vshll.u32 %v1704_v56, 16 }
 0x2fa   : > { %v3208_v52 = vadd.f32 %v3207_v62, %v2998_v16  ;;  %3975 = vmatmul.msk.f32.gmra.mxu2 %vm2610_vm6, %v7203_v8  ;;  %4039 = vmatmul.msk.f32.gmra.mxu3 %vm2611_vm7, %v7203_v8  ;;  %v1179_v36 = vpop.xlane.xlu1 %1178 }
 0x2fb   : > { %vm1327_vm8 = vcmp.eq.f32.partialorder %v7274_v12, %v1179_v36  ;;  %vm1328_vm9 = vcmp.eq.f32.partialorder %v7275_v7, %v1179_v36  ;;  %2161 = vmin.xlane.f32.xlu2 %v6003_v22  ;;  %v6022_v36 = vsub.f32 %v4598_v45, %v903_v10  ;;  %v6027_v7 = vsub.f32 %v4600_v46, %v904_v4 }
 0x2fc   : > { %3393 = vst [vmem:[%s5899_s28 + $0x18] sm:$0xff] %v3208_v52  ;;  %v3457_v27 = vsub.f32 %v3208_v52, %v4162_v32  ;;  %v1455_v47 = vsel %vm1327_vm8, %v4680_v0, 256  ;;  %v1456_v59 = vsel %vm1328_vm9, %v4684_v6, 256  ;;  %v1702_v58 = vpop.xlane.xlu0 %1701 }
 0x2fd   : > { %vm2171_vm11 = vcmp.lt.s32.totalorder %v1455_v47, %v1456_v59  ;;  %v1703_v28 = vcvt.f32.s32 %v1702_v58  ;;  %7276 = vst [vmem:[#allocation39_spill] sm:$0xff] %v6027_v7  ;;  %v1720_v58 = vcvt.f32.s32 %v5576_v25  ;;  %v905_v25 = vmul.f32 2.0, %v562_v44 }
 0x2fe   : > { %v3521_v16 = vadd.f32 %v4162_v32, %v3457_v27  ;;  %v6019_v62 = vpop.xlane.xlu2 %1937  ;;  %v6024_v12 = vsel %vm2171_vm11, %v1455_v47, %v1456_v59  ;;  %v565_v27 = vpop.f32.mrf.mxu0  ;;  %v1949_v47 = vand.u32 65535, %v5584_v13 }
 0x2ff   : > { %v1706_v52 = vadd.s32 %v1705_v38, %v1703_v28  ;;  %1223 = vmin.xlane.f32.xlu1 %v1222_v23  ;;  %vm1939_vm12 = vcmp.eq.f32.partialorder %v5554_v50, %v6019_v62  ;;  %v2174_v56 = vshra.s32 %v6024_v12, 16  ;;  %v774_v59 = vpop.f32.mrf.mxu1  ;;  %v7277_v38 = vld [vmem:[#allocation18_spill] sm:$0xff]  ;;  %v1225_v28 = vmin.f32 %v6022_v36, %v6027_v7 }
 0x300   : > { %3585 = vst [vmem:[%s5921_s9 + $0x18] sm:$0xff] %v3521_v16  ;;  %v1940_v32 = vsel %vm1939_vm12, %v1935_v17, inf  ;;  %v906_v16 = vmul.f32 2.0, %v771_v1  ;;  %v4163_v17 = vld [vmem:[%s4481_s25 + $0x20] sm:$0xff]  ;;  %v1951_v1 = vcvt.s32.f32 %v1949_v47 }
 0x301   : > { %2536 = vst.msk [vmem:[%s5339_s8 + $0x60] sm:$0xff] %vm2523_vm10, %v1706_v52  ;;  %v3001_v10 = vpop.f32.mrf.mxu2  ;;  %v3210_v48 = vpop.f32.mrf.mxu3  ;;  %1941 = vmin.xlane.f32.xlu0 %v1940_v32  ;;  %vm2612_vm13 = vcmp.eq.s32.totalorder %v4680_v0, %v1706_v52  ;;  %vm2613_vm14 = vcmp.eq.s32.totalorder %v4684_v6, %v1706_v52  ;;  %v6038_v23 = vcvt.s32.f32 %v2174_v56  ;;  %v1721_v32 = vshll.u32 %v1720_v58, 16 }
 0x302   : > { %v3211_v50 = vadd.f32 %v3210_v48, %v3001_v10  ;;  %3976 = vmatmul.msk.f32.gmra.mxu2 %vm2612_vm13, %v7203_v8  ;;  %4040 = vmatmul.msk.f32.gmra.mxu3 %vm2613_vm14, %v7203_v8  ;;  %v1182_v4 = vpop.xlane.xlu1 %1181  ;;  %v6060_v7 = vsub.f32 %v4600_v46, %v906_v16 }
 0x303   : > { %vm1329_vm15 = vcmp.eq.f32.partialorder %v5547_v20, %v1182_v4  ;;  %vm1330_vm0 = vcmp.eq.f32.partialorder %v7277_v38, %v1182_v4  ;;  %2177 = vmin.xlane.f32.xlu2 %v6038_v23  ;;  %v6055_v4 = vsub.f32 %v4598_v45, %v905_v25 }
 0x304   : > { %3394 = vst [vmem:[%s5899_s28 + $0x20] sm:$0xff] %v3211_v50  ;;  %v3458_v52 = vsub.f32 %v3211_v50, %v4163_v17  ;;  %v1457_v56 = vsel %vm1329_vm15, %v4680_v0, 256  ;;  %v1458_v44 = vsel %vm1330_vm0, %v4684_v6, 256  ;;  %v1718_v13 = vpop.xlane.xlu0 %1717 }
 0x305   : > { %vm2187_vm1 = vcmp.lt.s32.totalorder %v1457_v56, %v1458_v44  ;;  %v1719_v20 = vcvt.f32.s32 %v1718_v13  ;;  %7278 = vst [vmem:[#allocation41_spill] sm:$0xff] %v6055_v4  ;;  %v908_v13 = vmul.f32 2.0, %v774_v59 }
 0x306   : > { %v3522_v10 = vadd.f32 %v4163_v17, %v3458_v52  ;;  %v6052_v48 = vpop.xlane.xlu2 %1953  ;;  %v6057_v38 = vsel %vm2187_vm1, %v1457_v56, %v1458_v44  ;;  %7279 = vst [vmem:[#allocation17_spill] sm:$0xff] %v6060_v7  ;;  %v1736_v52 = vcvt.f32.s32 %v5611_v42  ;;  %v907_v42 = vmul.f32 2.0, %v565_v27 }
 0x307   : > { %v1722_v50 = vadd.s32 %v1721_v32, %v1719_v20  ;;  %1226 = vmin.xlane.f32.xlu1 %v1225_v28  ;;  %vm1955_vm2 = vcmp.eq.f32.partialorder %v5591_v43, %v6052_v48  ;;  %v2190_v58 = vshra.s32 %v6057_v38, 16  ;;  %v1965_v56 = vand.u32 65535, %v5613_v37  ;;  %v568_v32 = vpop.f32.mrf.mxu0  ;;  %v4164_v20 = vld [vmem:[%s4481_s25 + $0x28] sm:$0xff] }
 0x308   : > { %3586 = vst [vmem:[%s5921_s9 + $0x20] sm:$0xff] %v3522_v10  ;;  %v1956_v17 = vsel %vm1955_vm2, %v1951_v1, inf  ;;  %v1228_v44 = vmin.f32 %v6055_v4, %v6060_v7  ;;  %v6088_v59 = vsub.f32 %v4598_v45, %v907_v42  ;;  %v7292_v7 = vld [vmem:[#allocation25_spill] sm:$0xff] }
 0x309   : > { %2537 = vst.msk [vmem:[%s5339_s8 + $0x68] sm:$0xff] %vm2523_vm10, %v1722_v50  ;;  %v3004_v25 = vpop.f32.mrf.mxu2  ;;  %v3213_v47 = vpop.f32.mrf.mxu3  ;;  %1957 = vmin.xlane.f32.xlu0 %v1956_v17  ;;  %vm2614_vm3 = vcmp.eq.s32.totalorder %v4680_v0, %v1722_v50  ;;  %vm2615_vm4 = vcmp.eq.s32.totalorder %v4684_v6, %v1722_v50  ;;  %v6071_v28 = vcvt.s32.f32 %v2190_v58 }
 0x30a   : > { %v3214_v43 = vadd.f32 %v3213_v47, %v3004_v25  ;;  %3977 = vmatmul.msk.f32.gmra.mxu2 %vm2614_vm3, %v7203_v8  ;;  %4041 = vmatmul.msk.f32.gmra.mxu3 %vm2615_vm4, %v7203_v8  ;;  %v1185_v16 = vpop.xlane.xlu1 %1184  ;;  %v777_v50 = vpop.f32.mrf.mxu1  ;;  %7280 = vst [vmem:[#allocation16_spill] sm:$0xff] %v6088_v59  ;;  %v1967_v25 = vcvt.s32.f32 %v1965_v56 }
 0x30b   : > { %vm1331_vm5 = vcmp.eq.f32.partialorder %v5582_v29, %v1185_v16  ;;  %vm1332_vm6 = vcmp.eq.f32.partialorder %v5579_v24, %v1185_v16  ;;  %2193 = vmin.xlane.f32.xlu2 %v6071_v28  ;;  %v1737_v29 = vshll.u32 %v1736_v52, 16  ;;  %v6093_v16 = vsub.f32 %v4600_v46, %v908_v13 }
 0x30c   : > { %3395 = vst [vmem:[%s5899_s28 + $0x28] sm:$0xff] %v3214_v43  ;;  %v3459_v10 = vsub.f32 %v3214_v43, %v4164_v20  ;;  %v1459_v1 = vsel %vm1331_vm5, %v4680_v0, 256  ;;  %v1460_v27 = vsel %vm1332_vm6, %v4684_v6, 256  ;;  %v1734_v37 = vpop.xlane.xlu0 %1733 }
 0x30d   : > { %vm2203_vm7 = vcmp.lt.s32.totalorder %v1459_v1, %v1460_v27  ;;  %v1735_v24 = vcvt.f32.s32 %v1734_v37  ;;  %7281 = vst [vmem:[#allocation18_spill] sm:$0xff] %v6093_v16  ;;  %v7283_v37 = vld [vmem:[#allocation20_spill] sm:$0xff] }
 0x30e   : > { %v3523_v58 = vadd.f32 %v4164_v20, %v3459_v10  ;;  %v6085_v17 = vpop.xlane.xlu2 %1969  ;;  %v6090_v47 = vsel %vm2203_vm7, %v1459_v1, %v1460_v27  ;;  %v1752_v10 = vcvt.f32.s32 %v5640_v31  ;;  %v909_v31 = vmul.f32 2.0, %v568_v32  ;;  %v7282_v27 = vld [vmem:[#allocation19_spill] sm:$0xff] }
 0x30f   : > { %v1738_v43 = vadd.s32 %v1737_v29, %v1735_v24  ;;  %1229 = vmin.xlane.f32.xlu1 %v1228_v44  ;;  %vm1971_vm8 = vcmp.eq.f32.partialorder %v5626_v2, %v6085_v17  ;;  %v2206_v52 = vshra.s32 %v6090_v47, 16  ;;  %v1981_v1 = vand.u32 65535, %v5648_v39 }
 0x310   : > { %3587 = vst [vmem:[%s5921_s9 + $0x28] sm:$0xff] %v3523_v58  ;;  %v1972_v20 = vsel %vm1971_vm8, %v1967_v25, inf  ;;  %v1231_v29 = vmin.f32 %v6088_v59, %v6093_v16  ;;  %v910_v24 = vmul.f32 2.0, %v777_v50  ;;  %v4165_v58 = vld [vmem:[%s4481_s25 + $0x30] sm:$0xff]  ;;  %v1753_v39 = vshll.u32 %v1752_v10, 16 }
 0x311   : > { %2538 = vst.msk [vmem:[%s5339_s8 + $0x70] sm:$0xff] %vm2523_vm10, %v1738_v43  ;;  %v3007_v42 = vpop.f32.mrf.mxu2  ;;  %v3216_v56 = vpop.f32.mrf.mxu3  ;;  %1973 = vmin.xlane.f32.xlu0 %v1972_v20  ;;  %vm2616_vm9 = vcmp.eq.s32.totalorder %v4680_v0, %v1738_v43  ;;  %vm2617_vm11 = vcmp.eq.s32.totalorder %v4684_v6, %v1738_v43  ;;  %v6104_v44 = vcvt.s32.f32 %v2206_v52  ;;  %v1983_v50 = vcvt.s32.f32 %v1981_v1 }
 0x312   : > { %v3217_v2 = vadd.f32 %v3216_v56, %v3007_v42  ;;  %3978 = vmatmul.msk.f32.gmra.mxu2 %vm2616_vm9, %v7203_v8  ;;  %4042 = vmatmul.msk.f32.gmra.mxu3 %vm2617_vm11, %v7203_v8  ;;  %v1188_v13 = vpop.xlane.xlu1 %1187  ;;  %v571_v42 = vpop.f32.mrf.mxu0  ;;  %v6126_v59 = vsub.f32 %v4600_v46, %v910_v24 }
 0x313   : > { %vm1333_vm12 = vcmp.eq.f32.partialorder %v7282_v27, %v1188_v13  ;;  %vm1334_vm13 = vcmp.eq.f32.partialorder %v7283_v37, %v1188_v13  ;;  %2209 = vmin.xlane.f32.xlu2 %v6104_v44  ;;  %v6121_v27 = vsub.f32 %v4598_v45, %v909_v31 }
 0x314   : > { %3396 = vst [vmem:[%s5899_s28 + $0x30] sm:$0xff] %v3217_v2  ;;  %v3460_v25 = vsub.f32 %v3217_v2, %v4165_v58  ;;  %v1461_v43 = vsel %vm1333_vm12, %v4680_v0, 256  ;;  %v1462_v52 = vsel %vm1334_vm13, %v4684_v6, 256  ;;  %v1750_v32 = vpop.xlane.xlu0 %1749  ;;  %v780_v2 = vpop.f32.mrf.mxu1 }
 0x315   : > { %vm2219_vm14 = vcmp.lt.s32.totalorder %v1461_v43, %v1462_v52  ;;  %v1751_v20 = vcvt.f32.s32 %v1750_v32  ;;  %7284 = vst [vmem:[#allocation19_spill] sm:$0xff] %v6121_v27  ;;  %v7287_v32 = vld [vmem:[#allocation21_spill] sm:$0xff] }
 0x316   : > { %v3524_v56 = vadd.f32 %v4165_v58, %v3460_v25  ;;  %v6118_v13 = vpop.xlane.xlu2 %1985  ;;  %v6123_v37 = vsel %vm2219_vm14, %v1461_v43, %v1462_v52  ;;  %7285 = vst [vmem:[#allocation20_spill] sm:$0xff] %v6126_v59  ;;  %v1768_v25 = vcvt.f32.s32 %v5669_v63  ;;  %v911_v63 = vmul.f32 2.0, %v571_v42  ;;  %v7286_v43 = vld [vmem:[#allocation23_spill] sm:$0xff] }
 0x317   : > { %v1754_v16 = vadd.s32 %v1753_v39, %v1751_v20  ;;  %1232 = vmin.xlane.f32.xlu1 %v1231_v29  ;;  %vm1987_vm15 = vcmp.eq.f32.partialorder %v5655_v30, %v6118_v13  ;;  %v2222_v10 = vshra.s32 %v6123_v37, 16  ;;  %v1997_v52 = vand.u32 65535, %v7286_v43  ;;  %v7288_v39 = vld [vmem:[#allocation22_spill] sm:$0xff] }
 0x318   : > { %3588 = vst [vmem:[%s5921_s9 + $0x30] sm:$0xff] %v3524_v56  ;;  %v1988_v58 = vsel %vm1987_vm15, %v1983_v50, inf  ;;  %v912_v20 = vmul.f32 2.0, %v780_v2  ;;  %v4166_v56 = vld [vmem:[%s4481_s25 + $0x38] sm:$0xff] }
 0x319   : > { %2539 = vst.msk [vmem:[%s5339_s8 + $0x78] sm:$0xff] %vm2523_vm10, %v1754_v16  ;;  %v3010_v31 = vpop.f32.mrf.mxu2  ;;  %v3219_v1 = vpop.f32.mrf.mxu3  ;;  %1989 = vmin.xlane.f32.xlu0 %v1988_v58  ;;  %vm2618_vm0 = vcmp.eq.s32.totalorder %v4680_v0, %v1754_v16  ;;  %vm2619_vm1 = vcmp.eq.s32.totalorder %v4684_v6, %v1754_v16  ;;  %v6137_v29 = vcvt.s32.f32 %v2222_v10  ;;  %v1234_v16 = vmin.f32 %v6121_v27, %v6126_v59  ;;  %v7291_v27 = vld [vmem:[#allocation43_spill] sm:$0xff] }
 0x31a   : > { %v3220_v30 = vadd.f32 %v3219_v1, %v3010_v31  ;;  %3979 = vmatmul.msk.f32.gmra.mxu2 %vm2618_vm0, %v7203_v8  ;;  %4043 = vmatmul.msk.f32.gmra.mxu3 %vm2619_vm1, %v7203_v8  ;;  %v1191_v24 = vpop.xlane.xlu1 %1190  ;;  %v1769_v31 = vshll.u32 %v1768_v25, 16  ;;  %v1999_v2 = vcvt.s32.f32 %v1997_v52  ;;  %v6159_v59 = vsub.f32 %v4600_v46, %v912_v20  ;;  %v7293_v20 = vld [vmem:[#allocation45_spill] sm:$0xff] }
 0x31b   : > { %vm1335_vm2 = vcmp.eq.f32.partialorder %v7287_v32, %v1191_v24  ;;  %vm1336_vm3 = vcmp.eq.f32.partialorder %v7288_v39, %v1191_v24  ;;  %2225 = vmin.xlane.f32.xlu2 %v6137_v29  ;;  %v6154_v32 = vsub.f32 %v4598_v45, %v911_v63  ;;  %v1784_v63 = vcvt.f32.s32 %v7292_v7  ;;  %v7295_v7 = vld [vmem:[#allocation42_spill] sm:$0xff] }
 0x31c   : > { %3397 = vst [vmem:[%s5899_s28 + $0x38] sm:$0xff] %v3220_v30  ;;  %v3461_v50 = vsub.f32 %v3220_v30, %v4166_v56  ;;  %v1463_v10 = vsel %vm1335_vm2, %v4680_v0, 256  ;;  %v1464_v58 = vsel %vm1336_vm3, %v4684_v6, 256  ;;  %v1766_v42 = vpop.xlane.xlu0 %1765 }
 0x31d   : > { %vm2235_vm4 = vcmp.lt.s32.totalorder %v1463_v10, %v1464_v58  ;;  %v1767_v1 = vcvt.f32.s32 %v1766_v42  ;;  %7289 = vst [vmem:[#allocation23_spill] sm:$0xff] %v6154_v32  ;;  %v574_v42 = vpop.f32.mrf.mxu0 }
 0x31e   : > { %v3525_v24 = vadd.f32 %v4166_v56, %v3461_v50  ;;  %v6151_v43 = vpop.xlane.xlu2 %2001  ;;  %v6156_v39 = vsel %vm2235_vm4, %v1463_v10, %v1464_v58  ;;  %7290 = vst [vmem:[#allocation21_spill] sm:$0xff] %v6159_v59  ;;  %v783_v50 = vpop.f32.mrf.mxu1  ;;  %v2013_v10 = vand.u32 65535, %v7293_v20  ;;  %v7294_v58 = vld [vmem:[#allocation24_spill] sm:$0xff] }
 0x31f   : > { %v1770_v30 = vadd.s32 %v1769_v31, %v1767_v1  ;;  %1235 = vmin.xlane.f32.xlu1 %v1234_v16  ;;  %vm2003_vm5 = vcmp.eq.f32.partialorder %v7291_v27, %v6151_v43  ;;  %v2238_v25 = vshra.s32 %v6156_v39, 16  ;;  %v913_v16 = vmul.f32 2.0, %v574_v42 }
 0x320   : > { %3589 = vst [vmem:[%s5921_s9 + $0x38] sm:$0xff] %v3525_v24  ;;  %v2004_v56 = vsel %vm2003_vm5, %v1999_v2, inf  ;;  %v1237_v31 = vmin.f32 %v6154_v32, %v6159_v59  ;;  %v914_v1 = vmul.f32 2.0, %v783_v50  ;;  %v7298_v59 = vld [vmem:[#allocation46_spill] sm:$0xff] }
 0x321   : > { %2540 = vst.msk [vmem:[%s5339_s8 + $0x80] sm:$0xff] %vm2523_vm10, %v1770_v30  ;;  %2005 = vmin.xlane.f32.xlu0 %v2004_v56  ;;  %vm2620_vm6 = vcmp.eq.s32.totalorder %v4680_v0, %v1770_v30  ;;  %vm2621_vm7 = vcmp.eq.s32.totalorder %v4684_v6, %v1770_v30  ;;  %v6170_v52 = vcvt.s32.f32 %v2238_v25  ;;  %v1785_v25 = vshll.u32 %v1784_v63, 16 }
 0x322   : > { %3980 = vmatmul.msk.f32.gmra.mxu2 %vm2620_vm6, %v7203_v8  ;;  %4044 = vmatmul.msk.f32.gmra.mxu3 %vm2621_vm7, %v7203_v8  ;;  %v1194_v27 = vpop.xlane.xlu1 %1193  ;;  %v6185_v20 = vsub.f32 %v4598_v45, %v913_v16  ;;  %v6190_v50 = vsub.f32 %v4600_v46, %v914_v1  ;;  %v7302_v1 = vld [vmem:[#allocation44_spill] sm:$0xff] }
 0x323   : > { %vm1337_vm8 = vcmp.eq.f32.partialorder %v7294_v58, %v1194_v27  ;;  %vm1338_vm9 = vcmp.eq.f32.partialorder %v7295_v7, %v1194_v27  ;;  %2241 = vmin.xlane.f32.xlu2 %v6170_v52  ;;  %v2015_v27 = vcvt.s32.f32 %v2013_v10 }
 0x324   : > { %v1465_v24 = vsel %vm1337_vm8, %v4680_v0, 256  ;;  %v1466_v2 = vsel %vm1338_vm9, %v4684_v6, 256  ;;  %v1782_v30 = vpop.xlane.xlu0 %1781  ;;  %7296 = vst [vmem:[#allocation22_spill] sm:$0xff] %v6185_v20  ;;  %v1240_v10 = vmin.f32 %v6185_v20, %v6190_v50 }
 0x325   : > { %vm2251_vm11 = vcmp.lt.s32.totalorder %v1465_v24, %v1466_v2  ;;  %v1783_v42 = vcvt.f32.s32 %v1782_v30  ;;  %7297 = vst [vmem:[#allocation43_spill] sm:$0xff] %v6190_v50  ;;  %v7299_v30 = vld [vmem:[#allocation27_spill] sm:$0xff]  ;;  %v1848_v50 = vcvt.f32.s32 %v5808_v49 }
 0x326   : > { %v6182_v56 = vpop.xlane.xlu2 %2017  ;;  %v6187_v58 = vsel %vm2251_vm11, %v1465_v24, %v1466_v2  ;;  %v1800_v4 = vcvt.f32.s32 %v7299_v30 }
 0x327   : > { %v1786_v7 = vadd.s32 %v1785_v25, %v1783_v42  ;;  %1238 = vmin.xlane.f32.xlu1 %v1237_v31  ;;  %vm2019_vm12 = vcmp.eq.f32.partialorder %v7298_v59, %v6182_v56  ;;  %v2254_v63 = vshra.s32 %v6187_v58, 16  ;;  %v7300_v59 = vld [vmem:[#allocation28_spill] sm:$0xff]  ;;  %v7301_v31 = vld [vmem:[#allocation26_spill] sm:$0xff] }
 0x328   : > { %v2020_v32 = vsel %vm2019_vm12, %v2015_v27, inf  ;;  %v2029_v16 = vand.u32 65535, %v7300_v59  ;;  %v1801_v25 = vshll.u32 %v1800_v4, 16 }
 0x329   : > { %2541 = vst.msk [vmem:[%s5339_s8 + $0x88] sm:$0xff] %vm2523_vm10, %v1786_v7  ;;  %2021 = vmin.xlane.f32.xlu0 %v2020_v32  ;;  %vm2622_vm13 = vcmp.eq.s32.totalorder %v4680_v0, %v1786_v7  ;;  %vm2623_vm14 = vcmp.eq.s32.totalorder %v4684_v6, %v1786_v7  ;;  %v6200_v45 = vcvt.s32.f32 %v2254_v63 }
 0x32a   : > { %3981 = vmatmul.msk.f32.gmra.mxu2 %vm2622_vm13, %v7203_v8  ;;  %4045 = vmatmul.msk.f32.gmra.mxu3 %vm2623_vm14, %v7203_v8  ;;  %v1197_v46 = vpop.xlane.xlu1 %1196  ;;  %v2031_v7 = vcvt.s32.f32 %v2029_v16 }
 0x32b   : > { %vm1339_vm15 = vcmp.eq.f32.partialorder %v7301_v31, %v1197_v46  ;;  %vm1340_vm0 = vcmp.eq.f32.partialorder %v7302_v1, %v1197_v46  ;;  %2257 = vmin.xlane.f32.xlu2 %v6200_v45  ;;  %v7303_v46 = vld [vmem:[#allocation31_spill] sm:$0xff]  ;;  %v1816_v1 = vcvt.f32.s32 %v5756_v41 }
 0x32c   : > { %v1467_v32 = vsel %vm1339_vm15, %v4680_v0, 256  ;;  %v1468_v24 = vsel %vm1340_vm0, %v4684_v6, 256  ;;  %v1798_v2 = vpop.xlane.xlu0 %1797 }
 0x32d   : > { %vm2267_vm1 = vcmp.lt.s32.totalorder %v1467_v32, %v1468_v24  ;;  %v1799_v42 = vcvt.f32.s32 %v1798_v2 }
 0x32e   : > { %v6212_v27 = vpop.xlane.xlu2 %2033  ;;  %v6214_v63 = vsel %vm2267_vm1, %v1467_v32, %v1468_v24  ;;  %v7304_v32 = vld [vmem:[#allocation47_spill] sm:$0xff]  ;;  %v7305_v24 = vld [vmem:[#allocation48_spill] sm:$0xff] }
 0x32f   : > { %v1802_v30 = vadd.s32 %v1801_v25, %v1799_v42  ;;  %1241 = vmin.xlane.f32.xlu1 %v1240_v10  ;;  %vm2035_vm2 = vcmp.eq.f32.partialorder %v7303_v46, %v6212_v27  ;;  %v2270_v59 = vshra.s32 %v6214_v63, 16  ;;  %v2045_v10 = vand.u32 65535, %v5764_v9 }
 0x330   : > { %v2036_v31 = vsel %vm2035_vm2, %v2031_v7, inf  ;;  %v1817_v42 = vshll.u32 %v1816_v1, 16 }
 0x331   : > { %2542 = vst.msk [vmem:[%s5339_s8 + $0x90] sm:$0xff] %vm2523_vm10, %v1802_v30  ;;  %2037 = vmin.xlane.f32.xlu0 %v2036_v31  ;;  %vm2624_vm3 = vcmp.eq.s32.totalorder %v4680_v0, %v1802_v30  ;;  %vm2625_vm4 = vcmp.eq.s32.totalorder %v4684_v6, %v1802_v30  ;;  %v6224_v4 = vcvt.s32.f32 %v2270_v59  ;;  %v2047_v9 = vcvt.s32.f32 %v2045_v10  ;;  %v7306_v31 = vld [vmem:[#allocation30_spill] sm:$0xff] }
 0x332   : > { %3982 = vmatmul.msk.f32.gmra.mxu2 %vm2624_vm3, %v7203_v8  ;;  %4046 = vmatmul.msk.f32.gmra.mxu3 %vm2625_vm4, %v7203_v8  ;;  %v1200_v16 = vpop.xlane.xlu1 %1199 }
 0x333   : > { %vm1341_vm5 = vcmp.eq.f32.partialorder %v7304_v32, %v1200_v16  ;;  %vm1342_vm6 = vcmp.eq.f32.partialorder %v7305_v24, %v1200_v16  ;;  %2273 = vmin.xlane.f32.xlu2 %v6224_v4  ;;  %v1832_v24 = vcvt.f32.s32 %v5783_v51 }
 0x334   : > { %v1469_v41 = vsel %vm1341_vm5, %v4680_v0, 256  ;;  %v1470_v2 = vsel %vm1342_vm6, %v4684_v6, 256  ;;  %v1814_v25 = vpop.xlane.xlu0 %1813 }
 0x335   : > { %vm2283_vm7 = vcmp.lt.s32.totalorder %v1469_v41, %v1470_v2  ;;  %v1815_v7 = vcvt.f32.s32 %v1814_v25  ;;  %v7308_v25 = vld [vmem:[#allocation29_spill] sm:$0xff] }
 0x336   : > { %v6234_v30 = vsel %vm2283_vm7, %v1469_v41, %v1470_v2  ;;  %v6236_v46 = vpop.xlane.xlu2 %2049  ;;  %v2061_v41 = vand.u32 65535, %v5785_v18  ;;  %v7307_v2 = vld [vmem:[#allocation11_spill] sm:$0xff] }
 0x337   : > { %v1818_v59 = vadd.s32 %v1817_v42, %v1815_v7  ;;  %vm2051_vm8 = vcmp.eq.f32.partialorder %v7306_v31, %v6236_v46  ;;  %v2286_v16 = vshra.s32 %v6234_v30, 16 }
 0x338   : > { %v2052_v32 = vsel %vm2051_vm8, %v2047_v9, inf  ;;  %v1833_v9 = vshll.u32 %v1832_v24, 16  ;;  %v2063_v18 = vcvt.s32.f32 %v2061_v41 }
 0x339   : > { %2543 = vst.msk [vmem:[%s5339_s8 + $0x98] sm:$0xff] %vm2523_vm10, %v1818_v59  ;;  %2053 = vmin.xlane.f32.xlu0 %v2052_v32  ;;  %vm2626_vm9 = vcmp.eq.s32.totalorder %v4680_v0, %v1818_v59  ;;  %vm2627_vm11 = vcmp.eq.s32.totalorder %v4684_v6, %v1818_v59  ;;  %v6246_v1 = vcvt.s32.f32 %v2286_v16 }
 0x33a   : > { %3983 = vmatmul.msk.f32.gmra.mxu2 %vm2626_vm9, %v7203_v8  ;;  %4047 = vmatmul.msk.f32.gmra.mxu3 %vm2627_vm11, %v7203_v8  ;;  %v1203_v10 = vpop.xlane.xlu1 %1202 }
 0x33b   : > { %vm1343_vm12 = vcmp.eq.f32.partialorder %v7307_v2, %v1203_v10  ;;  %vm1344_vm13 = vcmp.eq.f32.partialorder %v7308_v25, %v1203_v10  ;;  %2289 = vmin.xlane.f32.xlu2 %v6246_v1  ;;  %v7309_v2 = vld [vmem:[#allocation32_spill] sm:$0xff] }
 0x33c   : > { %v1471_v51 = vsel %vm1343_vm12, %v4680_v0, 256  ;;  %v1472_v42 = vsel %vm1344_vm13, %v4684_v6, 256  ;;  %v1830_v7 = vpop.xlane.xlu0 %1829 }
 0x33d   : > { %vm2299_vm14 = vcmp.lt.s32.totalorder %v1471_v51, %v1472_v42  ;;  %v1831_v59 = vcvt.f32.s32 %v1830_v7  ;;  %v7312_v7 = vld [vmem:[#allocation34_spill] sm:$0xff] }
 0x33e   : > { %v6256_v31 = vsel %vm2299_vm14, %v1471_v51, %v1472_v42  ;;  %v6258_v16 = vpop.xlane.xlu2 %2065  ;;  %v7311_v51 = vld [vmem:[#allocation13_spill] sm:$0xff] }
 0x33f   : > { %v1834_v32 = vadd.s32 %v1833_v9, %v1831_v59  ;;  %vm2067_vm15 = vcmp.eq.f32.partialorder %v7309_v2, %v6258_v16  ;;  %v2302_v10 = vshra.s32 %v6256_v31, 16  ;;  %v2077_v42 = vand.u32 65535, %v7311_v51  ;;  %v7313_v9 = vld [vmem:[#allocation12_spill] sm:$0xff] }
 0x340   : > { %v2068_v25 = vsel %vm2067_vm15, %v2063_v18, inf }
 0x341   : > { %2544 = vst.msk [vmem:[%s5339_s8 + $0xa0] sm:$0xff] %vm2523_vm10, %v1834_v32  ;;  %2069 = vmin.xlane.f32.xlu0 %v2068_v25  ;;  %vm2628_vm0 = vcmp.eq.s32.totalorder %v4680_v0, %v1834_v32  ;;  %vm2629_vm1 = vcmp.eq.s32.totalorder %v4684_v6, %v1834_v32  ;;  %v6268_v24 = vcvt.s32.f32 %v2302_v10  ;;  %v1849_v32 = vshll.u32 %v1848_v50, 16 }
 0x342   : > { %3984 = vmatmul.msk.f32.gmra.mxu2 %vm2628_vm0, %v7203_v8  ;;  %4048 = vmatmul.msk.f32.gmra.mxu3 %vm2629_vm1, %v7203_v8  ;;  %v1206_v41 = vpop.xlane.xlu1 %1205  ;;  %v2079_v51 = vcvt.s32.f32 %v2077_v42 }
 0x343   : > { %7310 = vst [vmem:[#allocation25_spill] sm:$0xff] %v6268_v24  ;;  %vm1345_vm2 = vcmp.eq.f32.partialorder %v7312_v7, %v1206_v41  ;;  %vm1346_vm3 = vcmp.eq.f32.partialorder %v7313_v9, %v1206_v41  ;;  %2305 = vmin.xlane.f32.xlu2 %v6268_v24  ;;  %v7315_v7 = vld [vmem:[#allocation35_spill] sm:$0xff]  ;;  %v1864_v24 = vcvt.f32.s32 %v5837_v33 }
 0x344   : > { %v1473_v49 = vsel %vm1345_vm2, %v4680_v0, 256  ;;  %v1474_v59 = vsel %vm1346_vm3, %v4684_v6, 256  ;;  %v1846_v18 = vpop.xlane.xlu0 %1845 }
 0x345   : > { %vm2315_vm4 = vcmp.lt.s32.totalorder %v1473_v49, %v1474_v59  ;;  %v1847_v2 = vcvt.f32.s32 %v1846_v18  ;;  %v7318_v18 = vld [vmem:[#allocation33_spill] sm:$0xff] }
 0x346   : > { %v6278_v10 = vsel %vm2315_vm4, %v1473_v49, %v1474_v59  ;;  %v6280_v25 = vpop.xlane.xlu2 %2081  ;;  %v7317_v49 = vld [vmem:[#allocation36_spill] sm:$0xff] }
 0x347   : > { %7314 = vst [vmem:[#allocation45_spill] sm:$0xff] %v6278_v10  ;;  %v1850_v20 = vadd.s32 %v1849_v32, %v1847_v2  ;;  %vm2083_vm5 = vcmp.eq.f32.partialorder %v7315_v7, %v6280_v25  ;;  %v2318_v41 = vshra.s32 %v6278_v10, 16  ;;  %v2093_v59 = vand.u32 65535, %v7317_v49  ;;  %v7319_v32 = vld [vmem:[#allocation37_spill] sm:$0xff] }
 0x348   : > { %v2084_v9 = vsel %vm2083_vm5, %v2079_v51, inf  ;;  %v1865_v51 = vshll.u32 %v1864_v24, 16 }
 0x349   : > { %2545 = vst.msk [vmem:[%s5339_s8 + $0xa8] sm:$0xff] %vm2523_vm10, %v1850_v20  ;;  %2085 = vmin.xlane.f32.xlu0 %v2084_v9  ;;  %vm2630_vm6 = vcmp.eq.s32.totalorder %v4680_v0, %v1850_v20  ;;  %vm2631_vm7 = vcmp.eq.s32.totalorder %v4684_v6, %v1850_v20  ;;  %v6290_v50 = vcvt.s32.f32 %v2318_v41  ;;  %v2095_v49 = vcvt.s32.f32 %v2093_v59 }
 0x34a   : > { %3985 = vmatmul.msk.f32.gmra.mxu2 %vm2630_vm6, %v7203_v8  ;;  %4049 = vmatmul.msk.f32.gmra.mxu3 %vm2631_vm7, %v7203_v8  ;;  %v1209_v42 = vpop.xlane.xlu1 %1208 }
 0x34b   : > { %7316 = vst [vmem:[#allocation24_spill] sm:$0xff] %v6290_v50  ;;  %vm1347_vm8 = vcmp.eq.f32.partialorder %v7318_v18, %v1209_v42  ;;  %vm1348_vm9 = vcmp.eq.f32.partialorder %v7319_v32, %v1209_v42  ;;  %2321 = vmin.xlane.f32.xlu2 %v6290_v50  ;;  %v7320_v18 = vld [vmem:[#allocation49_spill] sm:$0xff]  ;;  %v1880_v50 = vcvt.f32.s32 %v5866_v55 }
 0x34c   : > { %v1475_v33 = vsel %vm1347_vm8, %v4680_v0, 256  ;;  %v1476_v20 = vsel %vm1348_vm9, %v4684_v6, 256  ;;  %v1862_v2 = vpop.xlane.xlu0 %1861 }
 0x34d   : > { %vm2331_vm11 = vcmp.lt.s32.totalorder %v1475_v33, %v1476_v20  ;;  %v1863_v7 = vcvt.f32.s32 %v1862_v2  ;;  %v7322_v2 = vld [vmem:[#allocation38_spill] sm:$0xff] }
 0x34e   : > { %v6300_v41 = vsel %vm2331_vm11, %v1475_v33, %v1476_v20  ;;  %v6302_v9 = vpop.xlane.xlu2 %2097  ;;  %v2109_v33 = vand.u32 65535, %v5871_v54  ;;  %v7321_v20 = vld [vmem:[#allocation14_spill] sm:$0xff] }
 0x34f   : > { %v1866_v10 = vadd.s32 %v1865_v51, %v1863_v7  ;;  %vm2099_vm12 = vcmp.eq.f32.partialorder %v7320_v18, %v6302_v9  ;;  %v2334_v42 = vshra.s32 %v6300_v41, 16  ;;  %v1881_v7 = vshll.u32 %v1880_v50, 16 }
 0x350   : > { %v2100_v32 = vsel %vm2099_vm12, %v2095_v49, inf  ;;  %v2111_v54 = vcvt.s32.f32 %v2109_v33 }
 0x351   : > { %2546 = vst.msk [vmem:[%s5339_s8 + $0xb0] sm:$0xff] %vm2523_vm10, %v1866_v10  ;;  %2101 = vmin.xlane.f32.xlu0 %v2100_v32  ;;  %vm2632_vm13 = vcmp.eq.s32.totalorder %v4680_v0, %v1866_v10  ;;  %vm2633_vm14 = vcmp.eq.s32.totalorder %v4684_v6, %v1866_v10  ;;  %v6312_v24 = vcvt.s32.f32 %v2334_v42 }
 0x352   : > { %3986 = vmatmul.msk.f32.gmra.mxu2 %vm2632_vm13, %v7203_v8  ;;  %4050 = vmatmul.msk.f32.gmra.mxu3 %vm2633_vm14, %v7203_v8  ;;  %v1212_v59 = vpop.xlane.xlu1 %1211 }
 0x353   : > { %vm1349_vm15 = vcmp.eq.f32.partialorder %v7321_v20, %v1212_v59  ;;  %vm1350_vm0 = vcmp.eq.f32.partialorder %v7322_v2, %v1212_v59  ;;  %2337 = vmin.xlane.f32.xlu2 %v6312_v24  ;;  %v1896_v2 = vcvt.f32.s32 %v5907_v11 }
 0x354   : > { %v1477_v55 = vsel %vm1349_vm15, %v4680_v0, 256  ;;  %v1478_v10 = vsel %vm1350_vm0, %v4684_v6, 256  ;;  %v1878_v51 = vpop.xlane.xlu0 %1877 }
 0x355   : > { %vm2347_vm1 = vcmp.lt.s32.totalorder %v1477_v55, %v1478_v10  ;;  %v1879_v49 = vcvt.f32.s32 %v1878_v51 }
 0x356   : > { %v6322_v18 = vsel %vm2347_vm1, %v1477_v55, %v1478_v10  ;;  %v6324_v42 = vpop.xlane.xlu2 %2113  ;;  %v7323_v55 = vld [vmem:[#allocation40_spill] sm:$0xff] }
 0x357   : > { %v1882_v32 = vadd.s32 %v1881_v7, %v1879_v49  ;;  %vm2115_vm2 = vcmp.eq.f32.partialorder %v5884_v60, %v6324_v42  ;;  %v2350_v59 = vshra.s32 %v6322_v18, 16  ;;  %v2125_v60 = vand.u32 65535, %v5912_v26 }
 0x358   : > { %v2116_v20 = vsel %vm2115_vm2, %v2111_v54, inf  ;;  %v1897_v7 = vshll.u32 %v1896_v2, 16 }
 0x359   : > { %2547 = vst.msk [vmem:[%s5339_s8 + $0xb8] sm:$0xff] %vm2523_vm10, %v1882_v32  ;;  %2117 = vmin.xlane.f32.xlu0 %v2116_v20  ;;  %vm2634_vm3 = vcmp.eq.s32.totalorder %v4680_v0, %v1882_v32  ;;  %vm2635_vm4 = vcmp.eq.s32.totalorder %v4684_v6, %v1882_v32  ;;  %v6334_v50 = vcvt.s32.f32 %v2350_v59  ;;  %v2127_v26 = vcvt.s32.f32 %v2125_v60 }
 0x35a   : > { %3987 = vmatmul.msk.f32.gmra.mxu2 %vm2634_vm3, %v7203_v8  ;;  %4051 = vmatmul.msk.f32.gmra.mxu3 %vm2635_vm4, %v7203_v8  ;;  %v1215_v33 = vpop.xlane.xlu1 %1214 }
 0x35b   : > { %vm1351_vm5 = vcmp.eq.f32.partialorder %v5874_v53, %v1215_v33  ;;  %vm1352_vm6 = vcmp.eq.f32.partialorder %v7323_v55, %v1215_v33  ;;  %2353 = vmin.xlane.f32.xlu2 %v6334_v50  ;;  %v1912_v33 = vcvt.f32.s32 %v5947_v57  ;;  %v7325_v55 = vld [vmem:[#allocation15_spill] sm:$0xff] }
 0x35c   : > { %v1479_v11 = vsel %vm1351_vm5, %v4680_v0, 256  ;;  %v1480_v10 = vsel %vm1352_vm6, %v4684_v6, 256  ;;  %v1894_v51 = vpop.xlane.xlu0 %1893 }
 0x35d   : > { %vm2363_vm7 = vcmp.lt.s32.totalorder %v1479_v11, %v1480_v10  ;;  %v1895_v49 = vcvt.f32.s32 %v1894_v51  ;;  %v1913_v51 = vshll.u32 %v1912_v33, 16 }
 0x35e   : > { %v6344_v54 = vsel %vm2363_vm7, %v1479_v11, %v1480_v10  ;;  %v6346_v32 = vpop.xlane.xlu2 %2129 }
 0x35f   : > { %v1898_v59 = vadd.s32 %v1897_v7, %v1895_v49  ;;  %vm2131_vm8 = vcmp.eq.f32.partialorder %v5929_v21, %v6346_v32  ;;  %v2366_v53 = vshra.s32 %v6344_v54, 16  ;;  %v2141_v21 = vand.u32 65535, %v5952_v34 }
 0x360   : > { %v2132_v20 = vsel %vm2131_vm8, %v2127_v26, inf }
 0x361   : > { %2548 = vst.msk [vmem:[%s5339_s8 + $0xc0] sm:$0xff] %vm2523_vm10, %v1898_v59  ;;  %2133 = vmin.xlane.f32.xlu0 %v2132_v20  ;;  %vm2636_vm9 = vcmp.eq.s32.totalorder %v4680_v0, %v1898_v59  ;;  %vm2637_vm11 = vcmp.eq.s32.totalorder %v4684_v6, %v1898_v59  ;;  %v6356_v2 = vcvt.s32.f32 %v2366_v53  ;;  %v2143_v53 = vcvt.s32.f32 %v2141_v21 }
 0x362   : > { %3988 = vmatmul.msk.f32.gmra.mxu2 %vm2636_vm9, %v7203_v8  ;;  %4052 = vmatmul.msk.f32.gmra.mxu3 %vm2637_vm11, %v7203_v8  ;;  %v1218_v60 = vpop.xlane.xlu1 %1217 }
 0x363   : > { %7324 = vst [vmem:[#allocation42_spill] sm:$0xff] %v6356_v2  ;;  %vm1353_vm12 = vcmp.eq.f32.partialorder %v5910_v15, %v1218_v60  ;;  %vm1354_vm13 = vcmp.eq.f32.partialorder %v7325_v55, %v1218_v60  ;;  %2369 = vmin.xlane.f32.xlu2 %v6356_v2  ;;  %v4167_v55 = vld [vmem:[%s4481_s25 + $0x40] sm:$0xff] }
 0x364   : > { %v1481_v57 = vsel %vm1353_vm12, %v4680_v0, 256  ;;  %v1482_v11 = vsel %vm1354_vm13, %v4684_v6, 256  ;;  %v1910_v10 = vpop.xlane.xlu0 %1909 }
 0x365   : > { %vm2379_vm14 = vcmp.lt.s32.totalorder %v1481_v57, %v1482_v11  ;;  %v1911_v7 = vcvt.f32.s32 %v1910_v10  ;;  %v3013_v49 = vpop.f32.mrf.mxu2  ;;  %v3222_v26 = vpop.f32.mrf.mxu3  ;;  %v1928_v10 = vcvt.f32.s32 %v5984_v35 }
 0x366   : > { %v6366_v34 = vsel %vm2379_vm14, %v1481_v57, %v1482_v11  ;;  %v3223_v15 = vadd.f32 %v3222_v26, %v3013_v49  ;;  %v6368_v59 = vpop.xlane.xlu2 %2145  ;;  %v2157_v11 = vand.u32 65535, %v5989_v5 }
 0x367   : > { %v1914_v20 = vadd.s32 %v1913_v51, %v1911_v7  ;;  %vm2147_vm15 = vcmp.eq.f32.partialorder %v5968_v40, %v6368_v59  ;;  %v2382_v60 = vshra.s32 %v6366_v34, 16  ;;  %v1929_v7 = vshll.u32 %v1928_v10, 16 }
 0x368   : > { %3398 = vst [vmem:[%s5899_s28 + $0x40] sm:$0xff] %v3223_v15  ;;  %v3462_v33 = vsub.f32 %v3223_v15, %v4167_v55  ;;  %v2148_v2 = vsel %vm2147_vm15, %v2143_v53, inf  ;;  %v2159_v53 = vcvt.s32.f32 %v2157_v11 }
 0x369   : > { %2549 = vst.msk [vmem:[%s5339_s8 + $0xc8] sm:$0xff] %vm2523_vm10, %v1914_v20  ;;  %2149 = vmin.xlane.f32.xlu0 %v2148_v2  ;;  %vm2638_vm0 = vcmp.eq.s32.totalorder %v4680_v0, %v1914_v20  ;;  %vm2639_vm1 = vcmp.eq.s32.totalorder %v4684_v6, %v1914_v20  ;;  %v6380_v21 = vcvt.s32.f32 %v2382_v60 }
 0x36a   : > { %v3526_v57 = vadd.f32 %v4167_v55, %v3462_v33  ;;  %3989 = vmatmul.msk.f32.gmra.mxu2 %vm2638_vm0, %v7203_v8  ;;  %4053 = vmatmul.msk.f32.gmra.mxu3 %vm2639_vm1, %v7203_v8  ;;  %v1221_v40 = vpop.xlane.xlu1 %1220  ;;  %v4168_v55 = vld [vmem:[%s4481_s25 + $0x48] sm:$0xff] }
 0x36b   : > { %vm1355_vm2 = vcmp.eq.f32.partialorder %v5950_v3, %v1221_v40  ;;  %vm1356_vm3 = vcmp.eq.f32.partialorder %v5957_v14, %v1221_v40  ;;  %2385 = vmin.xlane.f32.xlu2 %v6380_v21 }
 0x36c   : > { %3590 = vst [vmem:[%s5921_s9 + $0x40] sm:$0xff] %v3526_v57  ;;  %v1483_v35 = vsel %vm1355_vm2, %v4680_v0, 256  ;;  %v1484_v2 = vsel %vm1356_vm3, %v4684_v6, 256  ;;  %v1926_v51 = vpop.xlane.xlu0 %1925  ;;  %v1944_v57 = vcvt.f32.s32 %v6019_v62 }
 0x36d   : > { %vm2395_vm4 = vcmp.lt.s32.totalorder %v1483_v35, %v1484_v2  ;;  %v1927_v49 = vcvt.f32.s32 %v1926_v51  ;;  %v3016_v26 = vpop.f32.mrf.mxu2  ;;  %v3225_v5 = vpop.f32.mrf.mxu3 }
 0x36e   : > { %v6391_v15 = vsel %vm2395_vm4, %v1483_v35, %v1484_v2  ;;  %v3226_v3 = vadd.f32 %v3225_v5, %v3016_v26  ;;  %v6393_v14 = vpop.xlane.xlu2 %2161  ;;  %v2173_v35 = vand.u32 65535, %v6024_v12 }
 0x36f   : > { %v1930_v20 = vadd.s32 %v1929_v7, %v1927_v49  ;;  %vm2163_vm5 = vcmp.eq.f32.partialorder %v6003_v22, %v6393_v14  ;;  %v2398_v60 = vshra.s32 %v6391_v15, 16  ;;  %v1945_v7 = vshll.u32 %v1944_v57, 16 }
 0x370   : > { %3399 = vst [vmem:[%s5899_s28 + $0x48] sm:$0xff] %v3226_v3  ;;  %v3463_v33 = vsub.f32 %v3226_v3, %v4168_v55  ;;  %v2164_v10 = vsel %vm2163_vm5, %v2159_v53, inf  ;;  %v2175_v3 = vcvt.s32.f32 %v2173_v35 }
 0x371   : > { %2550 = vst.msk [vmem:[%s5339_s8 + $0xd0] sm:$0xff] %vm2523_vm10, %v1930_v20  ;;  %2165 = vmin.xlane.f32.xlu0 %v2164_v10  ;;  %vm2640_vm6 = vcmp.eq.s32.totalorder %v4680_v0, %v1930_v20  ;;  %vm2641_vm7 = vcmp.eq.s32.totalorder %v4684_v6, %v1930_v20  ;;  %v6405_v40 = vcvt.s32.f32 %v2398_v60  ;;  %v4169_v60 = vld [vmem:[%s4481_s25 + $0x50] sm:$0xff]  ;;  %v1960_v10 = vcvt.f32.s32 %v6052_v48  ;;  %v7326_v48 = vld [vmem:[#allocation39_spill] sm:$0xff] }
 0x372   : > { %v3527_v11 = vadd.f32 %v4168_v55, %v3463_v33  ;;  %3990 = vmatmul.msk.f32.gmra.mxu2 %vm2640_vm6, %v7203_v8  ;;  %4054 = vmatmul.msk.f32.gmra.mxu3 %vm2641_vm7, %v7203_v8  ;;  %v1224_v22 = vpop.xlane.xlu1 %1223 }
 0x373   : > { %vm1357_vm8 = vcmp.eq.f32.partialorder %v5987_v19, %v1224_v22  ;;  %vm1358_vm9 = vcmp.eq.f32.partialorder %v5992_v61, %v1224_v22  ;;  %2401 = vmin.xlane.f32.xlu2 %v6405_v40 }
 0x374   : > { %3591 = vst [vmem:[%s5921_s9 + $0x48] sm:$0xff] %v3527_v11  ;;  %v1485_v62 = vsel %vm1357_vm8, %v4680_v0, 256  ;;  %v1486_v2 = vsel %vm1358_vm9, %v4684_v6, 256  ;;  %v1942_v51 = vpop.xlane.xlu0 %1941 }
 0x375   : > { %vm2411_vm11 = vcmp.lt.s32.totalorder %v1485_v62, %v1486_v2  ;;  %v1943_v49 = vcvt.f32.s32 %v1942_v51  ;;  %v3019_v26 = vpop.f32.mrf.mxu2  ;;  %v3228_v12 = vpop.f32.mrf.mxu3 }
 0x376   : > { %v6416_v5 = vsel %vm2411_vm11, %v1485_v62, %v1486_v2  ;;  %v3229_v19 = vadd.f32 %v3228_v12, %v3019_v26  ;;  %v6418_v61 = vpop.xlane.xlu2 %2177  ;;  %v1961_v2 = vshll.u32 %v1960_v10, 16 }
 0x377   : > { %v1946_v53 = vadd.s32 %v1945_v7, %v1943_v49  ;;  %vm2179_vm12 = vcmp.eq.f32.partialorder %v6038_v23, %v6418_v61  ;;  %v2414_v20 = vshra.s32 %v6416_v5, 16  ;;  %v2189_v23 = vand.u32 65535, %v6057_v38 }
 0x378   : > { %3400 = vst [vmem:[%s5899_s28 + $0x50] sm:$0xff] %v3229_v19  ;;  %v3464_v55 = vsub.f32 %v3229_v19, %v4169_v60  ;;  %v2180_v33 = vsel %vm2179_vm12, %v2175_v3, inf }
 0x379   : > { %2551 = vst.msk [vmem:[%s5339_s8 + $0xd8] sm:$0xff] %vm2523_vm10, %v1946_v53  ;;  %2181 = vmin.xlane.f32.xlu0 %v2180_v33  ;;  %vm2642_vm13 = vcmp.eq.s32.totalorder %v4680_v0, %v1946_v53  ;;  %vm2643_vm14 = vcmp.eq.s32.totalorder %v4684_v6, %v1946_v53  ;;  %v6430_v57 = vcvt.s32.f32 %v2414_v20  ;;  %v2191_v19 = vcvt.s32.f32 %v2189_v23  ;;  %v4170_v20 = vld [vmem:[%s4481_s25 + $0x58] sm:$0xff] }
 0x37a   : > { %v3528_v11 = vadd.f32 %v4169_v60, %v3464_v55  ;;  %3991 = vmatmul.msk.f32.gmra.mxu2 %vm2642_vm13, %v7203_v8  ;;  %4055 = vmatmul.msk.f32.gmra.mxu3 %vm2643_vm14, %v7203_v8  ;;  %v1227_v22 = vpop.xlane.xlu1 %1226  ;;  %v1976_v33 = vcvt.f32.s32 %v6085_v17 }
 0x37b   : > { %vm1359_vm15 = vcmp.eq.f32.partialorder %v6022_v36, %v1227_v22  ;;  %vm1360_vm0 = vcmp.eq.f32.partialorder %v7326_v48, %v1227_v22  ;;  %2417 = vmin.xlane.f32.xlu2 %v6430_v57 }
 0x37c   : > { %3592 = vst [vmem:[%s5921_s9 + $0x50] sm:$0xff] %v3528_v11  ;;  %v1487_v35 = vsel %vm1359_vm15, %v4680_v0, 256  ;;  %v1488_v62 = vsel %vm1360_vm0, %v4684_v6, 256  ;;  %v1958_v38 = vpop.xlane.xlu0 %1957  ;;  %v1977_v11 = vshll.u32 %v1976_v33, 16 }
 0x37d   : > { %vm2427_vm1 = vcmp.lt.s32.totalorder %v1487_v35, %v1488_v62  ;;  %v1959_v51 = vcvt.f32.s32 %v1958_v38  ;;  %v3022_v7 = vpop.f32.mrf.mxu2  ;;  %v3231_v49 = vpop.f32.mrf.mxu3 }
 0x37e   : > { %v6441_v26 = vsel %vm2427_vm1, %v1487_v35, %v1488_v62  ;;  %v3232_v36 = vadd.f32 %v3231_v49, %v3022_v7  ;;  %v6443_v12 = vpop.xlane.xlu2 %2193 }
 0x37f   : > { %v1962_v3 = vadd.s32 %v1961_v2, %v1959_v51  ;;  %vm2195_vm2 = vcmp.eq.f32.partialorder %v6071_v28, %v6443_v12  ;;  %v2430_v53 = vshra.s32 %v6441_v26, 16  ;;  %v2205_v28 = vand.u32 65535, %v6090_v47  ;;  %v4171_v51 = vld [vmem:[%s4481_s25 + $0x60] sm:$0xff] }
 0x380   : > { %3401 = vst [vmem:[%s5899_s28 + $0x58] sm:$0xff] %v3232_v36  ;;  %v3465_v60 = vsub.f32 %v3232_v36, %v4170_v20  ;;  %v2196_v55 = vsel %vm2195_vm2, %v2191_v19, inf  ;;  %v1992_v36 = vcvt.f32.s32 %v6118_v13  ;;  %v2221_v19 = vand.u32 65535, %v6123_v37  ;;  %v4172_v37 = vld [vmem:[%s4481_s25 + $0x68] sm:$0xff] }
 0x381   : > { %2552 = vst.msk [vmem:[%s5339_s8 + $0xe0] sm:$0xff] %vm2523_vm10, %v1962_v3  ;;  %2197 = vmin.xlane.f32.xlu0 %v2196_v55  ;;  %vm2644_vm3 = vcmp.eq.s32.totalorder %v4680_v0, %v1962_v3  ;;  %vm2645_vm4 = vcmp.eq.s32.totalorder %v4684_v6, %v1962_v3  ;;  %v6455_v10 = vcvt.s32.f32 %v2430_v53  ;;  %v2207_v47 = vcvt.s32.f32 %v2205_v28 }
 0x382   : > { %v3529_v23 = vadd.f32 %v4170_v20, %v3465_v60  ;;  %3992 = vmatmul.msk.f32.gmra.mxu2 %vm2644_vm3, %v7203_v8  ;;  %4056 = vmatmul.msk.f32.gmra.mxu3 %vm2645_vm4, %v7203_v8  ;;  %v1993_v13 = vshll.u32 %v1992_v36, 16  ;;  %v2223_v28 = vcvt.s32.f32 %v2221_v19 }
 0x383   : > { %2433 = vmin.xlane.f32.xlu1 %v6455_v10 }
 0x384   : > { %3593 = vst [vmem:[%s5921_s9 + $0x58] sm:$0xff] %v3529_v23  ;;  %v1974_v17 = vpop.xlane.xlu0 %1973 }
 0x385   : > { %v1975_v22 = vcvt.f32.s32 %v1974_v17  ;;  %v3025_v48 = vpop.f32.mrf.mxu2  ;;  %v3234_v35 = vpop.f32.mrf.mxu3 }
 0x386   : > { %v3235_v62 = vadd.f32 %v3234_v35, %v3025_v48  ;;  %v6462_v38 = vpop.xlane.xlu2 %2209  ;;  %v2237_v48 = vand.u32 65535, %v6156_v39  ;;  %v4173_v39 = vld [vmem:[%s4481_s25 + $0x70] sm:$0xff] }
 0x387   : > { %v1978_v2 = vadd.s32 %v1977_v11, %v1975_v22  ;;  %vm2211_vm5 = vcmp.eq.f32.partialorder %v6104_v44, %v6462_v38  ;;  %v2008_v22 = vcvt.f32.s32 %v6151_v43 }
 0x388   : > { %3402 = vst [vmem:[%s5899_s28 + $0x60] sm:$0xff] %v3235_v62  ;;  %v3466_v7 = vsub.f32 %v3235_v62, %v4171_v51  ;;  %v2212_v49 = vsel %vm2211_vm5, %v2207_v47, inf }
 0x389   : > { %2553 = vst.msk [vmem:[%s5339_s8 + $0xe8] sm:$0xff] %vm2523_vm10, %v1978_v2  ;;  %2213 = vmin.xlane.f32.xlu0 %v2212_v49  ;;  %vm2646_vm6 = vcmp.eq.s32.totalorder %v4680_v0, %v1978_v2  ;;  %vm2647_vm7 = vcmp.eq.s32.totalorder %v4684_v6, %v1978_v2  ;;  %v2009_v43 = vshll.u32 %v2008_v22, 16  ;;  %v2239_v49 = vcvt.s32.f32 %v2237_v48 }
 0x38a   : > { %v3530_v3 = vadd.f32 %v4171_v51, %v3466_v7  ;;  %3993 = vmatmul.msk.f32.gmra.mxu2 %vm2646_vm6, %v7203_v8  ;;  %4057 = vmatmul.msk.f32.gmra.mxu3 %vm2647_vm7, %v7203_v8  ;;  %v2040_v48 = vcvt.f32.s32 %v6212_v27 }
 0x38c   : > { %3594 = vst [vmem:[%s5921_s9 + $0x60] sm:$0xff] %v3530_v3  ;;  %v1990_v44 = vpop.xlane.xlu0 %1989  ;;  %v2041_v27 = vshll.u32 %v2040_v48, 16 }
 0x38d   : > { %v1991_v53 = vcvt.f32.s32 %v1990_v44  ;;  %v3028_v20 = vpop.f32.mrf.mxu2  ;;  %v3237_v60 = vpop.f32.mrf.mxu3  ;;  %v2024_v44 = vcvt.f32.s32 %v6182_v56 }
 0x38e   : > { %v3238_v55 = vadd.f32 %v3237_v60, %v3028_v20  ;;  %v6477_v33 = vpop.xlane.xlu2 %2225 }
 0x38f   : > { %v1994_v23 = vadd.s32 %v1993_v13, %v1991_v53  ;;  %vm2227_vm8 = vcmp.eq.f32.partialorder %v6137_v29, %v6477_v33  ;;  %v2253_v13 = vand.u32 65535, %v6187_v58  ;;  %v2025_v56 = vshll.u32 %v2024_v44, 16  ;;  %v4174_v58 = vld [vmem:[%s4481_s25 + $0x78] sm:$0xff] }
 0x390   : > { %3403 = vst [vmem:[%s5899_s28 + $0x68] sm:$0xff] %v3238_v55  ;;  %v3467_v17 = vsub.f32 %v3238_v55, %v4172_v37  ;;  %v2228_v11 = vsel %vm2227_vm8, %v2223_v28, inf }
 0x391   : > { %2554 = vst.msk [vmem:[%s5339_s8 + $0xf0] sm:$0xff] %vm2523_vm10, %v1994_v23  ;;  %2229 = vmin.xlane.f32.xlu0 %v2228_v11  ;;  %vm2648_vm9 = vcmp.eq.s32.totalorder %v4680_v0, %v1994_v23  ;;  %vm2649_vm11 = vcmp.eq.s32.totalorder %v4684_v6, %v1994_v23 }
 0x392   : > { %v3531_v35 = vadd.f32 %v4172_v37, %v3467_v17  ;;  %3994 = vmatmul.msk.f32.gmra.mxu2 %vm2648_vm9, %v7203_v8  ;;  %4058 = vmatmul.msk.f32.gmra.mxu3 %vm2649_vm11, %v7203_v8  ;;  %v2255_v37 = vcvt.s32.f32 %v2253_v13 }
 0x394   : > { %3595 = vst [vmem:[%s5921_s9 + $0x68] sm:$0xff] %v3531_v35  ;;  %v2006_v29 = vpop.xlane.xlu0 %2005  ;;  %v2269_v35 = vand.u32 65535, %v6214_v63  ;;  %v4175_v63 = vld [vmem:[%s4481_s25 + $0x80] sm:$0xff] }
 0x395   : > { %v2007_v62 = vcvt.f32.s32 %v2006_v29  ;;  %v3031_v47 = vpop.f32.mrf.mxu2  ;;  %v3240_v2 = vpop.f32.mrf.mxu3 }
 0x396   : > { %v3241_v51 = vadd.f32 %v3240_v2, %v3031_v47  ;;  %v6492_v7 = vpop.xlane.xlu2 %2241 }
 0x397   : > { %v2010_v36 = vadd.s32 %v2009_v43, %v2007_v62  ;;  %vm2243_vm12 = vcmp.eq.f32.partialorder %v6170_v52, %v6492_v7 }
 0x398   : > { %3404 = vst [vmem:[%s5899_s28 + $0x70] sm:$0xff] %v3241_v51  ;;  %v3468_v19 = vsub.f32 %v3241_v51, %v4173_v39  ;;  %v2244_v3 = vsel %vm2243_vm12, %v2239_v49, inf  ;;  %v2271_v49 = vcvt.s32.f32 %v2269_v35 }
 0x399   : > { %2555 = vst.msk [vmem:[%s5339_s8 + $0xf8] sm:$0xff] %vm2523_vm10, %v2010_v36  ;;  %2245 = vmin.xlane.f32.xlu0 %v2244_v3  ;;  %vm2650_vm13 = vcmp.eq.s32.totalorder %v4680_v0, %v2010_v36  ;;  %vm2651_vm14 = vcmp.eq.s32.totalorder %v4684_v6, %v2010_v36  ;;  %v2056_v3 = vcvt.f32.s32 %v6236_v46 }
 0x39a   : > { %v3532_v53 = vadd.f32 %v4173_v39, %v3468_v19  ;;  %3995 = vmatmul.msk.f32.gmra.mxu2 %vm2650_vm13, %v7203_v8  ;;  %4059 = vmatmul.msk.f32.gmra.mxu3 %vm2651_vm14, %v7203_v8 }
 0x39b   : > { %v2057_v46 = vshll.u32 %v2056_v3, 16 }
 0x39c   : > { %3596 = vst [vmem:[%s5921_s9 + $0x70] sm:$0xff] %v3532_v53  ;;  %v2022_v52 = vpop.xlane.xlu0 %2021 }
 0x39d   : > { %v2023_v20 = vcvt.f32.s32 %v2022_v52  ;;  %v3034_v60 = vpop.f32.mrf.mxu2  ;;  %v3243_v55 = vpop.f32.mrf.mxu3 }
 0x39e   : > { %v3244_v28 = vadd.f32 %v3243_v55, %v3034_v60  ;;  %v6507_v23 = vpop.xlane.xlu2 %2257 }
 0x39f   : > { %v2026_v17 = vadd.s32 %v2025_v56, %v2023_v20  ;;  %vm2259_vm15 = vcmp.eq.f32.partialorder %v6200_v45, %v6507_v23 }
 0x3a0   : > { %3405 = vst [vmem:[%s5899_s28 + $0x78] sm:$0xff] %v3244_v28  ;;  %v3469_v11 = vsub.f32 %v3244_v28, %v4174_v58  ;;  %v2260_v22 = vsel %vm2259_vm15, %v2255_v37, inf  ;;  %v4176_v37 = vld [vmem:[%s4481_s25 + $0x88] sm:$0xff] }
 0x3a1   : > { %2556 = vst.msk [vmem:[%s5339_s8 + $0x100] sm:$0xff] %vm2523_vm10, %v2026_v17  ;;  %2261 = vmin.xlane.f32.xlu0 %v2260_v22  ;;  %vm2652_vm0 = vcmp.eq.s32.totalorder %v4680_v0, %v2026_v17  ;;  %vm2653_vm1 = vcmp.eq.s32.totalorder %v4684_v6, %v2026_v17  ;;  %v1230_v22 = vpop.xlane.xlu1 %1229 }
 0x3a2   : > { %v3533_v29 = vadd.f32 %v4174_v58, %v3469_v11  ;;  %3996 = vmatmul.msk.f32.gmra.mxu2 %vm2652_vm0, %v7203_v8  ;;  %4060 = vmatmul.msk.f32.gmra.mxu3 %vm2653_vm1, %v7203_v8  ;;  %v2072_v58 = vcvt.f32.s32 %v6258_v16 }
 0x3a4   : > { %3597 = vst [vmem:[%s5921_s9 + $0x78] sm:$0xff] %v3533_v29  ;;  %v2038_v45 = vpop.xlane.xlu0 %2037  ;;  %v2073_v48 = vshll.u32 %v2072_v58, 16 }
 0x3a5   : > { %v2039_v43 = vcvt.f32.s32 %v2038_v45  ;;  %v3037_v62 = vpop.f32.mrf.mxu2  ;;  %v3246_v47 = vpop.f32.mrf.mxu3 }
 0x3a6   : > { %v3247_v2 = vadd.f32 %v3246_v47, %v3037_v62  ;;  %v6522_v51 = vpop.xlane.xlu2 %2273 }
 0x3a7   : > { %v2042_v36 = vadd.s32 %v2041_v27, %v2039_v43  ;;  %vm2275_vm2 = vcmp.eq.f32.partialorder %v6224_v4, %v6522_v51  ;;  %v2285_v4 = vand.u32 65535, %v6234_v30 }
 0x3a8   : > { %3406 = vst [vmem:[%s5899_s28 + $0x80] sm:$0xff] %v3247_v2  ;;  %v3470_v39 = vsub.f32 %v3247_v2, %v4175_v63  ;;  %v2276_v19 = vsel %vm2275_vm2, %v2271_v49, inf  ;;  %v7327_v2 = vld [vmem:[#allocation25_spill] sm:$0xff] }
 0x3a9   : > { %2557 = vst.msk [vmem:[%s5339_s8 + $0x108] sm:$0xff] %vm2523_vm10, %v2042_v36  ;;  %2277 = vmin.xlane.f32.xlu0 %v2276_v19  ;;  %vm2654_vm3 = vcmp.eq.s32.totalorder %v4680_v0, %v2042_v36  ;;  %vm2655_vm4 = vcmp.eq.s32.totalorder %v4684_v6, %v2042_v36  ;;  %v2287_v55 = vcvt.s32.f32 %v2285_v4  ;;  %v4177_v49 = vld [vmem:[%s4481_s25 + $0x90] sm:$0xff] }
 0x3aa   : > { %v3534_v44 = vadd.f32 %v4175_v63, %v3470_v39  ;;  %3997 = vmatmul.msk.f32.gmra.mxu2 %vm2654_vm3, %v7203_v8  ;;  %4061 = vmatmul.msk.f32.gmra.mxu3 %vm2655_vm4, %v7203_v8  ;;  %v2088_v63 = vcvt.f32.s32 %v6280_v25  ;;  %v7328_v19 = vld [vmem:[#allocation45_spill] sm:$0xff] }
 0x3ab   : > { %v2317_v3 = vand.u32 65535, %v7328_v19 }
 0x3ac   : > { %3598 = vst [vmem:[%s5921_s9 + $0x80] sm:$0xff] %v3534_v44  ;;  %v2054_v13 = vpop.xlane.xlu0 %2053  ;;  %v2089_v4 = vshll.u32 %v2088_v63, 16 }
 0x3ad   : > { %v2055_v53 = vcvt.f32.s32 %v2054_v13  ;;  %v3040_v52 = vpop.f32.mrf.mxu2  ;;  %v3249_v56 = vpop.f32.mrf.mxu3 }
 0x3ae   : > { %v3250_v20 = vadd.f32 %v3249_v56, %v3040_v52  ;;  %v6537_v60 = vpop.xlane.xlu2 %2289 }
 0x3af   : > { %v2058_v28 = vadd.s32 %v2057_v46, %v2055_v53  ;;  %vm2291_vm5 = vcmp.eq.f32.partialorder %v6246_v1, %v6537_v60  ;;  %v2301_v1 = vand.u32 65535, %v6256_v31  ;;  %v1233_v53 = vpop.xlane.xlu1 %1232 }
 0x3b0   : > { %3407 = vst [vmem:[%s5899_s28 + $0x88] sm:$0xff] %v3250_v20  ;;  %v3471_v17 = vsub.f32 %v3250_v20, %v4176_v37  ;;  %v2292_v30 = vsel %vm2291_vm5, %v2287_v55, inf  ;;  %v2319_v20 = vcvt.s32.f32 %v2317_v3  ;;  %v7329_v55 = vld [vmem:[#allocation41_spill] sm:$0xff]  ;;  %v4179_v3 = vld [vmem:[%s4481_s25 + $0xa0] sm:$0xff] }
 0x3b1   : > { %2558 = vst.msk [vmem:[%s5339_s8 + $0x110] sm:$0xff] %vm2523_vm10, %v2058_v28  ;;  %2293 = vmin.xlane.f32.xlu0 %v2292_v30  ;;  %vm2656_vm6 = vcmp.eq.s32.totalorder %v4680_v0, %v2058_v28  ;;  %vm2657_vm7 = vcmp.eq.s32.totalorder %v4684_v6, %v2058_v28  ;;  %v2303_v62 = vcvt.s32.f32 %v2301_v1  ;;  %vm1361_vm12 = vcmp.eq.f32.partialorder %v7329_v55, %v1230_v22  ;;  %v7330_v28 = vld [vmem:[#allocation17_spill] sm:$0xff]  ;;  %v4178_v30 = vld [vmem:[%s4481_s25 + $0x98] sm:$0xff]  ;;  %v7335_v55 = vld [vmem:[#allocation20_spill] sm:$0xff] }
 0x3b2   : > { %v3535_v11 = vadd.f32 %v4176_v37, %v3471_v17  ;;  %3998 = vmatmul.msk.f32.gmra.mxu2 %vm2656_vm6, %v7203_v8  ;;  %4062 = vmatmul.msk.f32.gmra.mxu3 %vm2657_vm7, %v7203_v8  ;;  %vm1362_vm13 = vcmp.eq.f32.partialorder %v7330_v28, %v1230_v22  ;;  %v7331_v17 = vld [vmem:[#allocation24_spill] sm:$0xff]  ;;  %v2104_v1 = vcvt.f32.s32 %v6302_v9  ;;  %v1489_v22 = vsel %vm1361_vm12, %v4680_v0, 256 }
 0x3b4   : > { %3599 = vst [vmem:[%s5921_s9 + $0x88] sm:$0xff] %v3535_v11  ;;  %v2070_v16 = vpop.xlane.xlu0 %2069 }
 0x3b5   : > { %v2071_v35 = vcvt.f32.s32 %v2070_v16  ;;  %v3043_v29 = vpop.f32.mrf.mxu2  ;;  %v3252_v45 = vpop.f32.mrf.mxu3  ;;  %v1490_v16 = vsel %vm1362_vm13, %v4684_v6, 256 }
 0x3b6   : > { %v3253_v27 = vadd.f32 %v3252_v45, %v3043_v29  ;;  %v6552_v43 = vpop.xlane.xlu2 %2305  ;;  %v2105_v29 = vshll.u32 %v2104_v1, 16  ;;  %vm2443_vm1 = vcmp.lt.s32.totalorder %v1489_v22, %v1490_v16 }
 0x3b7   : > { %v2074_v47 = vadd.s32 %v2073_v48, %v2071_v35  ;;  %vm2307_vm8 = vcmp.eq.f32.partialorder %v7327_v2, %v6552_v43  ;;  %v2333_v35 = vand.u32 65535, %v6300_v41  ;;  %v7333_v2 = vld [vmem:[#allocation18_spill] sm:$0xff]  ;;  %v2120_v41 = vcvt.f32.s32 %v6324_v42  ;;  %v1236_v19 = vpop.xlane.xlu1 %1235 }
 0x3b8   : > { %3408 = vst [vmem:[%s5899_s28 + $0x90] sm:$0xff] %v3253_v27  ;;  %v3472_v31 = vsub.f32 %v3253_v27, %v4177_v49  ;;  %v2308_v36 = vsel %vm2307_vm8, %v2303_v62, inf  ;;  %vm1364_vm3 = vcmp.eq.f32.partialorder %v7333_v2, %v1233_v53  ;;  %v2349_v42 = vand.u32 65535, %v6322_v18 }
 0x3b9   : > { %2559 = vst.msk [vmem:[%s5339_s8 + $0x118] sm:$0xff] %vm2523_vm10, %v2074_v47  ;;  %2309 = vmin.xlane.f32.xlu0 %v2308_v36  ;;  %vm2658_vm9 = vcmp.eq.s32.totalorder %v4680_v0, %v2074_v47  ;;  %vm2659_vm11 = vcmp.eq.s32.totalorder %v4684_v6, %v2074_v47  ;;  %v7332_v47 = vld [vmem:[#allocation16_spill] sm:$0xff]  ;;  %v2335_v36 = vcvt.s32.f32 %v2333_v35 }
 0x3ba   : > { %v3536_v39 = vadd.f32 %v4177_v49, %v3472_v31  ;;  %3999 = vmatmul.msk.f32.gmra.mxu2 %vm2658_vm9, %v7203_v8  ;;  %4063 = vmatmul.msk.f32.gmra.mxu3 %vm2659_vm11, %v7203_v8  ;;  %vm1363_vm2 = vcmp.eq.f32.partialorder %v7332_v47, %v1233_v53  ;;  %vm1366_vm9 = vcmp.eq.f32.partialorder %v7335_v55, %v1236_v19  ;;  %v2351_v18 = vcvt.s32.f32 %v2349_v42  ;;  %v4180_v35 = vld [vmem:[%s4481_s25 + $0xa8] sm:$0xff]  ;;  %v4181_v42 = vld [vmem:[%s4481_s25 + $0xb0] sm:$0xff] }
 0x3bb   : > { %v2365_v47 = vand.u32 65535, %v6344_v54  ;;  %v7337_v54 = vld [vmem:[#allocation21_spill] sm:$0xff] }
 0x3bc   : > { %3600 = vst [vmem:[%s5921_s9 + $0x90] sm:$0xff] %v3536_v39  ;;  %v2086_v44 = vpop.xlane.xlu0 %2085  ;;  %v6593_v39 = vsel %vm2443_vm1, %v1489_v22, %v1490_v16 }
 0x3bd   : > { %v2087_v25 = vcvt.f32.s32 %v2086_v44  ;;  %v3046_v13 = vpop.f32.mrf.mxu2  ;;  %v3255_v46 = vpop.f32.mrf.mxu3 }
 0x3be   : > { %v3256_v52 = vadd.f32 %v3255_v46, %v3046_v13  ;;  %v6567_v56 = vpop.xlane.xlu2 %2321  ;;  %v1492_v13 = vsel %vm1364_vm3, %v4684_v6, 256  ;;  %v2446_v46 = vshra.s32 %v6593_v39, 16 }
 0x3bf   : > { %v2090_v37 = vadd.s32 %v2089_v4, %v2087_v25  ;;  %vm2323_vm14 = vcmp.eq.f32.partialorder %v7331_v17, %v6567_v56  ;;  %v1491_v25 = vsel %vm1363_vm2, %v4680_v0, 256 }
 0x3c0   : > { %3409 = vst [vmem:[%s5899_s28 + $0x98] sm:$0xff] %v3256_v52  ;;  %v3473_v58 = vsub.f32 %v3256_v52, %v4178_v30  ;;  %v2324_v11 = vsel %vm2323_vm14, %v2319_v20, inf  ;;  %vm2459_vm7 = vcmp.lt.s32.totalorder %v1491_v25, %v1492_v13  ;;  %v2121_v52 = vshll.u32 %v2120_v41, 16  ;;  %v7334_v20 = vld [vmem:[#allocation19_spill] sm:$0xff] }
 0x3c1   : > { %2560 = vst.msk [vmem:[%s5339_s8 + $0x120] sm:$0xff] %vm2523_vm10, %v2090_v37  ;;  %2325 = vmin.xlane.f32.xlu0 %v2324_v11  ;;  %vm2660_vm15 = vcmp.eq.s32.totalorder %v4680_v0, %v2090_v37  ;;  %vm2661_vm0 = vcmp.eq.s32.totalorder %v4684_v6, %v2090_v37  ;;  %vm1365_vm8 = vcmp.eq.f32.partialorder %v7334_v20, %v1236_v19  ;;  %v6616_v22 = vcvt.s32.f32 %v2446_v46 }
 0x3c2   : > { %v3537_v48 = vadd.f32 %v4178_v30, %v3473_v58  ;;  %4000 = vmatmul.msk.f32.gmra.mxu2 %vm2660_vm15, %v7203_v8  ;;  %4064 = vmatmul.msk.f32.gmra.mxu3 %vm2661_vm0, %v7203_v8  ;;  %v6612_v11 = vsel %vm2459_vm7, %v1491_v25, %v1492_v13  ;;  %v1493_v16 = vsel %vm1365_vm8, %v4680_v0, 256  ;;  %v7336_v25 = vld [vmem:[#allocation23_spill] sm:$0xff]  ;;  %v2381_v20 = vand.u32 65535, %v6366_v34 }
 0x3c4   : > { %3601 = vst [vmem:[%s5921_s9 + $0x98] sm:$0xff] %v3537_v48  ;;  %v2102_v9 = vpop.xlane.xlu0 %2101  ;;  %v1494_v48 = vsel %vm1366_vm9, %v4684_v6, 256 }
 0x3c5   : > { %v2103_v45 = vcvt.f32.s32 %v2102_v9  ;;  %v3049_v27 = vpop.f32.mrf.mxu2  ;;  %v3258_v62 = vpop.f32.mrf.mxu3  ;;  %vm2475_vm14 = vcmp.lt.s32.totalorder %v1493_v16, %v1494_v48 }
 0x3c6   : > { %v3259_v49 = vadd.f32 %v3258_v62, %v3049_v27  ;;  %v6588_v31 = vpop.xlane.xlu2 %2337  ;;  %v2462_v62 = vshra.s32 %v6612_v11, 16  ;;  %v6633_v41 = vsel %vm2475_vm14, %v1493_v16, %v1494_v48 }
 0x3c7   : > { %v2106_v63 = vadd.s32 %v2105_v29, %v2103_v45  ;;  %vm2339_vm4 = vcmp.eq.f32.partialorder %v6312_v24, %v6588_v31  ;;  %v2136_v45 = vcvt.f32.s32 %v6346_v32 }
 0x3c8   : > { %3410 = vst [vmem:[%s5899_s28 + $0xa0] sm:$0xff] %v3259_v49  ;;  %v3474_v44 = vsub.f32 %v3259_v49, %v4179_v3  ;;  %v2340_v4 = vsel %vm2339_vm4, %v2335_v36, inf }
 0x3c9   : > { %2561 = vst.msk [vmem:[%s5339_s8 + $0x128] sm:$0xff] %vm2523_vm10, %v2106_v63  ;;  %2341 = vmin.xlane.f32.xlu0 %v2340_v4  ;;  %vm2662_vm5 = vcmp.eq.s32.totalorder %v4680_v0, %v2106_v63  ;;  %vm2663_vm6 = vcmp.eq.s32.totalorder %v4684_v6, %v2106_v63  ;;  %v2137_v2 = vshll.u32 %v2136_v45, 16  ;;  %v2367_v4 = vcvt.s32.f32 %v2365_v47  ;;  %v7339_v45 = vld [vmem:[#allocation22_spill] sm:$0xff] }
 0x3ca   : > { %v3538_v24 = vadd.f32 %v4179_v3, %v3474_v44  ;;  %4001 = vmatmul.msk.f32.gmra.mxu2 %vm2662_vm5, %v7203_v8  ;;  %4065 = vmatmul.msk.f32.gmra.mxu3 %vm2663_vm6, %v7203_v8  ;;  %v6637_v44 = vcvt.s32.f32 %v2462_v62  ;;  %v4182_v47 = vld [vmem:[%s4481_s25 + $0xb8] sm:$0xff] }
 0x3cc   : > { %3602 = vst [vmem:[%s5921_s9 + $0xa0] sm:$0xff] %v3538_v24  ;;  %v2118_v53 = vpop.xlane.xlu0 %2117  ;;  %v7338_v24 = vld [vmem:[#allocation42_spill] sm:$0xff] }
 0x3cd   : > { %v2119_v28 = vcvt.f32.s32 %v2118_v53  ;;  %v3052_v37 = vpop.f32.mrf.mxu2  ;;  %v3261_v17 = vpop.f32.mrf.mxu3 }
 0x3ce   : > { %v3262_v30 = vadd.f32 %v3261_v17, %v3052_v37  ;;  %v6610_v58 = vpop.xlane.xlu2 %2353 }
 0x3cf   : > { %v2122_v1 = vadd.s32 %v2121_v52, %v2119_v28  ;;  %vm2355_vm11 = vcmp.eq.f32.partialorder %v6334_v50, %v6610_v58  ;;  %v1239_v50 = vpop.xlane.xlu1 %1238  ;;  %v2152_v52 = vcvt.f32.s32 %v6368_v59  ;;  %v2478_v59 = vshra.s32 %v6633_v41, 16 }
 0x3d0   : > { %3411 = vst [vmem:[%s5899_s28 + $0xa8] sm:$0xff] %v3262_v30  ;;  %v3475_v9 = vsub.f32 %v3262_v30, %v4180_v35  ;;  %v2356_v29 = vsel %vm2355_vm11, %v2351_v18, inf  ;;  %vm1367_vm15 = vcmp.eq.f32.partialorder %v7336_v25, %v1239_v50  ;;  %vm1368_vm0 = vcmp.eq.f32.partialorder %v7337_v54, %v1239_v50  ;;  %v7340_v50 = vld [vmem:[#allocation43_spill] sm:$0xff] }
 0x3d1   : > { %2562 = vst.msk [vmem:[%s5339_s8 + $0x130] sm:$0xff] %vm2523_vm10, %v2122_v1  ;;  %2357 = vmin.xlane.f32.xlu2 %v2356_v29  ;;  %2449 = vmin.xlane.f32.xlu0 %v6616_v22  ;;  %vm2664_vm12 = vcmp.eq.s32.totalorder %v4680_v0, %v2122_v1  ;;  %vm2665_vm13 = vcmp.eq.s32.totalorder %v4684_v6, %v2122_v1  ;;  %v1495_v55 = vsel %vm1367_vm15, %v4680_v0, 256  ;;  %v1496_v28 = vsel %vm1368_vm0, %v4684_v6, 256 }
 0x3d2   : > { %v3539_v27 = vadd.f32 %v4180_v35, %v3475_v9  ;;  %4002 = vmatmul.msk.f32.gmra.mxu2 %vm2664_vm12, %v7203_v8  ;;  %4066 = vmatmul.msk.f32.gmra.mxu3 %vm2665_vm13, %v7203_v8  ;;  %v2153_v18 = vshll.u32 %v2152_v52, 16  ;;  %vm2491_vm4 = vcmp.lt.s32.totalorder %v1495_v55, %v1496_v28  ;;  %v2383_v9 = vcvt.s32.f32 %v2381_v20 }
 0x3d3   : > { %v6660_v29 = vcvt.s32.f32 %v2478_v59  ;;  %v6666_v62 = vsel %vm2491_vm4, %v1495_v55, %v1496_v28  ;;  %v4183_v55 = vld [vmem:[%s4481_s25 + $0xc0] sm:$0xff]  ;;  %v2184_v59 = vcvt.f32.s32 %v6418_v61 }
 0x3d4   : > { %3603 = vst [vmem:[%s5921_s9 + $0xa8] sm:$0xff] %v3539_v27  ;;  %v2134_v32 = vpop.xlane.xlu0 %2133 }
 0x3d5   : > { %v2135_v49 = vcvt.f32.s32 %v2134_v32  ;;  %v3055_v36 = vpop.f32.mrf.mxu2  ;;  %v3264_v63 = vpop.f32.mrf.mxu3 }
 0x3d6   : > { %v3265_v19 = vadd.f32 %v3264_v63, %v3055_v36  ;;  %v6635_v3 = vpop.xlane.xlu2 %2369 }
 0x3d7   : > { %v2138_v13 = vadd.s32 %v2137_v2, %v2135_v49  ;;  %vm2371_vm1 = vcmp.eq.f32.partialorder %v7338_v24, %v6635_v3  ;;  %v1242_v17 = vpop.xlane.xlu1 %1241  ;;  %v2168_v49 = vcvt.f32.s32 %v6393_v14  ;;  %v2397_v14 = vand.u32 65535, %v6391_v15 }
 0x3d8   : > { %3412 = vst [vmem:[%s5899_s28 + $0xb0] sm:$0xff] %v3265_v19  ;;  %v3476_v46 = vsub.f32 %v3265_v19, %v4181_v42  ;;  %v2372_v53 = vsel %vm2371_vm1, %v2367_v4, inf  ;;  %vm1369_vm5 = vcmp.eq.f32.partialorder %v7339_v45, %v1242_v17  ;;  %vm1370_vm6 = vcmp.eq.f32.partialorder %v7340_v50, %v1242_v17 }
 0x3d9   : > { %2563 = vst.msk [vmem:[%s5339_s8 + $0x138] sm:$0xff] %vm2523_vm10, %v2138_v13  ;;  %2465 = vmin.xlane.f32.xlu2 %v6637_v44  ;;  %2373 = vmin.xlane.f32.xlu1 %v2372_v53  ;;  %vm2666_vm2 = vcmp.eq.s32.totalorder %v4680_v0, %v2138_v13  ;;  %vm2667_vm3 = vcmp.eq.s32.totalorder %v4684_v6, %v2138_v13  ;;  %v1498_v36 = vsel %vm1370_vm6, %v4684_v6, 256  ;;  %v2494_v19 = vshra.s32 %v6666_v62, 16 }
 0x3da   : > { %v3540_v37 = vadd.f32 %v4181_v42, %v3476_v46  ;;  %4003 = vmatmul.msk.f32.gmra.mxu2 %vm2666_vm2, %v7203_v8  ;;  %4067 = vmatmul.msk.f32.gmra.mxu3 %vm2667_vm3, %v7203_v8  ;;  %v2169_v25 = vshll.u32 %v2168_v49, 16  ;;  %v2399_v53 = vcvt.s32.f32 %v2397_v14  ;;  %v2413_v17 = vand.u32 65535, %v6416_v5  ;;  %v4184_v5 = vld [vmem:[%s4481_s25 + $0xc8] sm:$0xff] }
 0x3db   : > { %v6687_v15 = vcvt.s32.f32 %v2494_v19  ;;  %v2429_v49 = vand.u32 65535, %v6441_v26 }
 0x3dc   : > { %3604 = vst [vmem:[%s5921_s9 + $0xb0] sm:$0xff] %v3540_v37  ;;  %v2150_v30 = vpop.xlane.xlu0 %2149  ;;  %v2415_v45 = vcvt.s32.f32 %v2413_v17 }
 0x3dd   : > { %v2151_v1 = vcvt.f32.s32 %v2150_v30  ;;  %v3058_v34 = vpop.f32.mrf.mxu2  ;;  %v3267_v16 = vpop.f32.mrf.mxu3 }
 0x3de   : > { %v3268_v48 = vadd.f32 %v3267_v16, %v3058_v34  ;;  %v6658_v35 = vpop.xlane.xlu2 %2385 }
 0x3df   : > { %v2154_v27 = vadd.s32 %v2153_v18, %v2151_v1  ;;  %vm2387_vm7 = vcmp.eq.f32.partialorder %v6380_v21, %v6658_v35  ;;  %v1497_v21 = vsel %vm1369_vm5, %v4680_v0, 256  ;;  %v2185_v18 = vshll.u32 %v2184_v59, 16 }
 0x3e0   : > { %3413 = vst [vmem:[%s5899_s28 + $0xb8] sm:$0xff] %v3268_v48  ;;  %v3477_v32 = vsub.f32 %v3268_v48, %v4182_v47  ;;  %v2388_v2 = vsel %vm2387_vm7, %v2383_v9, inf  ;;  %vm2507_vm11 = vcmp.lt.s32.totalorder %v1497_v21, %v1498_v36 }
 0x3e1   : > { %2564 = vst.msk [vmem:[%s5339_s8 + $0x140] sm:$0xff] %vm2523_vm10, %v2154_v27  ;;  %2389 = vmin.xlane.f32.xlu0 %v2388_v2  ;;  %2481 = vmin.xlane.f32.xlu1 %v6660_v29  ;;  %vm2668_vm8 = vcmp.eq.s32.totalorder %v4680_v0, %v2154_v27  ;;  %vm2669_vm9 = vcmp.eq.s32.totalorder %v4684_v6, %v2154_v27  ;;  %v2200_v2 = vcvt.f32.s32 %v6443_v12 }
 0x3e2   : > { %v3541_v63 = vadd.f32 %v4182_v47, %v3477_v32  ;;  %4004 = vmatmul.msk.f32.gmra.mxu2 %vm2668_vm8, %v7203_v8  ;;  %4068 = vmatmul.msk.f32.gmra.mxu3 %vm2669_vm9, %v7203_v8  ;;  %v6689_v20 = vsel %vm2507_vm11, %v1497_v21, %v1498_v36 }
 0x3e3   : > { %v2510_v61 = vshra.s32 %v6689_v20, 16  ;;  %v2201_v21 = vshll.u32 %v2200_v2, 16 }
 0x3e4   : > { %3605 = vst [vmem:[%s5921_s9 + $0xb8] sm:$0xff] %v3541_v63  ;;  %v2166_v4 = vpop.xlane.xlu0 %2165 }
 0x3e5   : > { %v2167_v54 = vcvt.f32.s32 %v2166_v4  ;;  %v3061_v13 = vpop.f32.mrf.mxu2  ;;  %v3270_v24 = vpop.f32.mrf.mxu3  ;;  %v6708_v27 = vcvt.s32.f32 %v2510_v61  ;;  %v2232_v61 = vcvt.f32.s32 %v6477_v33 }
 0x3e6   : > { %v3271_v42 = vadd.f32 %v3270_v24, %v3061_v13  ;;  %v6683_v46 = vpop.xlane.xlu2 %2401  ;;  %v4185_v13 = vld [vmem:[%s4481_s25 + $0xd0] sm:$0xff] }
 0x3e7   : > { %v2170_v52 = vadd.s32 %v2169_v25, %v2167_v54  ;;  %vm2403_vm12 = vcmp.eq.f32.partialorder %v6405_v40, %v6683_v46  ;;  %v2431_v25 = vcvt.s32.f32 %v2429_v49 }
 0x3e8   : > { %3414 = vst [vmem:[%s5899_s28 + $0xc0] sm:$0xff] %v3271_v42  ;;  %v3478_v28 = vsub.f32 %v3271_v42, %v4183_v55  ;;  %v2404_v37 = vsel %vm2403_vm12, %v2399_v53, inf  ;;  %v2216_v42 = vcvt.f32.s32 %v6462_v38 }
 0x3e9   : > { %2565 = vst.msk [vmem:[%s5339_s8 + $0x148] sm:$0xff] %vm2523_vm10, %v2170_v52  ;;  %2405 = vmin.xlane.f32.xlu2 %v2404_v37  ;;  %2497 = vmin.xlane.f32.xlu0 %v6687_v15  ;;  %vm2670_vm13 = vcmp.eq.s32.totalorder %v4680_v0, %v2170_v52  ;;  %vm2671_vm14 = vcmp.eq.s32.totalorder %v4684_v6, %v2170_v52 }
 0x3ea   : > { %v3542_v40 = vadd.f32 %v4183_v55, %v3478_v28  ;;  %4005 = vmatmul.msk.f32.gmra.mxu2 %vm2670_vm13, %v7203_v8  ;;  %4069 = vmatmul.msk.f32.gmra.mxu3 %vm2671_vm14, %v7203_v8  ;;  %v2217_v52 = vshll.u32 %v2216_v42, 16 }
 0x3ec   : > { %3606 = vst [vmem:[%s5921_s9 + $0xc0] sm:$0xff] %v3542_v40  ;;  %v2182_v30 = vpop.xlane.xlu0 %2181  ;;  %v4186_v40 = vld [vmem:[%s4481_s25 + $0xd8] sm:$0xff] }
 0x3ed   : > { %v2183_v1 = vcvt.f32.s32 %v2182_v30  ;;  %v3064_v34 = vpop.f32.mrf.mxu2  ;;  %v3273_v16 = vpop.f32.mrf.mxu3 }
 0x3ee   : > { %v3274_v48 = vadd.f32 %v3273_v16, %v3064_v34  ;;  %v6704_v9 = vpop.xlane.xlu2 %2417 }
 0x3ef   : > { %v2186_v50 = vadd.s32 %v2185_v18, %v2183_v1  ;;  %vm2419_vm15 = vcmp.eq.f32.partialorder %v6430_v57, %v6704_v9  ;;  %v2233_v1 = vshll.u32 %v2232_v61, 16 }
 0x3f0   : > { %3415 = vst [vmem:[%s5899_s28 + $0xc8] sm:$0xff] %v3274_v48  ;;  %v3479_v47 = vsub.f32 %v3274_v48, %v4184_v5  ;;  %v2420_v32 = vsel %vm2419_vm15, %v2415_v45, inf }
 0x3f1   : > { %2566 = vst.msk [vmem:[%s5339_s8 + $0x150] sm:$0xff] %vm2523_vm10, %v2186_v50  ;;  %2421 = vmin.xlane.f32.xlu1 %v2420_v32  ;;  %2513 = vmin.xlane.f32.xlu2 %v6708_v27  ;;  %vm2672_vm0 = vcmp.eq.s32.totalorder %v4680_v0, %v2186_v50  ;;  %vm2673_vm1 = vcmp.eq.s32.totalorder %v4684_v6, %v2186_v50  ;;  %v4187_v50 = vld [vmem:[%s4481_s25 + $0xe0] sm:$0xff] }
 0x3f2   : > { %v3543_v57 = vadd.f32 %v4184_v5, %v3479_v47  ;;  %4006 = vmatmul.msk.f32.gmra.mxu2 %vm2672_vm0, %v7203_v8  ;;  %4070 = vmatmul.msk.f32.gmra.mxu3 %vm2673_vm1, %v7203_v8  ;;  %v2248_v47 = vcvt.f32.s32 %v6492_v7 }
 0x3f4   : > { %3607 = vst [vmem:[%s5921_s9 + $0xc8] sm:$0xff] %v3543_v57  ;;  %v2198_v12 = vpop.xlane.xlu0 %2197  ;;  %v2249_v57 = vshll.u32 %v2248_v47, 16  ;;  %v4191_v47 = vld [vmem:[%s4481_s25 + $0x100] sm:$0xff] }
 0x3f5   : > { %v2199_v36 = vcvt.f32.s32 %v2198_v12  ;;  %v3067_v63 = vpop.f32.mrf.mxu2  ;;  %v3276_v14 = vpop.f32.mrf.mxu3 }
 0x3f6   : > { %v3277_v19 = vadd.f32 %v3276_v14, %v3067_v63  ;;  %v6722_v4 = vpop.xlane.xlu1 %2433  ;;  %v4188_v63 = vld [vmem:[%s4481_s25 + $0xe8] sm:$0xff] }
 0x3f7   : > { %v2202_v54 = vadd.s32 %v2201_v21, %v2199_v36  ;;  %vm2435_vm2 = vcmp.eq.f32.partialorder %v6455_v10, %v6722_v4 }
 0x3f8   : > { %3416 = vst [vmem:[%s5899_s28 + $0xd0] sm:$0xff] %v3277_v19  ;;  %v3480_v24 = vsub.f32 %v3277_v19, %v4185_v13  ;;  %v2436_v26 = vsel %vm2435_vm2, %v2431_v25, inf  ;;  %v2264_v19 = vcvt.f32.s32 %v6507_v23 }
 0x3f9   : > { %2567 = vst.msk [vmem:[%s5339_s8 + $0x158] sm:$0xff] %vm2523_vm10, %v2202_v54  ;;  %2437 = vmin.xlane.f32.xlu0 %v2436_v26  ;;  %vm2674_vm3 = vcmp.eq.s32.totalorder %v4680_v0, %v2202_v54  ;;  %vm2675_vm4 = vcmp.eq.s32.totalorder %v4684_v6, %v2202_v54 }
 0x3fa   : > { %v3544_v53 = vadd.f32 %v4185_v13, %v3480_v24  ;;  %4007 = vmatmul.msk.f32.gmra.mxu2 %vm2674_vm3, %v7203_v8  ;;  %4071 = vmatmul.msk.f32.gmra.mxu3 %vm2675_vm4, %v7203_v8  ;;  %v2265_v13 = vshll.u32 %v2264_v19, 16 }
 0x3fc   : > { %3608 = vst [vmem:[%s5921_s9 + $0xd0] sm:$0xff] %v3544_v53  ;;  %v2214_v10 = vpop.xlane.xlu0 %2213 }
 0x3fd   : > { %v2215_v38 = vcvt.f32.s32 %v2214_v10  ;;  %v3070_v55 = vpop.f32.mrf.mxu2  ;;  %v3279_v28 = vpop.f32.mrf.mxu3  ;;  %v4189_v10 = vld [vmem:[%s4481_s25 + $0xf0] sm:$0xff] }
 0x3fe   : > { %v3280_v37 = vadd.f32 %v3279_v28, %v3070_v55 }
 0x3ff   : > { %v2218_v59 = vadd.s32 %v2217_v52, %v2215_v38  ;;  %v2280_v38 = vcvt.f32.s32 %v6522_v51 }
 0x400   : > { %3417 = vst [vmem:[%s5899_s28 + $0xd8] sm:$0xff] %v3280_v37  ;;  %v3481_v17 = vsub.f32 %v3280_v37, %v4186_v40 }
 0x401   : > { %2568 = vst.msk [vmem:[%s5339_s8 + $0x160] sm:$0xff] %vm2523_vm10, %v2218_v59  ;;  %vm2676_vm5 = vcmp.eq.s32.totalorder %v4680_v0, %v2218_v59  ;;  %vm2677_vm6 = vcmp.eq.s32.totalorder %v4684_v6, %v2218_v59  ;;  %v2281_v37 = vshll.u32 %v2280_v38, 16  ;;  %v2344_v38 = vcvt.f32.s32 %v6588_v31 }
 0x402   : > { %v3545_v30 = vadd.f32 %v4186_v40, %v3481_v17  ;;  %4008 = vmatmul.msk.f32.gmra.mxu2 %vm2676_vm5, %v7203_v8  ;;  %4072 = vmatmul.msk.f32.gmra.mxu3 %vm2677_vm6, %v7203_v8 }
 0x404   : > { %3609 = vst [vmem:[%s5921_s9 + $0xd8] sm:$0xff] %v3545_v30  ;;  %v2230_v18 = vpop.xlane.xlu0 %2229  ;;  %v4190_v30 = vld [vmem:[%s4481_s25 + $0xf8] sm:$0xff] }
 0x405   : > { %v2231_v34 = vcvt.f32.s32 %v2230_v18  ;;  %v3073_v16 = vpop.f32.mrf.mxu2  ;;  %v3282_v33 = vpop.f32.mrf.mxu3 }
 0x406   : > { %v3283_v48 = vadd.f32 %v3282_v33, %v3073_v16 }
 0x407   : > { %v2234_v45 = vadd.s32 %v2233_v1, %v2231_v34  ;;  %v2296_v1 = vcvt.f32.s32 %v6537_v60 }
 0x408   : > { %3418 = vst [vmem:[%s5899_s28 + $0xe0] sm:$0xff] %v3283_v48  ;;  %v3482_v5 = vsub.f32 %v3283_v48, %v4187_v50 }
 0x409   : > { %2569 = vst.msk [vmem:[%s5339_s8 + $0x168] sm:$0xff] %vm2523_vm10, %v2234_v45  ;;  %vm2678_vm7 = vcmp.eq.s32.totalorder %v4680_v0, %v2234_v45  ;;  %vm2679_vm8 = vcmp.eq.s32.totalorder %v4684_v6, %v2234_v45  ;;  %v2297_v33 = vshll.u32 %v2296_v1, 16  ;;  %v2360_v1 = vcvt.f32.s32 %v6610_v58 }
 0x40a   : > { %v3546_v32 = vadd.f32 %v4187_v50, %v3482_v5  ;;  %4009 = vmatmul.msk.f32.gmra.mxu2 %vm2678_vm7, %v7203_v8  ;;  %4073 = vmatmul.msk.f32.gmra.mxu3 %vm2679_vm8, %v7203_v8 }
 0x40b   : > { %v2361_v58 = vshll.u32 %v2360_v1, 16 }
 0x40c   : > { %3610 = vst [vmem:[%s5921_s9 + $0xe0] sm:$0xff] %v3546_v32  ;;  %v2246_v2 = vpop.xlane.xlu0 %2245 }
 0x40d   : > { %v2247_v49 = vcvt.f32.s32 %v2246_v2  ;;  %v3076_v12 = vpop.f32.mrf.mxu2  ;;  %v3285_v7 = vpop.f32.mrf.mxu3  ;;  %v2312_v2 = vcvt.f32.s32 %v6552_v43 }
 0x40e   : > { %v3286_v21 = vadd.f32 %v3285_v7, %v3076_v12 }
 0x40f   : > { %v2250_v36 = vadd.s32 %v2249_v57, %v2247_v49  ;;  %v2313_v12 = vshll.u32 %v2312_v2, 16 }
 0x410   : > { %3419 = vst [vmem:[%s5899_s28 + $0xe8] sm:$0xff] %v3286_v21  ;;  %v3483_v14 = vsub.f32 %v3286_v21, %v4188_v63 }
 0x411   : > { %2570 = vst.msk [vmem:[%s5339_s8 + $0x170] sm:$0xff] %vm2523_vm10, %v2250_v36  ;;  %vm2680_vm9 = vcmp.eq.s32.totalorder %v4680_v0, %v2250_v36  ;;  %vm2681_vm11 = vcmp.eq.s32.totalorder %v4684_v6, %v2250_v36 }
 0x412   : > { %v3547_v25 = vadd.f32 %v4188_v63, %v3483_v14  ;;  %4010 = vmatmul.msk.f32.gmra.mxu2 %vm2680_vm9, %v7203_v8  ;;  %4074 = vmatmul.msk.f32.gmra.mxu3 %vm2681_vm11, %v7203_v8  ;;  %v4192_v14 = vld [vmem:[%s4481_s25 + $0x108] sm:$0xff] }
 0x414   : > { %3611 = vst [vmem:[%s5921_s9 + $0xe8] sm:$0xff] %v3547_v25  ;;  %v2262_v54 = vpop.xlane.xlu0 %2261  ;;  %v2328_v25 = vcvt.f32.s32 %v6567_v56 }
 0x415   : > { %v2263_v24 = vcvt.f32.s32 %v2262_v54  ;;  %v3079_v26 = vpop.f32.mrf.mxu2  ;;  %v3288_v23 = vpop.f32.mrf.mxu3 }
 0x416   : > { %v3289_v42 = vadd.f32 %v3288_v23, %v3079_v26 }
 0x417   : > { %v2266_v53 = vadd.s32 %v2265_v13, %v2263_v24  ;;  %v2329_v24 = vshll.u32 %v2328_v25, 16  ;;  %v4196_v25 = vld [vmem:[%s4481_s25 + $0x128] sm:$0xff] }
 0x418   : > { %3420 = vst [vmem:[%s5899_s28 + $0xf0] sm:$0xff] %v3289_v42  ;;  %v3484_v52 = vsub.f32 %v3289_v42, %v4189_v10 }
 0x419   : > { %2571 = vst.msk [vmem:[%s5339_s8 + $0x178] sm:$0xff] %vm2523_vm10, %v2266_v53  ;;  %vm2682_vm12 = vcmp.eq.s32.totalorder %v4680_v0, %v2266_v53  ;;  %vm2683_vm13 = vcmp.eq.s32.totalorder %v4684_v6, %v2266_v53 }
 0x41a   : > { %v3548_v55 = vadd.f32 %v4189_v10, %v3484_v52  ;;  %4011 = vmatmul.msk.f32.gmra.mxu2 %vm2682_vm12, %v7203_v8  ;;  %4075 = vmatmul.msk.f32.gmra.mxu3 %vm2683_vm13, %v7203_v8  ;;  %v4193_v10 = vld [vmem:[%s4481_s25 + $0x110] sm:$0xff] }
 0x41c   : > { %3612 = vst [vmem:[%s5921_s9 + $0xf0] sm:$0xff] %v3548_v55  ;;  %v2278_v28 = vpop.xlane.xlu0 %2277 }
 0x41d   : > { %v2279_v59 = vcvt.f32.s32 %v2278_v28  ;;  %v3082_v40 = vpop.f32.mrf.mxu2  ;;  %v3291_v51 = vpop.f32.mrf.mxu3 }
 0x41e   : > { %v3292_v17 = vadd.f32 %v3291_v51, %v3082_v40 }
 0x41f   : > { %v2282_v61 = vadd.s32 %v2281_v37, %v2279_v59  ;;  %v2345_v37 = vshll.u32 %v2344_v38, 16 }
 0x420   : > { %3421 = vst [vmem:[%s5899_s28 + $0xf8] sm:$0xff] %v3292_v17  ;;  %v3485_v18 = vsub.f32 %v3292_v17, %v4190_v30 }
 0x421   : > { %2572 = vst.msk [vmem:[%s5339_s8 + $0x180] sm:$0xff] %vm2523_vm10, %v2282_v61  ;;  %vm2684_vm14 = vcmp.eq.s32.totalorder %v4680_v0, %v2282_v61  ;;  %vm2685_vm15 = vcmp.eq.s32.totalorder %v4684_v6, %v2282_v61  ;;  %v4194_v61 = vld [vmem:[%s4481_s25 + $0x118] sm:$0xff] }
 0x422   : > { %v3549_v34 = vadd.f32 %v4190_v30, %v3485_v18  ;;  %4012 = vmatmul.msk.f32.gmra.mxu2 %vm2684_vm14, %v7203_v8  ;;  %4076 = vmatmul.msk.f32.gmra.mxu3 %vm2685_vm15, %v7203_v8  ;;  %v2445_v18 = vand.u32 65535, %v6593_v39 }
 0x424   : > { %3613 = vst [vmem:[%s5921_s9 + $0xf8] sm:$0xff] %v3549_v34  ;;  %v2294_v16 = vpop.xlane.xlu0 %2293  ;;  %v2447_v39 = vcvt.s32.f32 %v2445_v18 }
 0x425   : > { %v2295_v48 = vcvt.f32.s32 %v2294_v16  ;;  %v3085_v45 = vpop.f32.mrf.mxu2  ;;  %v3294_v60 = vpop.f32.mrf.mxu3 }
 0x426   : > { %v3295_v50 = vadd.f32 %v3294_v60, %v3085_v45 }
 0x427   : > { %v2298_v5 = vadd.s32 %v2297_v33, %v2295_v48 }
 0x428   : > { %3422 = vst [vmem:[%s5899_s28 + $0x100] sm:$0xff] %v3295_v50  ;;  %v3486_v32 = vsub.f32 %v3295_v50, %v4191_v47 }
 0x429   : > { %2573 = vst.msk [vmem:[%s5339_s8 + $0x188] sm:$0xff] %vm2523_vm10, %v2298_v5  ;;  %vm2686_vm0 = vcmp.eq.s32.totalorder %v4680_v0, %v2298_v5  ;;  %vm2687_vm1 = vcmp.eq.s32.totalorder %v4684_v6, %v2298_v5 }
 0x42a   : > { %v3550_v57 = vadd.f32 %v4191_v47, %v3486_v32  ;;  %4013 = vmatmul.msk.f32.gmra.mxu2 %vm2686_vm0, %v7203_v8  ;;  %4077 = vmatmul.msk.f32.gmra.mxu3 %vm2687_vm1, %v7203_v8  ;;  %v4195_v32 = vld [vmem:[%s4481_s25 + $0x120] sm:$0xff] }
 0x42c   : > { %3614 = vst [vmem:[%s5921_s9 + $0x100] sm:$0xff] %v3550_v57  ;;  %v2310_v49 = vpop.xlane.xlu0 %2309  ;;  %v2461_v57 = vand.u32 65535, %v6612_v11 }
 0x42d   : > { %v2311_v7 = vcvt.f32.s32 %v2310_v49  ;;  %v3088_v21 = vpop.f32.mrf.mxu2  ;;  %v3297_v43 = vpop.f32.mrf.mxu3  ;;  %v2376_v49 = vcvt.f32.s32 %v6635_v3 }
 0x42e   : > { %v3298_v36 = vadd.f32 %v3297_v43, %v3088_v21  ;;  %v2463_v11 = vcvt.s32.f32 %v2461_v57  ;;  %v4199_v57 = vld [vmem:[%s4481_s25 + $0x140] sm:$0xff] }
 0x42f   : > { %v2314_v63 = vadd.s32 %v2313_v12, %v2311_v7  ;;  %v2377_v3 = vshll.u32 %v2376_v49, 16 }
 0x430   : > { %3423 = vst [vmem:[%s5899_s28 + $0x108] sm:$0xff] %v3298_v36  ;;  %v3487_v19 = vsub.f32 %v3298_v36, %v4192_v14 }
 0x431   : > { %2574 = vst.msk [vmem:[%s5339_s8 + $0x190] sm:$0xff] %vm2523_vm10, %v2314_v63  ;;  %vm2688_vm2 = vcmp.eq.s32.totalorder %v4680_v0, %v2314_v63  ;;  %vm2689_vm3 = vcmp.eq.s32.totalorder %v4684_v6, %v2314_v63 }
 0x432   : > { %v3551_v54 = vadd.f32 %v4192_v14, %v3487_v19  ;;  %4014 = vmatmul.msk.f32.gmra.mxu2 %vm2688_vm2, %v7203_v8  ;;  %4078 = vmatmul.msk.f32.gmra.mxu3 %vm2689_vm3, %v7203_v8 }
 0x434   : > { %3615 = vst [vmem:[%s5921_s9 + $0x108] sm:$0xff] %v3551_v54  ;;  %v2326_v13 = vpop.xlane.xlu0 %2325 }
 0x435   : > { %v2327_v26 = vcvt.f32.s32 %v2326_v13  ;;  %v3091_v23 = vpop.f32.mrf.mxu2  ;;  %v3300_v56 = vpop.f32.mrf.mxu3  ;;  %v2477_v13 = vand.u32 65535, %v6633_v41 }
 0x436   : > { %v3301_v42 = vadd.f32 %v3300_v56, %v3091_v23 }
 0x437   : > { %v2330_v53 = vadd.s32 %v2329_v24, %v2327_v26  ;;  %v2392_v24 = vcvt.f32.s32 %v6658_v35  ;;  %v2479_v41 = vcvt.s32.f32 %v2477_v13 }
 0x438   : > { %3424 = vst [vmem:[%s5899_s28 + $0x110] sm:$0xff] %v3301_v42  ;;  %v3488_v52 = vsub.f32 %v3301_v42, %v4193_v10 }
 0x439   : > { %2575 = vst.msk [vmem:[%s5339_s8 + $0x198] sm:$0xff] %vm2523_vm10, %v2330_v53  ;;  %vm2690_vm4 = vcmp.eq.s32.totalorder %v4680_v0, %v2330_v53  ;;  %vm2691_vm5 = vcmp.eq.s32.totalorder %v4684_v6, %v2330_v53  ;;  %v2393_v35 = vshll.u32 %v2392_v24, 16  ;;  %v4201_v24 = vld [vmem:[%s4481_s25 + $0x150] sm:$0xff] }
 0x43a   : > { %v3552_v55 = vadd.f32 %v4193_v10, %v3488_v52  ;;  %4015 = vmatmul.msk.f32.gmra.mxu2 %vm2690_vm4, %v7203_v8  ;;  %4079 = vmatmul.msk.f32.gmra.mxu3 %vm2691_vm5, %v7203_v8 }
 0x43c   : > { %3616 = vst [vmem:[%s5921_s9 + $0x110] sm:$0xff] %v3552_v55  ;;  %v2342_v28 = vpop.xlane.xlu0 %2341  ;;  %v4197_v55 = vld [vmem:[%s4481_s25 + $0x130] sm:$0xff] }
 0x43d   : > { %v2343_v59 = vcvt.f32.s32 %v2342_v28  ;;  %v3094_v40 = vpop.f32.mrf.mxu2  ;;  %v3303_v31 = vpop.f32.mrf.mxu3 }
 0x43e   : > { %v3304_v51 = vadd.f32 %v3303_v31, %v3094_v40 }
 0x43f   : > { %v2346_v17 = vadd.s32 %v2345_v37, %v2343_v59  ;;  %v2493_v37 = vand.u32 65535, %v6666_v62  ;;  %v2408_v59 = vcvt.f32.s32 %v6683_v46 }
 0x440   : > { %3425 = vst [vmem:[%s5899_s28 + $0x118] sm:$0xff] %v3304_v51  ;;  %v3489_v30 = vsub.f32 %v3304_v51, %v4194_v61 }
 0x441   : > { %2576 = vst.msk [vmem:[%s5339_s8 + $0x1a0] sm:$0xff] %vm2523_vm10, %v2346_v17  ;;  %vm2692_vm6 = vcmp.eq.s32.totalorder %v4680_v0, %v2346_v17  ;;  %vm2693_vm7 = vcmp.eq.s32.totalorder %v4684_v6, %v2346_v17  ;;  %v2495_v62 = vcvt.s32.f32 %v2493_v37  ;;  %v2409_v46 = vshll.u32 %v2408_v59, 16 }
 0x442   : > { %v3553_v34 = vadd.f32 %v4194_v61, %v3489_v30  ;;  %4016 = vmatmul.msk.f32.gmra.mxu2 %vm2692_vm6, %v7203_v8  ;;  %4080 = vmatmul.msk.f32.gmra.mxu3 %vm2693_vm7, %v7203_v8 }
 0x444   : > { %3617 = vst [vmem:[%s5921_s9 + $0x118] sm:$0xff] %v3553_v34  ;;  %v2358_v16 = vpop.xlane.xlu2 %2357  ;;  %v6827_v33 = vpop.xlane.xlu0 %2449  ;;  %v4198_v34 = vld [vmem:[%s4481_s25 + $0x138] sm:$0xff] }
 0x445   : > { %v2359_v48 = vcvt.f32.s32 %v2358_v16  ;;  %vm2451_vm8 = vcmp.eq.f32.partialorder %v6616_v22, %v6827_v33  ;;  %v3097_v45 = vpop.f32.mrf.mxu2  ;;  %v3306_v60 = vpop.f32.mrf.mxu3 }
 0x446   : > { %v3307_v50 = vadd.f32 %v3306_v60, %v3097_v45  ;;  %v2452_v5 = vsel %vm2451_vm8, %v2447_v39, inf  ;;  %v2509_v39 = vand.u32 65535, %v6689_v20 }
 0x447   : > { %v2362_v47 = vadd.s32 %v2361_v58, %v2359_v48  ;;  %2453 = vmin.xlane.f32.xlu1 %v2452_v5  ;;  %v2424_v58 = vcvt.f32.s32 %v6704_v9 }
 0x448   : > { %3426 = vst [vmem:[%s5899_s28 + $0x120] sm:$0xff] %v3307_v50  ;;  %v3490_v2 = vsub.f32 %v3307_v50, %v4195_v32  ;;  %v2511_v45 = vcvt.s32.f32 %v2509_v39 }
 0x449   : > { %2577 = vst.msk [vmem:[%s5339_s8 + $0x1a8] sm:$0xff] %vm2523_vm10, %v2362_v47  ;;  %vm2694_vm9 = vcmp.eq.s32.totalorder %v4680_v0, %v2362_v47  ;;  %vm2695_vm11 = vcmp.eq.s32.totalorder %v4684_v6, %v2362_v47  ;;  %v2425_v9 = vshll.u32 %v2424_v58, 16 }
 0x44a   : > { %v3554_v22 = vadd.f32 %v4195_v32, %v3490_v2  ;;  %4017 = vmatmul.msk.f32.gmra.mxu2 %vm2694_vm9, %v7203_v8  ;;  %4081 = vmatmul.msk.f32.gmra.mxu3 %vm2695_vm11, %v7203_v8 }
 0x44c   : > { %3618 = vst [vmem:[%s5921_s9 + $0x120] sm:$0xff] %v3554_v22  ;;  %v6842_v12 = vpop.xlane.xlu2 %2465  ;;  %v2374_v7 = vpop.xlane.xlu1 %2373  ;;  %v2440_v22 = vcvt.f32.s32 %v6722_v4 }
 0x44d   : > { %vm2467_vm12 = vcmp.eq.f32.partialorder %v6637_v44, %v6842_v12  ;;  %v2375_v21 = vcvt.f32.s32 %v2374_v7  ;;  %v3100_v43 = vpop.f32.mrf.mxu2  ;;  %v3309_v36 = vpop.f32.mrf.mxu3 }
 0x44e   : > { %v3310_v63 = vadd.f32 %v3309_v36, %v3100_v43  ;;  %v2468_v14 = vsel %vm2467_vm12, %v2463_v11, inf  ;;  %v2441_v11 = vshll.u32 %v2440_v22, 16 }
 0x44f   : > { %v2378_v19 = vadd.s32 %v2377_v3, %v2375_v21  ;;  %2469 = vmin.xlane.f32.xlu2 %v2468_v14 }
 0x450   : > { %3427 = vst [vmem:[%s5899_s28 + $0x128] sm:$0xff] %v3310_v63  ;;  %v3491_v54 = vsub.f32 %v3310_v63, %v4196_v25  ;;  %v4200_v63 = vld [vmem:[%s4481_s25 + $0x148] sm:$0xff] }
 0x451   : > { %2578 = vst.msk [vmem:[%s5339_s8 + $0x1b0] sm:$0xff] %vm2523_vm10, %v2378_v19  ;;  %vm2696_vm13 = vcmp.eq.s32.totalorder %v4680_v0, %v2378_v19  ;;  %vm2697_vm14 = vcmp.eq.s32.totalorder %v4684_v6, %v2378_v19 }
 0x452   : > { %v3555_v44 = vadd.f32 %v4196_v25, %v3491_v54  ;;  %4018 = vmatmul.msk.f32.gmra.mxu2 %vm2696_vm13, %v7203_v8  ;;  %4082 = vmatmul.msk.f32.gmra.mxu3 %vm2697_vm14, %v7203_v8 }
 0x454   : > { %3619 = vst [vmem:[%s5921_s9 + $0x128] sm:$0xff] %v3555_v44  ;;  %v2390_v26 = vpop.xlane.xlu0 %2389  ;;  %v6857_v23 = vpop.xlane.xlu1 %2481 }
 0x455   : > { %v2391_v56 = vcvt.f32.s32 %v2390_v26  ;;  %vm2483_vm15 = vcmp.eq.f32.partialorder %v6660_v29, %v6857_v23  ;;  %v3103_v42 = vpop.f32.mrf.mxu2  ;;  %v3312_v53 = vpop.f32.mrf.mxu3 }
 0x456   : > { %v3313_v10 = vadd.f32 %v3312_v53, %v3103_v42  ;;  %v2484_v52 = vsel %vm2483_vm15, %v2479_v41, inf  ;;  %v4202_v42 = vld [vmem:[%s4481_s25 + $0x158] sm:$0xff] }
 0x457   : > { %v2394_v38 = vadd.s32 %v2393_v35, %v2391_v56  ;;  %2485 = vmin.xlane.f32.xlu0 %v2484_v52 }
 0x458   : > { %3428 = vst [vmem:[%s5899_s28 + $0x130] sm:$0xff] %v3313_v10  ;;  %v3492_v28 = vsub.f32 %v3313_v10, %v4197_v55 }
 0x459   : > { %2579 = vst.msk [vmem:[%s5339_s8 + $0x1b8] sm:$0xff] %vm2523_vm10, %v2394_v38  ;;  %vm2698_vm0 = vcmp.eq.s32.totalorder %v4680_v0, %v2394_v38  ;;  %vm2699_vm1 = vcmp.eq.s32.totalorder %v4684_v6, %v2394_v38 }
 0x45a   : > { %v3556_v29 = vadd.f32 %v4197_v55, %v3492_v28  ;;  %4019 = vmatmul.msk.f32.gmra.mxu2 %vm2698_vm0, %v7203_v8  ;;  %4083 = vmatmul.msk.f32.gmra.mxu3 %vm2699_vm1, %v7203_v8  ;;  %v4203_v28 = vld [vmem:[%s4481_s25 + $0x160] sm:$0xff] }
 0x45c   : > { %3620 = vst [vmem:[%s5921_s9 + $0x130] sm:$0xff] %v3556_v29  ;;  %v2406_v40 = vpop.xlane.xlu2 %2405  ;;  %v6872_v31 = vpop.xlane.xlu0 %2497 }
 0x45d   : > { %v2407_v51 = vcvt.f32.s32 %v2406_v40  ;;  %vm2499_vm2 = vcmp.eq.f32.partialorder %v6687_v15, %v6872_v31  ;;  %v3106_v17 = vpop.f32.mrf.mxu2  ;;  %v3315_v61 = vpop.f32.mrf.mxu3 }
 0x45e   : > { %v3316_v30 = vadd.f32 %v3315_v61, %v3106_v17  ;;  %v2500_v18 = vsel %vm2499_vm2, %v2495_v62, inf }
 0x45f   : > { %v2410_v1 = vadd.s32 %v2409_v46, %v2407_v51  ;;  %2501 = vmin.xlane.f32.xlu1 %v2500_v18  ;;  %v4204_v46 = vld [vmem:[%s4481_s25 + $0x168] sm:$0xff] }
 0x460   : > { %3429 = vst [vmem:[%s5899_s28 + $0x138] sm:$0xff] %v3316_v30  ;;  %v3493_v16 = vsub.f32 %v3316_v30, %v4198_v34 }
 0x461   : > { %2580 = vst.msk [vmem:[%s5339_s8 + $0x1c0] sm:$0xff] %vm2523_vm10, %v2410_v1  ;;  %vm2700_vm3 = vcmp.eq.s32.totalorder %v4680_v0, %v2410_v1  ;;  %vm2701_vm4 = vcmp.eq.s32.totalorder %v4684_v6, %v2410_v1  ;;  %v4205_v1 = vld [vmem:[%s4481_s25 + $0x170] sm:$0xff] }
 0x462   : > { %v3557_v15 = vadd.f32 %v4198_v34, %v3493_v16  ;;  %4020 = vmatmul.msk.f32.gmra.mxu2 %vm2700_vm3, %v7203_v8  ;;  %4084 = vmatmul.msk.f32.gmra.mxu3 %vm2701_vm4, %v7203_v8 }
 0x464   : > { %3621 = vst [vmem:[%s5921_s9 + $0x138] sm:$0xff] %v3557_v15  ;;  %v6887_v48 = vpop.xlane.xlu2 %2513  ;;  %v2422_v20 = vpop.xlane.xlu1 %2421 }
 0x465   : > { %vm2515_vm5 = vcmp.eq.f32.partialorder %v6708_v27, %v6887_v48  ;;  %v2423_v60 = vcvt.f32.s32 %v2422_v20  ;;  %v3109_v50 = vpop.f32.mrf.mxu2  ;;  %v3318_v5 = vpop.f32.mrf.mxu3  ;;  %v4206_v20 = vld [vmem:[%s4481_s25 + $0x178] sm:$0xff] }
 0x466   : > { %v3319_v47 = vadd.f32 %v3318_v5, %v3109_v50  ;;  %v2516_v32 = vsel %vm2515_vm5, %v2511_v45, inf }
 0x467   : > { %v2426_v2 = vadd.s32 %v2425_v9, %v2423_v60  ;;  %2517 = vmin.xlane.f32.xlu2 %v2516_v32 }
 0x468   : > { %3430 = vst [vmem:[%s5899_s28 + $0x140] sm:$0xff] %v3319_v47  ;;  %v3494_v49 = vsub.f32 %v3319_v47, %v4199_v57  ;;  %v4207_v47 = vld [vmem:[%s4481_s25 + $0x180] sm:$0xff] }
 0x469   : > { %2581 = vst.msk [vmem:[%s5339_s8 + $0x1c8] sm:$0xff] %vm2523_vm10, %v2426_v2  ;;  %vm2702_vm6 = vcmp.eq.s32.totalorder %v4680_v0, %v2426_v2  ;;  %vm2703_vm7 = vcmp.eq.s32.totalorder %v4684_v6, %v2426_v2 }
 0x46a   : > { %v3558_v27 = vadd.f32 %v4199_v57, %v3494_v49  ;;  %4021 = vmatmul.msk.f32.gmra.mxu2 %vm2702_vm6, %v7203_v8  ;;  %4085 = vmatmul.msk.f32.gmra.mxu3 %vm2703_vm7, %v7203_v8 }
 0x46c   : > { %3622 = vst [vmem:[%s5921_s9 + $0x140] sm:$0xff] %v3558_v27  ;;  %v2438_v7 = vpop.xlane.xlu0 %2437  ;;  %v4208_v27 = vld [vmem:[%s4481_s25 + $0x188] sm:$0xff] }
 0x46d   : > { %v2439_v3 = vcvt.f32.s32 %v2438_v7  ;;  %v3112_v21 = vpop.f32.mrf.mxu2  ;;  %v3321_v4 = vpop.f32.mrf.mxu3 }
 0x46e   : > { %v3322_v43 = vadd.f32 %v3321_v4, %v3112_v21 }
 0x46f   : > { %v2442_v36 = vadd.s32 %v2441_v11, %v2439_v3 }
 0x470   : > { %3431 = vst [vmem:[%s5899_s28 + $0x148] sm:$0xff] %v3322_v43  ;;  %v3495_v14 = vsub.f32 %v3322_v43, %v4200_v63  ;;  %v2456_v43 = vcvt.f32.s32 %v6827_v33  ;;  %v4210_v33 = vld [vmem:[%s4481_s25 + $0x198] sm:$0xff] }
 0x471   : > { %2582 = vst.msk [vmem:[%s5339_s8 + $0x1d0] sm:$0xff] %vm2523_vm10, %v2442_v36  ;;  %vm2704_vm8 = vcmp.eq.s32.totalorder %v4680_v0, %v2442_v36  ;;  %vm2705_vm9 = vcmp.eq.s32.totalorder %v4684_v6, %v2442_v36  ;;  %v4209_v36 = vld [vmem:[%s4481_s25 + $0x190] sm:$0xff] }
 0x472   : > { %v3559_v19 = vadd.f32 %v4200_v63, %v3495_v14  ;;  %4022 = vmatmul.msk.f32.gmra.mxu2 %vm2704_vm8, %v7203_v8  ;;  %4086 = vmatmul.msk.f32.gmra.mxu3 %vm2705_vm9, %v7203_v8 }
 0x474   : > { %3623 = vst [vmem:[%s5921_s9 + $0x148] sm:$0xff] %v3559_v19 }
 0x475   : > { %v3115_v25 = vpop.f32.mrf.mxu2  ;;  %v3324_v54 = vpop.f32.mrf.mxu3 }
 0x476   : > { %v3325_v13 = vadd.f32 %v3324_v54, %v3115_v25  ;;  %v2457_v25 = vshll.u32 %v2456_v43, 16 }
 0x478   : > { %3432 = vst [vmem:[%s5899_s28 + $0x150] sm:$0xff] %v3325_v13  ;;  %v3496_v44 = vsub.f32 %v3325_v13, %v4201_v24 }
 0x47a   : > { %v3560_v26 = vadd.f32 %v4201_v24, %v3496_v44 }
 0x47c   : > { %3624 = vst [vmem:[%s5921_s9 + $0x150] sm:$0xff] %v3560_v26 }
 0x47d   : > { %v3118_v41 = vpop.f32.mrf.mxu2  ;;  %v3327_v35 = vpop.f32.mrf.mxu3 }
 0x47e   : > { %v3328_v56 = vadd.f32 %v3327_v35, %v3118_v41  ;;  %v2472_v41 = vcvt.f32.s32 %v6842_v12 }
 0x480   : > { %3433 = vst [vmem:[%s5899_s28 + $0x158] sm:$0xff] %v3328_v56  ;;  %v3497_v53 = vsub.f32 %v3328_v56, %v4202_v42 }
 0x482   : > { %v3561_v10 = vadd.f32 %v4202_v42, %v3497_v53  ;;  %v2473_v53 = vshll.u32 %v2472_v41, 16 }
 0x484   : > { %3625 = vst [vmem:[%s5921_s9 + $0x158] sm:$0xff] %v3561_v10 }
 0x485   : > { %v3121_v52 = vpop.f32.mrf.mxu2  ;;  %v3330_v38 = vpop.f32.mrf.mxu3 }
 0x486   : > { %v3331_v55 = vadd.f32 %v3330_v38, %v3121_v52 }
 0x488   : > { %3434 = vst [vmem:[%s5899_s28 + $0x160] sm:$0xff] %v3331_v55  ;;  %v3498_v37 = vsub.f32 %v3331_v55, %v4203_v28 }
 0x48a   : > { %v3562_v59 = vadd.f32 %v4203_v28, %v3498_v37  ;;  %v2488_v28 = vcvt.f32.s32 %v6857_v23  ;;  %v4211_v37 = vld [vmem:[%s4481_s25 + $0x1a0] sm:$0xff] }
 0x48c   : > { %3626 = vst [vmem:[%s5921_s9 + $0x160] sm:$0xff] %v3562_v59 }
 0x48d   : > { %v3124_v29 = vpop.f32.mrf.mxu2  ;;  %v3333_v40 = vpop.f32.mrf.mxu3 }
 0x48e   : > { %v3334_v62 = vadd.f32 %v3333_v40, %v3124_v29 }
 0x490   : > { %3435 = vst [vmem:[%s5899_s28 + $0x168] sm:$0xff] %v3334_v62  ;;  %v3499_v51 = vsub.f32 %v3334_v62, %v4204_v46  ;;  %v2489_v62 = vshll.u32 %v2488_v28, 16 }
 0x492   : > { %v3563_v17 = vadd.f32 %v4204_v46, %v3499_v51 }
 0x494   : > { %3627 = vst [vmem:[%s5921_s9 + $0x168] sm:$0xff] %v3563_v17 }
 0x495   : > { %v3127_v61 = vpop.f32.mrf.mxu2  ;;  %v3336_v30 = vpop.f32.mrf.mxu3 }
 0x496   : > { %v3337_v18 = vadd.f32 %v3336_v30, %v3127_v61  ;;  %v2504_v30 = vcvt.f32.s32 %v6872_v31 }
 0x498   : > { %3436 = vst [vmem:[%s5899_s28 + $0x170] sm:$0xff] %v3337_v18  ;;  %v3500_v34 = vsub.f32 %v3337_v18, %v4205_v1  ;;  %v4212_v18 = vld [vmem:[%s4481_s25 + $0x1a8] sm:$0xff] }
 0x49a   : > { %v3564_v16 = vadd.f32 %v4205_v1, %v3500_v34 }
 0x49c   : > { %3628 = vst [vmem:[%s5921_s9 + $0x170] sm:$0xff] %v3564_v16 }
 0x49d   : > { %v3130_v39 = vpop.f32.mrf.mxu2  ;;  %v3339_v58 = vpop.f32.mrf.mxu3 }
 0x49e   : > { %v3340_v15 = vadd.f32 %v3339_v58, %v3130_v39  ;;  %v2505_v39 = vshll.u32 %v2504_v30, 16  ;;  %v4221_v30 = vld [vmem:[%s4481_s25 + $0x1f0] sm:$0xff] }
 0x4a0   : > { %3437 = vst [vmem:[%s5899_s28 + $0x178] sm:$0xff] %v3340_v15  ;;  %v3501_v45 = vsub.f32 %v3340_v15, %v4206_v20 }
 0x4a2   : > { %v3565_v9 = vadd.f32 %v4206_v20, %v3501_v45 }
 0x4a4   : > { %3629 = vst [vmem:[%s5921_s9 + $0x178] sm:$0xff] %v3565_v9  ;;  %v2520_v9 = vcvt.f32.s32 %v6887_v48 }
 0x4a5   : > { %v3133_v60 = vpop.f32.mrf.mxu2  ;;  %v3342_v50 = vpop.f32.mrf.mxu3 }
 0x4a6   : > { %v3343_v5 = vadd.f32 %v3342_v50, %v3133_v60  ;;  %v4213_v60 = vld [vmem:[%s4481_s25 + $0x1b0] sm:$0xff] }
 0x4a8   : > { %3438 = vst [vmem:[%s5899_s28 + $0x180] sm:$0xff] %v3343_v5  ;;  %v3502_v32 = vsub.f32 %v3343_v5, %v4207_v47 }
 0x4aa   : > { %v3566_v2 = vadd.f32 %v4207_v47, %v3502_v32  ;;  %v2521_v32 = vshll.u32 %v2520_v9, 16 }
 0x4ac   : > { %3630 = vst [vmem:[%s5921_s9 + $0x180] sm:$0xff] %v3566_v2 }
 0x4ad   : > { %v3136_v57 = vpop.f32.mrf.mxu2  ;;  %v3345_v49 = vpop.f32.mrf.mxu3 }
 0x4ae   : > { %v3346_v22 = vadd.f32 %v3345_v49, %v3136_v57 }
 0x4b0   : > { %3439 = vst [vmem:[%s5899_s28 + $0x188] sm:$0xff] %v3346_v22  ;;  %v3503_v7 = vsub.f32 %v3346_v22, %v4208_v27 }
 0x4b2   : > { %v3567_v11 = vadd.f32 %v4208_v27, %v3503_v7  ;;  %v4214_v27 = vld [vmem:[%s4481_s25 + $0x1b8] sm:$0xff] }
 0x4b4   : > { %3631 = vst [vmem:[%s5921_s9 + $0x188] sm:$0xff] %v3567_v11 }
 0x4b5   : > { %v3139_v3 = vpop.f32.mrf.mxu2  ;;  %v3348_v21 = vpop.f32.mrf.mxu3 }
 0x4b6   : > { %v3349_v4 = vadd.f32 %v3348_v21, %v3139_v3 }
 0x4b8   : > { %3440 = vst [vmem:[%s5899_s28 + $0x190] sm:$0xff] %v3349_v4  ;;  %v3504_v63 = vsub.f32 %v3349_v4, %v4209_v36 }
 0x4ba   : > { %v3568_v14 = vadd.f32 %v4209_v36, %v3504_v63  ;;  %v2454_v19 = vpop.xlane.xlu1 %2453 }
 0x4bb   : > { %v2455_v54 = vcvt.f32.s32 %v2454_v19 }
 0x4bc   : > { %3632 = vst [vmem:[%s5921_s9 + $0x190] sm:$0xff] %v3568_v14 }
 0x4bd   : > { %v2458_v13 = vadd.s32 %v2457_v25, %v2455_v54  ;;  %v3142_v24 = vpop.f32.mrf.mxu2  ;;  %v3351_v44 = vpop.f32.mrf.mxu3 }
 0x4be   : > { %v3352_v26 = vadd.f32 %v3351_v44, %v3142_v24  ;;  %v4217_v44 = vld [vmem:[%s4481_s25 + $0x1d0] sm:$0xff] }
 0x4bf   : > { %2583 = vst.msk [vmem:[%s5339_s8 + $0x1d8] sm:$0xff] %vm2523_vm10, %v2458_v13  ;;  %vm2706_vm11 = vcmp.eq.s32.totalorder %v4680_v0, %v2458_v13  ;;  %vm2707_vm12 = vcmp.eq.s32.totalorder %v4684_v6, %v2458_v13 }
 0x4c0   : > { %3441 = vst [vmem:[%s5899_s28 + $0x198] sm:$0xff] %v3352_v26  ;;  %v3505_v35 = vsub.f32 %v3352_v26, %v4210_v33  ;;  %4023 = vmatmul.msk.f32.gmra.mxu2 %vm2706_vm11, %v7203_v8  ;;  %4087 = vmatmul.msk.f32.gmra.mxu3 %vm2707_vm12, %v7203_v8 }
 0x4c2   : > { %v3569_v56 = vadd.f32 %v4210_v33, %v3505_v35  ;;  %v2470_v42 = vpop.xlane.xlu2 %2469 }
 0x4c3   : > { %v2471_v12 = vcvt.f32.s32 %v2470_v42  ;;  %v4218_v42 = vld [vmem:[%s4481_s25 + $0x1d8] sm:$0xff] }
 0x4c4   : > { %3633 = vst [vmem:[%s5921_s9 + $0x198] sm:$0xff] %v3569_v56 }
 0x4c5   : > { %v2474_v10 = vadd.s32 %v2473_v53, %v2471_v12  ;;  %v3145_v52 = vpop.f32.mrf.mxu2  ;;  %v3354_v38 = vpop.f32.mrf.mxu3 }
 0x4c6   : > { %v3355_v55 = vadd.f32 %v3354_v38, %v3145_v52 }
 0x4c7   : > { %2584 = vst.msk [vmem:[%s5339_s8 + $0x1e0] sm:$0xff] %vm2523_vm10, %v2474_v10  ;;  %vm2708_vm13 = vcmp.eq.s32.totalorder %v4680_v0, %v2474_v10  ;;  %vm2709_vm14 = vcmp.eq.s32.totalorder %v4684_v6, %v2474_v10 }
 0x4c8   : > { %3442 = vst [vmem:[%s5899_s28 + $0x1a0] sm:$0xff] %v3355_v55  ;;  %v3506_v59 = vsub.f32 %v3355_v55, %v4211_v37  ;;  %4024 = vmatmul.msk.f32.gmra.mxu2 %vm2708_vm13, %v7203_v8  ;;  %4088 = vmatmul.msk.f32.gmra.mxu3 %vm2709_vm14, %v7203_v8  ;;  %v4219_v55 = vld [vmem:[%s4481_s25 + $0x1e0] sm:$0xff] }
 0x4ca   : > { %v3570_v29 = vadd.f32 %v4211_v37, %v3506_v59  ;;  %v2486_v40 = vpop.xlane.xlu0 %2485 }
 0x4cb   : > { %v2487_v23 = vcvt.f32.s32 %v2486_v40 }
 0x4cc   : > { %3634 = vst [vmem:[%s5921_s9 + $0x1a0] sm:$0xff] %v3570_v29 }
 0x4cd   : > { %v2490_v46 = vadd.s32 %v2489_v62, %v2487_v23  ;;  %v3148_v51 = vpop.f32.mrf.mxu2  ;;  %v3357_v17 = vpop.f32.mrf.mxu3  ;;  %v4220_v62 = vld [vmem:[%s4481_s25 + $0x1e8] sm:$0xff] }
 0x4ce   : > { %v3358_v61 = vadd.f32 %v3357_v17, %v3148_v51 }
 0x4cf   : > { %2585 = vst.msk [vmem:[%s5339_s8 + $0x1e8] sm:$0xff] %vm2523_vm10, %v2490_v46  ;;  %vm2710_vm15 = vcmp.eq.s32.totalorder %v4680_v0, %v2490_v46  ;;  %vm2711_vm0 = vcmp.eq.s32.totalorder %v4684_v6, %v2490_v46 }
 0x4d0   : > { %3443 = vst [vmem:[%s5899_s28 + $0x1a8] sm:$0xff] %v3358_v61  ;;  %v3507_v1 = vsub.f32 %v3358_v61, %v4212_v18  ;;  %4025 = vmatmul.msk.f32.gmra.mxu2 %vm2710_vm15, %v7203_v8  ;;  %4089 = vmatmul.msk.f32.gmra.mxu3 %vm2711_vm0, %v7203_v8 }
 0x4d2   : > { %v3571_v34 = vadd.f32 %v4212_v18, %v3507_v1  ;;  %v2502_v16 = vpop.xlane.xlu1 %2501 }
 0x4d3   : > { %v2503_v31 = vcvt.f32.s32 %v2502_v16 }
 0x4d4   : > { %3635 = vst [vmem:[%s5921_s9 + $0x1a8] sm:$0xff] %v3571_v34 }
 0x4d5   : > { %v2506_v58 = vadd.s32 %v2505_v39, %v2503_v31  ;;  %v3151_v15 = vpop.f32.mrf.mxu2  ;;  %v3360_v20 = vpop.f32.mrf.mxu3  ;;  %v4222_v31 = vld [vmem:[%s4481_s25 + $0x1f8] sm:$0xff] }
 0x4d6   : > { %v3361_v45 = vadd.f32 %v3360_v20, %v3151_v15 }
 0x4d7   : > { %2586 = vst.msk [vmem:[%s5339_s8 + $0x1f0] sm:$0xff] %vm2523_vm10, %v2506_v58  ;;  %vm2712_vm1 = vcmp.eq.s32.totalorder %v4680_v0, %v2506_v58  ;;  %vm2713_vm2 = vcmp.eq.s32.totalorder %v4684_v6, %v2506_v58 }
 0x4d8   : > { %3444 = vst [vmem:[%s5899_s28 + $0x1b0] sm:$0xff] %v3361_v45  ;;  %v3508_v50 = vsub.f32 %v3361_v45, %v4213_v60  ;;  %4026 = vmatmul.msk.f32.gmra.mxu2 %vm2712_vm1, %v7203_v8  ;;  %4090 = vmatmul.msk.f32.gmra.mxu3 %vm2713_vm2, %v7203_v8 }
 0x4da   : > { %v3572_v5 = vadd.f32 %v4213_v60, %v3508_v50  ;;  %v2518_v47 = vpop.xlane.xlu2 %2517 }
 0x4db   : > { %v2519_v48 = vcvt.f32.s32 %v2518_v47 }
 0x4dc   : > { %3636 = vst [vmem:[%s5921_s9 + $0x1b0] sm:$0xff] %v3572_v5 }
 0x4dd   : > { %v2522_v2 = vadd.s32 %v2521_v32, %v2519_v48  ;;  %v3154_v57 = vpop.f32.mrf.mxu2  ;;  %v3363_v49 = vpop.f32.mrf.mxu3 }
 0x4de   : > { %v3364_v22 = vadd.f32 %v3363_v49, %v3154_v57 }
 0x4df   : > { %2587 = vst.msk [vmem:[%s5339_s8 + $0x1f8] sm:$0xff] %vm2523_vm10, %v2522_v2  ;;  %vm2714_vm3 = vcmp.eq.s32.totalorder %v4680_v0, %v2522_v2  ;;  %vm2715_vm4 = vcmp.eq.s32.totalorder %v4684_v6, %v2522_v2  ;;  %v4215_v0 = vld [vmem:[%s4481_s25 + $0x1c0] sm:$0xff]  ;;  %s4267_s8 = sshra.s32 %s3672_s23, 4  ;;  %s4268_s8 = int_to_ptr.hbm [resolvable:$true] %s4267_s8 }
 0x4e0   : > { %3445 = vst [vmem:[%s5899_s28 + $0x1b8] sm:$0xff] %v3364_v22  ;;  %v3509_v7 = vsub.f32 %v3364_v22, %v4214_v27  ;;  %4027 = vmatmul.msk.f32.gmra.mxu2 %vm2714_vm3, %v7203_v8  ;;  %4091 = vmatmul.msk.f32.gmra.mxu3 %vm2715_vm4, %v7203_v8  ;;  %v4216_v8 = vld [vmem:[%s4481_s25 + $0x1c8] sm:$0xff]  ;;  %s4269_s29 = scalar_lea.hbm %s4268_s8, 512  ;;  %p4274_p1 = scmp.lt.s32.totalorder %s4268_s8, %s7066_s3 }
 0x4e1   : > { %p4270_p9 = scmp.ne.s32.totalorder %s4268_s8, %s4269_s29  ;;  %p4275_p3 = scmp.lt.s32.totalorder %s4273_s7, %s4269_s29 }
 0x4e2   : > { %v3573_v11 = vadd.f32 %v4214_v27, %v3509_v7 }
 0x4e3   : > { %p4271_p13 = pnand %p4270_p9, %p4438_p11  ;;  %p4276_p4 = por %p4275_p3, %p4274_p1 }
 0x4e4   : > { %3637 = vst [vmem:[%s5921_s9 + $0x1b8] sm:$0xff] %v3573_v11 }
 0x4e5   : > { %v3157_v3 = vpop.f32.mrf.mxu2  ;;  %v3366_v21 = vpop.f32.mrf.mxu3  ;;  %p4272_p0 = pneg %p4271_p13 }
 0x4e6   : > { %v3367_v4 = vadd.f32 %v3366_v21, %v3157_v3 }
 0x4e7   : > { %p4277_p7 = pnand %p4276_p4, %p4272_p0 }
 0x4e8   : > { %3446 = vst [vmem:[%s5899_s28 + $0x1c0] sm:$0xff] %v3367_v4  ;;  %v3510_v6 = vsub.f32 %v3367_v4, %v4215_v0 }
 0x4ea   : > { %v3574_v43 = vadd.f32 %v4215_v0, %v3510_v6 }
 0x4ec   : > { %3638 = vst [vmem:[%s5921_s9 + $0x1c0] sm:$0xff] %v3574_v43 }
 0x4ed   : > { %v3160_v36 = vpop.f32.mrf.mxu2  ;;  %v3369_v63 = vpop.f32.mrf.mxu3 }
 0x4ee   : > { %v3370_v14 = vadd.f32 %v3369_v63, %v3160_v36 }
 0x4f0   : > { %3447 = vst [vmem:[%s5899_s28 + $0x1c8] sm:$0xff] %v3370_v14  ;;  %v3511_v19 = vsub.f32 %v3370_v14, %v4216_v8 }
 0x4f2   : > { %v3575_v25 = vadd.f32 %v4216_v8, %v3511_v19 }
 0x4f4   : > { %3639 = vst [vmem:[%s5921_s9 + $0x1c8] sm:$0xff] %v3575_v25 }
 0x4f5   : > { %v3163_v54 = vpop.f32.mrf.mxu2  ;;  %v3372_v13 = vpop.f32.mrf.mxu3 }
 0x4f6   : > { %v3373_v24 = vadd.f32 %v3372_v13, %v3163_v54 }
 0x4f8   : > { %3448 = vst [vmem:[%s5899_s28 + $0x1d0] sm:$0xff] %v3373_v24  ;;  %v3512_v26 = vsub.f32 %v3373_v24, %v4217_v44 }
 0x4fa   : > { %v3576_v41 = vadd.f32 %v4217_v44, %v3512_v26 }
 0x4fc   : > { %3640 = vst [vmem:[%s5921_s9 + $0x1d0] sm:$0xff] %v3576_v41 }
 0x543   : > { %v3166_v33 = vpop.f32.mrf.mxu2  ;;  %v3375_v35 = vpop.f32.mrf.mxu3 }
 0x544   : > { %v3376_v56 = vadd.f32 %v3375_v35, %v3166_v33 }
 0x546   : > { %3449 = vst [vmem:[%s5899_s28 + $0x1d8] sm:$0xff] %v3376_v56  ;;  %v3513_v53 = vsub.f32 %v3376_v56, %v4218_v42 }
 0x548   : > { %v3577_v12 = vadd.f32 %v4218_v42, %v3513_v53 }
 0x54a   : > { %3641 = vst [vmem:[%s5921_s9 + $0x1d8] sm:$0xff] %v3577_v12 }
 0x54b   : > { %v3169_v10 = vpop.f32.mrf.mxu2  ;;  %v3378_v52 = vpop.f32.mrf.mxu3 }
 0x54c   : > { %v3379_v38 = vadd.f32 %v3378_v52, %v3169_v10 }
 0x54e   : > { %3450 = vst [vmem:[%s5899_s28 + $0x1e0] sm:$0xff] %v3379_v38  ;;  %v3514_v28 = vsub.f32 %v3379_v38, %v4219_v55 }
 0x550   : > { %v3578_v37 = vadd.f32 %v4219_v55, %v3514_v28 }
 0x552   : > { %3642 = vst [vmem:[%s5921_s9 + $0x1e0] sm:$0xff] %v3578_v37 }
 0x553   : > { %v3172_v59 = vpop.f32.mrf.mxu2  ;;  %v3381_v29 = vpop.f32.mrf.mxu3 }
 0x554   : > { %v3382_v40 = vadd.f32 %v3381_v29, %v3172_v59 }
 0x556   : > { %3451 = vst [vmem:[%s5899_s28 + $0x1e8] sm:$0xff] %v3382_v40  ;;  %v3515_v23 = vsub.f32 %v3382_v40, %v4220_v62 }
 0x558   : > { %v3579_v46 = vadd.f32 %v4220_v62, %v3515_v23 }
 0x55a   : > { %3643 = vst [vmem:[%s5921_s9 + $0x1e8] sm:$0xff] %v3579_v46 }
 0x55b   : > { %v3175_v51 = vpop.f32.mrf.mxu2  ;;  %v3384_v17 = vpop.f32.mrf.mxu3 }
 0x55c   : > { %v3385_v61 = vadd.f32 %v3384_v17, %v3175_v51 }
 0x55e   : > { %3452 = vst [vmem:[%s5899_s28 + $0x1f0] sm:$0xff] %v3385_v61  ;;  %v3516_v18 = vsub.f32 %v3385_v61, %v4221_v30 }
 0x560   : > { %v3580_v1 = vadd.f32 %v4221_v30, %v3516_v18 }
 0x562   : > { %3644 = vst [vmem:[%s5921_s9 + $0x1f0] sm:$0xff] %v3580_v1 }
 0x563   : > { %v3178_v34 = vpop.f32.mrf.mxu2  ;;  %v3387_v16 = vpop.f32.mrf.mxu3 }
 0x564   : > { %v3388_v39 = vadd.f32 %v3387_v16, %v3178_v34 }
 0x566   : > { %3453 = vst [vmem:[%s5899_s28 + $0x1f8] sm:$0xff] %v3388_v39  ;;  %v3517_v58 = vsub.f32 %v3388_v39, %v4222_v31 }
 0x567   : > { %4280 = shalt.err (!%p4277_p7)
}
 0x568   : > { %s4356_s25 = smov 128   ;;  %s4357_s28 = smov 8   ;;  %v3581_v15 = vadd.f32 %v4222_v31, %v3517_v58 }
 0x569   : > { %4105 = dma.vmem_to_hbm [thread:$0]  (%p4438_p11), %s3670_s11, 8192, %s3672_s23, %s3647_s26, %s4356_s25, %s4356_s25, %s4357_s28  }
 0x56a   : > { %3645 = vst [vmem:[%s5921_s9 + $0x1f8] sm:$0xff] %v3581_v15  ;;  %s3652_s15 = scalar_lea.sflag [#allocation7], %s4474_s12  ;;  %s4295_s14 = sshra.s32 %s3689_s17, 4  ;;  %s4296_s14 = int_to_ptr.hbm [resolvable:$true] %s4295_s14 }
 0x56b   : > { %s4297_s8 = scalar_lea.hbm %s4296_s14, 512  ;;  %s4301_s7 = scalar_lea.hbm %s7067_s4, 1024 }
 0x56c   : > { %p4298_p5 = scmp.ne.s32.totalorder %s4296_s14, %s4297_s8  ;;  %p4302_p2 = scmp.lt.s32.totalorder %s4296_s14, %s7067_s4 }
 0x56d   : > { %p4303_p6 = scmp.lt.s32.totalorder %s4301_s7, %s4297_s8 }
 0x56e   : > { %p4299_p8 = pnand %p4298_p5, %p4438_p11 }
 0x56f   : > { %p4304_p9 = por %p4303_p6, %p4302_p2 }
 0x570   : > { %p4300_p10 = pneg %p4299_p8 }
 0x572   : > { %p4305_p13 = pnand %p4304_p9, %p4300_p10 }
 0x574   : > { %4308 = shalt.err (!%p4305_p13)
}
 0x575   : > { %4106 = dma.vmem_to_hbm [thread:$0]  (%p4438_p11), %s3687_s16, 8192, %s3689_s17, %s3652_s15, %s4356_s25, %s4356_s25, %s4357_s28  }
 0x576 PF: > { %s3707_s12 = sand.u32 1, %s4339_s18   ;;  %p7341_p0 = scmp.ge.s32.totalorder %s4351_s21, 2 }
 0x577   : > { %s3708_s9 = scalar_lea.sflag [#allocation4], %s3707_s12 }
 0x578   : > { %p4114_p1 = pnand %p7341_p0, %p4442_p12 }
 0x57a   : > { %p4115_p3 = pneg %p4114_p1 }
 0x57c   : > { %4330 = dma.done.wait (%p4115_p3), %s3708_s9, 8192  }
 0x57d   : > { %4332 = vsyncadd (%p4115_p3), %s3708_s9, 4294959104  ;;  %s3718_s11 = scalar_lea.sflag [#allocation7], %s3707_s12 }
 0x57e   : > { %4334 = dma.done.wait (%p4115_p3), %s3718_s11, 8192  }
 0x57f   : > { %4336 = vsyncadd (%p4115_p3), %s3718_s11, 4294959104  ;;  %p22_p11 = scmp.ge.s32.totalorder %s4413_s24, 4   ;;  %s7342_s18 = smov %s4343_s19 }
 0x580   : > { %s7343_s19 = smov %s4347_s20  ;;  %s7344_s20 = smov %s4425_s27 }
 0x581   : > { %s7345_s21 = smov %s4413_s24  ;;  %24 = sbr.rel (!%p22_p11) target bundleno = 7 (0x7), region = 106 }
 0x586   :  { %3732 = vsyncpa [#allocation3], 1 }
 0x587   :  { %3734 = vsyncpa [#allocation3 + $0x1], 1 }
 0x588   :  { %3735 = vsyncpa [#allocation4], 1 }
 0x589   :  { %3737 = vsyncpa [#allocation4 + $0x1], 1 }
 0x58a   :  { %3738 = vsyncpa [#allocation7], 1 }
 0x58b   :  { %3740 = vsyncpa [#allocation7 + $0x1], 1 }

</bundles_post_ra>
